<compile_context>
chip_gen: v7x
topology: tpu7x:2x2x1
jax: 0.10.0
libtpu: 0.0.40
codegen_flags: <defaults>
</compile_context>

<pallas_src>
import functools

import jax
import jax.numpy as jnp
from jax.experimental import pallas as pl
from jax.experimental.pallas import tpu as pltpu


def encoder_kernel(src_ref, slen_ref, emb_ref, *rest,
                   n_layers, seq_len, batch, hid_dim, emb_dim):
    """Fused Encoder1 forward.

    src_ref  : (T*B,)  int32 token ids in SMEM (row = t*B + b)
    slen_ref : (B, 1)  int32 sentence lengths (VMEM)
    emb_ref  : (V, E)  f32 embedding table left in HBM (pl.ANY)
    rest     : per layer [w_ih (IN,4H), w_hh (H,4H), b (1,4H)] (VMEM);
               then out_ref (B, H); then scratch: stage (T*B, E) VMEM,
               sem DMA semaphores (T*B,).
    """
    T, B, H, E = seq_len, batch, hid_dim, emb_dim
    G = 4 * H
    nw = 3 * n_layers
    layer_refs = rest[:nw]
    out_ref = rest[nw]
    stage_ref = rest[nw + 1]
    sem = rest[nw + 2]

    # ---- 1. Embedding gather: per-token row DMA HBM -> VMEM staging --------
    # T*B is tiny here, so all gathers are issued up front ("blast"); for long
    # sequences this would be chunked / double-buffered against the layer-0
    # GEMM below.
    copies = []
    for i in range(T * B):
        tok = src_ref[i]                              # scalar read from SMEM
        cp = pltpu.make_async_copy(emb_ref.at[tok], stage_ref.at[i], sem.at[i])
        cp.start()
        copies.append(cp)
    for cp in copies:
        cp.wait()
    x_emb = stage_ref[...]                            # (T*B, E) f32

    # sen_len -> last valid timestep.  PyTorch-style wrap for len < 1, and
    # clamp to T for out-of-range lengths (matches the JAX reference).
    slen = slen_ref[...]                              # (B, 1)
    eff = jnp.where(slen < 1, jnp.int32(T), slen)
    eff = jnp.minimum(eff, jnp.int32(T))

    # ---- 2. Load weights once; hoist layer-0 input projection --------------
    wih = [layer_refs[3 * L + 0][...] for L in range(n_layers)]   # (IN, 4H)
    whh = [layer_refs[3 * L + 1][...] for L in range(n_layers)]   # (H, 4H)
    bias = [layer_refs[3 * L + 2][...] for L in range(n_layers)]  # (1, 4H)

    # Layer 0: one batched GEMM over all T*B rows (bias folded in here).
    gx0 = jnp.dot(x_emb, wih[0],
                  preferred_element_type=jnp.float32) + bias[0]   # (T*B, 4H)

    # Lane mask selecting the candidate-gate (tanh) lanes of the packed
    # (i | f | g | o) 4H = 128 gate tile; sigmoid everywhere else.
    lane = jax.lax.broadcasted_iota(jnp.int32, (B, G), 1)
    tanh_lane = (lane >= 2 * H) & (lane < 3 * H)

    h = [jnp.zeros((B, H), jnp.float32) for _ in range(n_layers)]
    c = [jnp.zeros((B, H), jnp.float32) for _ in range(n_layers)]
    outs = [[None] * T for _ in range(n_layers)]      # inter-layer, in vregs
    sel = jnp.zeros((B, H), jnp.float32)

    # ---- 3. Wavefront over (t + layer): layer L step t runs alongside ------
    #          layer L-1 step t+1 (independent data -> scheduler overlaps).
    for s in range(T + n_layers - 1):
        for L in range(n_layers):
            t = s - L
            if t < 0 or t >= T:
                continue
            if L == 0:
                gates = gx0[t * B:(t + 1) * B, :] + jnp.dot(
                    h[0], whh[0], preferred_element_type=jnp.float32)
            else:
                x_in = outs[L - 1][t]                 # ready one step earlier
                gates = (jnp.dot(x_in, wih[L],
                                 preferred_element_type=jnp.float32)
                         + jnp.dot(h[L], whh[L],
                                   preferred_element_type=jnp.float32)
                         + bias[L])                   # (B, 4H)
            act = jnp.where(tanh_lane, jnp.tanh(gates), jax.nn.sigmoid(gates))
            i_g = act[:, 0:H]
            f_g = act[:, H:2 * H]
            g_g = act[:, 2 * H:3 * H]
            o_g = act[:, 3 * H:4 * H]
            c[L] = f_g * c[L] + i_g * g_g
            h[L] = o_g * jnp.tanh(c[L])
            if L == n_layers - 1:
                # fused sen_len-1 gather: keep h at t == sen_len[b]-1
                sel = jnp.where(eff == (t + 1), h[L], sel)
            else:
                outs[L][t] = h[L]

    out_ref[...] = sel


def encoder1_forward(params, src, sen_len):
    """src: (T, B) int32 token ids; sen_len: (B,) int32. Returns (B*H,)."""
    T, B = src.shape
    H = params["hid_dim"]
    emb = params["embedding"]                         # (V, E), stays in HBM
    V, E = emb.shape
    n_layers = len(params["lstm"])

    layer_args = []
    for lyr in params["lstm"]:
        layer_args += [lyr["w_ih"], lyr["w_hh"], lyr["b"]]

    kernel = functools.partial(
        encoder_kernel, n_layers=n_layers, seq_len=T, batch=B,
        hid_dim=H, emb_dim=E)

    vmem_spec = pl.BlockSpec(memory_space=pltpu.MemorySpace.VMEM)
    in_specs = (
        [pl.BlockSpec(memory_space=pltpu.MemorySpace.SMEM),   # token ids
         vmem_spec,                                           # sen_len
         pl.BlockSpec(memory_space=pl.ANY)]                   # emb table (HBM)
        + [vmem_spec] * (3 * n_layers))                       # LSTM weights

    out = pl.pallas_call(
        kernel,
        out_shape=jax.ShapeDtypeStruct((B, H), jnp.float32),
        # No grid: a single short sequence; weights, states and the staging
        # buffer are VMEM-resident for the whole kernel (well under 1 MiB).
        in_specs=in_specs,
        out_specs=vmem_spec,
        scratch_shapes=[pltpu.VMEM((T * B, E), jnp.float32),
                        pltpu.SemaphoreType.DMA((T * B,))],
    )(src.reshape(T * B).astype(jnp.int32),
      sen_len.reshape(B, 1).astype(jnp.int32),
      emb,
      *layer_args)
    return out.reshape(-1)


def init_params(key, vocab_size, emb_dim, hid_dim, n_layers):
    """Deterministic PyTorch-style uniform(-1/sqrt(H), 1/sqrt(H)) init.

    Weights are stored gate-fused (PyTorch gate order i, f, g, o),
    pre-transposed for x @ W:
      w_ih: (IN, 4H), w_hh: (H, 4H), b: (1, 4H) with b = b_ih + b_hh.
    """
    keys = jax.random.split(key, 1 + 4 * n_layers)
    k_scale = 1.0 / jnp.sqrt(jnp.float32(hid_dim))
    params = {
        "hid_dim": hid_dim,
        "embedding": jax.random.normal(keys[0], (vocab_size, emb_dim),
                                       dtype=jnp.float32),
        "lstm": [],
    }
    for layer in range(n_layers):
        in_dim = emb_dim if layer == 0 else hid_dim
        kw = keys[1 + 4 * layer: 1 + 4 * (layer + 1)]
        w_ih = jax.random.uniform(kw[0], (4 * hid_dim, in_dim),
                                  minval=-k_scale, maxval=k_scale)
        w_hh = jax.random.uniform(kw[1], (4 * hid_dim, hid_dim),
                                  minval=-k_scale, maxval=k_scale)
        b_ih = jax.random.uniform(kw[2], (4 * hid_dim,),
                                  minval=-k_scale, maxval=k_scale)
        b_hh = jax.random.uniform(kw[3], (4 * hid_dim,),
                                  minval=-k_scale, maxval=k_scale)
        params["lstm"].append({
            "w_ih": w_ih.T.astype(jnp.float32),                  # (IN, 4H)
            "w_hh": w_hh.T.astype(jnp.float32),                  # (H, 4H)
            "b": (b_ih + b_hh).reshape(1, 4 * hid_dim).astype(jnp.float32),
        })
    return params


def encoder1_reference(params, src, sen_len):
    """Pure-JAX reference (same math, no Pallas)."""
    T, B = src.shape
    H = params["hid_dim"]
    x = params["embedding"][src]                                 # (T, B, E)
    for lyr in params["lstm"]:
        wih, whh, b = lyr["w_ih"], lyr["w_hh"], lyr["b"]
        h = jnp.zeros((B, H), jnp.float32)
        c = jnp.zeros((B, H), jnp.float32)
        outs = []
        for t in range(T):
            g = x[t] @ wih + h @ whh + b                         # (B, 4H)
            i_g = jax.nn.sigmoid(g[:, 0:H])
            f_g = jax.nn.sigmoid(g[:, H:2 * H])
            g_g = jnp.tanh(g[:, 2 * H:3 * H])
            o_g = jax.nn.sigmoid(g[:, 3 * H:4 * H])
            c = f_g * c + i_g * g_g
            h = o_g * jnp.tanh(c)
            outs.append(h)
        x = jnp.stack(outs, axis=0)                              # (T, B, H)
    idx = jnp.clip(jnp.where(sen_len < 1, T, sen_len), 1, T) - 1
    return x[idx, jnp.arange(B), :].reshape(-1)


if __name__ == "__main__":
    VOCAB = 100
    EMB_DIM = 32
    HID_DIM = 32
    N_LAYERS = 2
    T, B = 8, 2

    key = jax.random.PRNGKey(0)
    k_params, k_src = jax.random.split(key)
    params = init_params(k_params, VOCAB, EMB_DIM, HID_DIM, N_LAYERS)

    src = jax.random.randint(k_src, (T, B), 0, VOCAB, dtype=jnp.int32)
    sen_len = jnp.array([T, T - 3], dtype=jnp.int32)

    out = encoder1_forward(params, src, sen_len)
    out = jax.block_until_ready(out)
    assert out.shape == (B * HID_DIM,), out.shape

    ref = encoder1_reference(params, src, sen_len)
    max_err = float(jnp.max(jnp.abs(out - ref)))
    assert jnp.allclose(out, ref, atol=1e-2, rtol=1e-2), max_err

    print("KERNEL_OK")
</pallas_src>

<mosaic_0001>
module attributes {stable_mosaic.version = 11 : i64} {
  func.func @encoder_kernel(%arg0: memref<16xi32, #tpu.memory_space<smem>>, %arg1: memref<2x1xi32, #tpu.memory_space<vmem>>, %arg2: memref<100x32xf32, #tpu.memory_space<any>>, %arg3: memref<32x128xf32, #tpu.memory_space<vmem>>, %arg4: memref<32x128xf32, #tpu.memory_space<vmem>>, %arg5: memref<1x128xf32, #tpu.memory_space<vmem>>, %arg6: memref<32x128xf32, #tpu.memory_space<vmem>>, %arg7: memref<32x128xf32, #tpu.memory_space<vmem>>, %arg8: memref<1x128xf32, #tpu.memory_space<vmem>>, %arg9: memref<2x32xf32, #tpu.memory_space<vmem>>, %arg10: memref<16x32xf32, #tpu.memory_space<vmem>>, %arg11: memref<16x!tpu.dma_semaphore, #tpu.memory_space<semaphore_mem>>) attributes {dimension_semantics = [], scalar_prefetch = 0 : i64, scratch_operands = 2 : i64, tpu.core_type = #tpu.core_type<tc>} {
    %c0 = arith.constant 0 : index
    %0 = memref.load %arg0[%c0] : memref<16xi32, #tpu.memory_space<smem>>
    %c0_i32 = arith.constant 0 : i32
    %c0_i32_0 = arith.constant 0 : i32
    %c0_i32_1 = arith.constant 0 : i32
    %1 = tpu.memref_slice %arg2[%0, %c0_i32_1] : memref<100x32xf32, #tpu.memory_space<any>> -> memref<1x32xf32, #tpu.memory_space<any>>
    %2 = tpu.memref_squeeze %1 : memref<1x32xf32, #tpu.memory_space<any>> -> memref<32xf32, #tpu.memory_space<any>>
    %c0_i32_2 = arith.constant 0 : i32
    %3 = tpu.memref_slice %arg10[%c0_i32, %c0_i32_2] : memref<16x32xf32, #tpu.memory_space<vmem>> -> memref<1x32xf32, #tpu.memory_space<vmem>>
    %4 = tpu.memref_squeeze %3 : memref<1x32xf32, #tpu.memory_space<vmem>> -> memref<32xf32, #tpu.memory_space<vmem>>
    %5 = tpu.memref_slice %arg11[%c0_i32_0] : memref<16x!tpu.dma_semaphore, #tpu.memory_space<semaphore_mem>> -> memref<1x!tpu.dma_semaphore, #tpu.memory_space<semaphore_mem>>
    %6 = tpu.memref_squeeze %5 : memref<1x!tpu.dma_semaphore, #tpu.memory_space<semaphore_mem>> -> memref<!tpu.dma_semaphore, #tpu.memory_space<semaphore_mem>>
    tpu.enqueue_dma source(%2 : memref<32xf32, #tpu.memory_space<any>>) target(%4 : memref<32xf32, #tpu.memory_space<vmem>>) target_semaphore(%6 : memref<!tpu.dma_semaphore, #tpu.memory_space<semaphore_mem>>)
    %c1 = arith.constant 1 : index
    %7 = memref.load %arg0[%c1] : memref<16xi32, #tpu.memory_space<smem>>
    %c1_i32 = arith.constant 1 : i32
    %c1_i32_3 = arith.constant 1 : i32
    %c0_i32_4 = arith.constant 0 : i32
    %8 = tpu.memref_slice %arg2[%7, %c0_i32_4] : memref<100x32xf32, #tpu.memory_space<any>> -> memref<1x32xf32, #tpu.memory_space<any>>
    %9 = tpu.memref_squeeze %8 : memref<1x32xf32, #tpu.memory_space<any>> -> memref<32xf32, #tpu.memory_space<any>>
    %c0_i32_5 = arith.constant 0 : i32
    %10 = tpu.memref_slice %arg10[%c1_i32, %c0_i32_5] : memref<16x32xf32, #tpu.memory_space<vmem>> -> memref<1x32xf32, #tpu.memory_space<vmem>>
    %11 = tpu.memref_squeeze %10 : memref<1x32xf32, #tpu.memory_space<vmem>> -> memref<32xf32, #tpu.memory_space<vmem>>
    %12 = tpu.memref_slice %arg11[%c1_i32_3] : memref<16x!tpu.dma_semaphore, #tpu.memory_space<semaphore_mem>> -> memref<1x!tpu.dma_semaphore, #tpu.memory_space<semaphore_mem>>
    %13 = tpu.memref_squeeze %12 : memref<1x!tpu.dma_semaphore, #tpu.memory_space<semaphore_mem>> -> memref<!tpu.dma_semaphore, #tpu.memory_space<semaphore_mem>>
    tpu.enqueue_dma source(%9 : memref<32xf32, #tpu.memory_space<any>>) target(%11 : memref<32xf32, #tpu.memory_space<vmem>>) target_semaphore(%13 : memref<!tpu.dma_semaphore, #tpu.memory_space<semaphore_mem>>)
    %c2 = arith.constant 2 : index
    %14 = memref.load %arg0[%c2] : memref<16xi32, #tpu.memory_space<smem>>
    %c2_i32 = arith.constant 2 : i32
    %c2_i32_6 = arith.constant 2 : i32
    %c0_i32_7 = arith.constant 0 : i32
    %15 = tpu.memref_slice %arg2[%14, %c0_i32_7] : memref<100x32xf32, #tpu.memory_space<any>> -> memref<1x32xf32, #tpu.memory_space<any>>
    %16 = tpu.memref_squeeze %15 : memref<1x32xf32, #tpu.memory_space<any>> -> memref<32xf32, #tpu.memory_space<any>>
    %c0_i32_8 = arith.constant 0 : i32
    %17 = tpu.memref_slice %arg10[%c2_i32, %c0_i32_8] : memref<16x32xf32, #tpu.memory_space<vmem>> -> memref<1x32xf32, #tpu.memory_space<vmem>>
    %18 = tpu.memref_squeeze %17 : memref<1x32xf32, #tpu.memory_space<vmem>> -> memref<32xf32, #tpu.memory_space<vmem>>
    %19 = tpu.memref_slice %arg11[%c2_i32_6] : memref<16x!tpu.dma_semaphore, #tpu.memory_space<semaphore_mem>> -> memref<1x!tpu.dma_semaphore, #tpu.memory_space<semaphore_mem>>
    %20 = tpu.memref_squeeze %19 : memref<1x!tpu.dma_semaphore, #tpu.memory_space<semaphore_mem>> -> memref<!tpu.dma_semaphore, #tpu.memory_space<semaphore_mem>>
    tpu.enqueue_dma source(%16 : memref<32xf32, #tpu.memory_space<any>>) target(%18 : memref<32xf32, #tpu.memory_space<vmem>>) target_semaphore(%20 : memref<!tpu.dma_semaphore, #tpu.memory_space<semaphore_mem>>)
    %c3 = arith.constant 3 : index
    %21 = memref.load %arg0[%c3] : memref<16xi32, #tpu.memory_space<smem>>
    %c3_i32 = arith.constant 3 : i32
    %c3_i32_9 = arith.constant 3 : i32
    %c0_i32_10 = arith.constant 0 : i32
    %22 = tpu.memref_slice %arg2[%21, %c0_i32_10] : memref<100x32xf32, #tpu.memory_space<any>> -> memref<1x32xf32, #tpu.memory_space<any>>
    %23 = tpu.memref_squeeze %22 : memref<1x32xf32, #tpu.memory_space<any>> -> memref<32xf32, #tpu.memory_space<any>>
    %c0_i32_11 = arith.constant 0 : i32
    %24 = tpu.memref_slice %arg10[%c3_i32, %c0_i32_11] : memref<16x32xf32, #tpu.memory_space<vmem>> -> memref<1x32xf32, #tpu.memory_space<vmem>>
    %25 = tpu.memref_squeeze %24 : memref<1x32xf32, #tpu.memory_space<vmem>> -> memref<32xf32, #tpu.memory_space<vmem>>
    %26 = tpu.memref_slice %arg11[%c3_i32_9] : memref<16x!tpu.dma_semaphore, #tpu.memory_space<semaphore_mem>> -> memref<1x!tpu.dma_semaphore, #tpu.memory_space<semaphore_mem>>
    %27 = tpu.memref_squeeze %26 : memref<1x!tpu.dma_semaphore, #tpu.memory_space<semaphore_mem>> -> memref<!tpu.dma_semaphore, #tpu.memory_space<semaphore_mem>>
    tpu.enqueue_dma source(%23 : memref<32xf32, #tpu.memory_space<any>>) target(%25 : memref<32xf32, #tpu.memory_space<vmem>>) target_semaphore(%27 : memref<!tpu.dma_semaphore, #tpu.memory_space<semaphore_mem>>)
    %c4 = arith.constant 4 : index
    %28 = memref.load %arg0[%c4] : memref<16xi32, #tpu.memory_space<smem>>
    %c4_i32 = arith.constant 4 : i32
    %c4_i32_12 = arith.constant 4 : i32
    %c0_i32_13 = arith.constant 0 : i32
    %29 = tpu.memref_slice %arg2[%28, %c0_i32_13] : memref<100x32xf32, #tpu.memory_space<any>> -> memref<1x32xf32, #tpu.memory_space<any>>
    %30 = tpu.memref_squeeze %29 : memref<1x32xf32, #tpu.memory_space<any>> -> memref<32xf32, #tpu.memory_space<any>>
    %c0_i32_14 = arith.constant 0 : i32
    %31 = tpu.memref_slice %arg10[%c4_i32, %c0_i32_14] : memref<16x32xf32, #tpu.memory_space<vmem>> -> memref<1x32xf32, #tpu.memory_space<vmem>>
    %32 = tpu.memref_squeeze %31 : memref<1x32xf32, #tpu.memory_space<vmem>> -> memref<32xf32, #tpu.memory_space<vmem>>
    %33 = tpu.memref_slice %arg11[%c4_i32_12] : memref<16x!tpu.dma_semaphore, #tpu.memory_space<semaphore_mem>> -> memref<1x!tpu.dma_semaphore, #tpu.memory_space<semaphore_mem>>
    %34 = tpu.memref_squeeze %33 : memref<1x!tpu.dma_semaphore, #tpu.memory_space<semaphore_mem>> -> memref<!tpu.dma_semaphore, #tpu.memory_space<semaphore_mem>>
    tpu.enqueue_dma source(%30 : memref<32xf32, #tpu.memory_space<any>>) target(%32 : memref<32xf32, #tpu.memory_space<vmem>>) target_semaphore(%34 : memref<!tpu.dma_semaphore, #tpu.memory_space<semaphore_mem>>)
    %c5 = arith.constant 5 : index
    %35 = memref.load %arg0[%c5] : memref<16xi32, #tpu.memory_space<smem>>
    %c5_i32 = arith.constant 5 : i32
    %c5_i32_15 = arith.constant 5 : i32
    %c0_i32_16 = arith.constant 0 : i32
    %36 = tpu.memref_slice %arg2[%35, %c0_i32_16] : memref<100x32xf32, #tpu.memory_space<any>> -> memref<1x32xf32, #tpu.memory_space<any>>
    %37 = tpu.memref_squeeze %36 : memref<1x32xf32, #tpu.memory_space<any>> -> memref<32xf32, #tpu.memory_space<any>>
    %c0_i32_17 = arith.constant 0 : i32
    %38 = tpu.memref_slice %arg10[%c5_i32, %c0_i32_17] : memref<16x32xf32, #tpu.memory_space<vmem>> -> memref<1x32xf32, #tpu.memory_space<vmem>>
    %39 = tpu.memref_squeeze %38 : memref<1x32xf32, #tpu.memory_space<vmem>> -> memref<32xf32, #tpu.memory_space<vmem>>
    %40 = tpu.memref_slice %arg11[%c5_i32_15] : memref<16x!tpu.dma_semaphore, #tpu.memory_space<semaphore_mem>> -> memref<1x!tpu.dma_semaphore, #tpu.memory_space<semaphore_mem>>
    %41 = tpu.memref_squeeze %40 : memref<1x!tpu.dma_semaphore, #tpu.memory_space<semaphore_mem>> -> memref<!tpu.dma_semaphore, #tpu.memory_space<semaphore_mem>>
    tpu.enqueue_dma source(%37 : memref<32xf32, #tpu.memory_space<any>>) target(%39 : memref<32xf32, #tpu.memory_space<vmem>>) target_semaphore(%41 : memref<!tpu.dma_semaphore, #tpu.memory_space<semaphore_mem>>)
    %c6 = arith.constant 6 : index
    %42 = memref.load %arg0[%c6] : memref<16xi32, #tpu.memory_space<smem>>
    %c6_i32 = arith.constant 6 : i32
    %c6_i32_18 = arith.constant 6 : i32
    %c0_i32_19 = arith.constant 0 : i32
    %43 = tpu.memref_slice %arg2[%42, %c0_i32_19] : memref<100x32xf32, #tpu.memory_space<any>> -> memref<1x32xf32, #tpu.memory_space<any>>
    %44 = tpu.memref_squeeze %43 : memref<1x32xf32, #tpu.memory_space<any>> -> memref<32xf32, #tpu.memory_space<any>>
    %c0_i32_20 = arith.constant 0 : i32
    %45 = tpu.memref_slice %arg10[%c6_i32, %c0_i32_20] : memref<16x32xf32, #tpu.memory_space<vmem>> -> memref<1x32xf32, #tpu.memory_space<vmem>>
    %46 = tpu.memref_squeeze %45 : memref<1x32xf32, #tpu.memory_space<vmem>> -> memref<32xf32, #tpu.memory_space<vmem>>
    %47 = tpu.memref_slice %arg11[%c6_i32_18] : memref<16x!tpu.dma_semaphore, #tpu.memory_space<semaphore_mem>> -> memref<1x!tpu.dma_semaphore, #tpu.memory_space<semaphore_mem>>
    %48 = tpu.memref_squeeze %47 : memref<1x!tpu.dma_semaphore, #tpu.memory_space<semaphore_mem>> -> memref<!tpu.dma_semaphore, #tpu.memory_space<semaphore_mem>>
    tpu.enqueue_dma source(%44 : memref<32xf32, #tpu.memory_space<any>>) target(%46 : memref<32xf32, #tpu.memory_space<vmem>>) target_semaphore(%48 : memref<!tpu.dma_semaphore, #tpu.memory_space<semaphore_mem>>)
    %c7 = arith.constant 7 : index
    %49 = memref.load %arg0[%c7] : memref<16xi32, #tpu.memory_space<smem>>
    %c7_i32 = arith.constant 7 : i32
    %c7_i32_21 = arith.constant 7 : i32
    %c0_i32_22 = arith.constant 0 : i32
    %50 = tpu.memref_slice %arg2[%49, %c0_i32_22] : memref<100x32xf32, #tpu.memory_space<any>> -> memref<1x32xf32, #tpu.memory_space<any>>
    %51 = tpu.memref_squeeze %50 : memref<1x32xf32, #tpu.memory_space<any>> -> memref<32xf32, #tpu.memory_space<any>>
    %c0_i32_23 = arith.constant 0 : i32
    %52 = tpu.memref_slice %arg10[%c7_i32, %c0_i32_23] : memref<16x32xf32, #tpu.memory_space<vmem>> -> memref<1x32xf32, #tpu.memory_space<vmem>>
    %53 = tpu.memref_squeeze %52 : memref<1x32xf32, #tpu.memory_space<vmem>> -> memref<32xf32, #tpu.memory_space<vmem>>
    %54 = tpu.memref_slice %arg11[%c7_i32_21] : memref<16x!tpu.dma_semaphore, #tpu.memory_space<semaphore_mem>> -> memref<1x!tpu.dma_semaphore, #tpu.memory_space<semaphore_mem>>
    %55 = tpu.memref_squeeze %54 : memref<1x!tpu.dma_semaphore, #tpu.memory_space<semaphore_mem>> -> memref<!tpu.dma_semaphore, #tpu.memory_space<semaphore_mem>>
    tpu.enqueue_dma source(%51 : memref<32xf32, #tpu.memory_space<any>>) target(%53 : memref<32xf32, #tpu.memory_space<vmem>>) target_semaphore(%55 : memref<!tpu.dma_semaphore, #tpu.memory_space<semaphore_mem>>)
    %c8 = arith.constant 8 : index
    %56 = memref.load %arg0[%c8] : memref<16xi32, #tpu.memory_space<smem>>
    %c8_i32 = arith.constant 8 : i32
    %c8_i32_24 = arith.constant 8 : i32
    %c0_i32_25 = arith.constant 0 : i32
    %57 = tpu.memref_slice %arg2[%56, %c0_i32_25] : memref<100x32xf32, #tpu.memory_space<any>> -> memref<1x32xf32, #tpu.memory_space<any>>
    %58 = tpu.memref_squeeze %57 : memref<1x32xf32, #tpu.memory_space<any>> -> memref<32xf32, #tpu.memory_space<any>>
    %c0_i32_26 = arith.constant 0 : i32
    %59 = tpu.memref_slice %arg10[%c8_i32, %c0_i32_26] : memref<16x32xf32, #tpu.memory_space<vmem>> -> memref<1x32xf32, #tpu.memory_space<vmem>>
    %60 = tpu.memref_squeeze %59 : memref<1x32xf32, #tpu.memory_space<vmem>> -> memref<32xf32, #tpu.memory_space<vmem>>
    %61 = tpu.memref_slice %arg11[%c8_i32_24] : memref<16x!tpu.dma_semaphore, #tpu.memory_space<semaphore_mem>> -> memref<1x!tpu.dma_semaphore, #tpu.memory_space<semaphore_mem>>
    %62 = tpu.memref_squeeze %61 : memref<1x!tpu.dma_semaphore, #tpu.memory_space<semaphore_mem>> -> memref<!tpu.dma_semaphore, #tpu.memory_space<semaphore_mem>>
    tpu.enqueue_dma source(%58 : memref<32xf32, #tpu.memory_space<any>>) target(%60 : memref<32xf32, #tpu.memory_space<vmem>>) target_semaphore(%62 : memref<!tpu.dma_semaphore, #tpu.memory_space<semaphore_mem>>)
    %c9 = arith.constant 9 : index
    %63 = memref.load %arg0[%c9] : memref<16xi32, #tpu.memory_space<smem>>
    %c9_i32 = arith.constant 9 : i32
    %c9_i32_27 = arith.constant 9 : i32
    %c0_i32_28 = arith.constant 0 : i32
    %64 = tpu.memref_slice %arg2[%63, %c0_i32_28] : memref<100x32xf32, #tpu.memory_space<any>> -> memref<1x32xf32, #tpu.memory_space<any>>
    %65 = tpu.memref_squeeze %64 : memref<1x32xf32, #tpu.memory_space<any>> -> memref<32xf32, #tpu.memory_space<any>>
    %c0_i32_29 = arith.constant 0 : i32
    %66 = tpu.memref_slice %arg10[%c9_i32, %c0_i32_29] : memref<16x32xf32, #tpu.memory_space<vmem>> -> memref<1x32xf32, #tpu.memory_space<vmem>>
    %67 = tpu.memref_squeeze %66 : memref<1x32xf32, #tpu.memory_space<vmem>> -> memref<32xf32, #tpu.memory_space<vmem>>
    %68 = tpu.memref_slice %arg11[%c9_i32_27] : memref<16x!tpu.dma_semaphore, #tpu.memory_space<semaphore_mem>> -> memref<1x!tpu.dma_semaphore, #tpu.memory_space<semaphore_mem>>
    %69 = tpu.memref_squeeze %68 : memref<1x!tpu.dma_semaphore, #tpu.memory_space<semaphore_mem>> -> memref<!tpu.dma_semaphore, #tpu.memory_space<semaphore_mem>>
    tpu.enqueue_dma source(%65 : memref<32xf32, #tpu.memory_space<any>>) target(%67 : memref<32xf32, #tpu.memory_space<vmem>>) target_semaphore(%69 : memref<!tpu.dma_semaphore, #tpu.memory_space<semaphore_mem>>)
    %c10 = arith.constant 10 : index
    %70 = memref.load %arg0[%c10] : memref<16xi32, #tpu.memory_space<smem>>
    %c10_i32 = arith.constant 10 : i32
    %c10_i32_30 = arith.constant 10 : i32
    %c0_i32_31 = arith.constant 0 : i32
    %71 = tpu.memref_slice %arg2[%70, %c0_i32_31] : memref<100x32xf32, #tpu.memory_space<any>> -> memref<1x32xf32, #tpu.memory_space<any>>
    %72 = tpu.memref_squeeze %71 : memref<1x32xf32, #tpu.memory_space<any>> -> memref<32xf32, #tpu.memory_space<any>>
    %c0_i32_32 = arith.constant 0 : i32
    %73 = tpu.memref_slice %arg10[%c10_i32, %c0_i32_32] : memref<16x32xf32, #tpu.memory_space<vmem>> -> memref<1x32xf32, #tpu.memory_space<vmem>>
    %74 = tpu.memref_squeeze %73 : memref<1x32xf32, #tpu.memory_space<vmem>> -> memref<32xf32, #tpu.memory_space<vmem>>
    %75 = tpu.memref_slice %arg11[%c10_i32_30] : memref<16x!tpu.dma_semaphore, #tpu.memory_space<semaphore_mem>> -> memref<1x!tpu.dma_semaphore, #tpu.memory_space<semaphore_mem>>
    %76 = tpu.memref_squeeze %75 : memref<1x!tpu.dma_semaphore, #tpu.memory_space<semaphore_mem>> -> memref<!tpu.dma_semaphore, #tpu.memory_space<semaphore_mem>>
    tpu.enqueue_dma source(%72 : memref<32xf32, #tpu.memory_space<any>>) target(%74 : memref<32xf32, #tpu.memory_space<vmem>>) target_semaphore(%76 : memref<!tpu.dma_semaphore, #tpu.memory_space<semaphore_mem>>)
    %c11 = arith.constant 11 : index
    %77 = memref.load %arg0[%c11] : memref<16xi32, #tpu.memory_space<smem>>
    %c11_i32 = arith.constant 11 : i32
    %c11_i32_33 = arith.constant 11 : i32
    %c0_i32_34 = arith.constant 0 : i32
    %78 = tpu.memref_slice %arg2[%77, %c0_i32_34] : memref<100x32xf32, #tpu.memory_space<any>> -> memref<1x32xf32, #tpu.memory_space<any>>
    %79 = tpu.memref_squeeze %78 : memref<1x32xf32, #tpu.memory_space<any>> -> memref<32xf32, #tpu.memory_space<any>>
    %c0_i32_35 = arith.constant 0 : i32
    %80 = tpu.memref_slice %arg10[%c11_i32, %c0_i32_35] : memref<16x32xf32, #tpu.memory_space<vmem>> -> memref<1x32xf32, #tpu.memory_space<vmem>>
    %81 = tpu.memref_squeeze %80 : memref<1x32xf32, #tpu.memory_space<vmem>> -> memref<32xf32, #tpu.memory_space<vmem>>
    %82 = tpu.memref_slice %arg11[%c11_i32_33] : memref<16x!tpu.dma_semaphore, #tpu.memory_space<semaphore_mem>> -> memref<1x!tpu.dma_semaphore, #tpu.memory_space<semaphore_mem>>
    %83 = tpu.memref_squeeze %82 : memref<1x!tpu.dma_semaphore, #tpu.memory_space<semaphore_mem>> -> memref<!tpu.dma_semaphore, #tpu.memory_space<semaphore_mem>>
    tpu.enqueue_dma source(%79 : memref<32xf32, #tpu.memory_space<any>>) target(%81 : memref<32xf32, #tpu.memory_space<vmem>>) target_semaphore(%83 : memref<!tpu.dma_semaphore, #tpu.memory_space<semaphore_mem>>)
    %c12 = arith.constant 12 : index
    %84 = memref.load %arg0[%c12] : memref<16xi32, #tpu.memory_space<smem>>
    %c12_i32 = arith.constant 12 : i32
    %c12_i32_36 = arith.constant 12 : i32
    %c0_i32_37 = arith.constant 0 : i32
    %85 = tpu.memref_slice %arg2[%84, %c0_i32_37] : memref<100x32xf32, #tpu.memory_space<any>> -> memref<1x32xf32, #tpu.memory_space<any>>
    %86 = tpu.memref_squeeze %85 : memref<1x32xf32, #tpu.memory_space<any>> -> memref<32xf32, #tpu.memory_space<any>>
    %c0_i32_38 = arith.constant 0 : i32
    %87 = tpu.memref_slice %arg10[%c12_i32, %c0_i32_38] : memref<16x32xf32, #tpu.memory_space<vmem>> -> memref<1x32xf32, #tpu.memory_space<vmem>>
    %88 = tpu.memref_squeeze %87 : memref<1x32xf32, #tpu.memory_space<vmem>> -> memref<32xf32, #tpu.memory_space<vmem>>
    %89 = tpu.memref_slice %arg11[%c12_i32_36] : memref<16x!tpu.dma_semaphore, #tpu.memory_space<semaphore_mem>> -> memref<1x!tpu.dma_semaphore, #tpu.memory_space<semaphore_mem>>
    %90 = tpu.memref_squeeze %89 : memref<1x!tpu.dma_semaphore, #tpu.memory_space<semaphore_mem>> -> memref<!tpu.dma_semaphore, #tpu.memory_space<semaphore_mem>>
    tpu.enqueue_dma source(%86 : memref<32xf32, #tpu.memory_space<any>>) target(%88 : memref<32xf32, #tpu.memory_space<vmem>>) target_semaphore(%90 : memref<!tpu.dma_semaphore, #tpu.memory_space<semaphore_mem>>)
    %c13 = arith.constant 13 : index
    %91 = memref.load %arg0[%c13] : memref<16xi32, #tpu.memory_space<smem>>
    %c13_i32 = arith.constant 13 : i32
    %c13_i32_39 = arith.constant 13 : i32
    %c0_i32_40 = arith.constant 0 : i32
    %92 = tpu.memref_slice %arg2[%91, %c0_i32_40] : memref<100x32xf32, #tpu.memory_space<any>> -> memref<1x32xf32, #tpu.memory_space<any>>
    %93 = tpu.memref_squeeze %92 : memref<1x32xf32, #tpu.memory_space<any>> -> memref<32xf32, #tpu.memory_space<any>>
    %c0_i32_41 = arith.constant 0 : i32
    %94 = tpu.memref_slice %arg10[%c13_i32, %c0_i32_41] : memref<16x32xf32, #tpu.memory_space<vmem>> -> memref<1x32xf32, #tpu.memory_space<vmem>>
    %95 = tpu.memref_squeeze %94 : memref<1x32xf32, #tpu.memory_space<vmem>> -> memref<32xf32, #tpu.memory_space<vmem>>
    %96 = tpu.memref_slice %arg11[%c13_i32_39] : memref<16x!tpu.dma_semaphore, #tpu.memory_space<semaphore_mem>> -> memref<1x!tpu.dma_semaphore, #tpu.memory_space<semaphore_mem>>
    %97 = tpu.memref_squeeze %96 : memref<1x!tpu.dma_semaphore, #tpu.memory_space<semaphore_mem>> -> memref<!tpu.dma_semaphore, #tpu.memory_space<semaphore_mem>>
    tpu.enqueue_dma source(%93 : memref<32xf32, #tpu.memory_space<any>>) target(%95 : memref<32xf32, #tpu.memory_space<vmem>>) target_semaphore(%97 : memref<!tpu.dma_semaphore, #tpu.memory_space<semaphore_mem>>)
    %c14 = arith.constant 14 : index
    %98 = memref.load %arg0[%c14] : memref<16xi32, #tpu.memory_space<smem>>
    %c14_i32 = arith.constant 14 : i32
    %c14_i32_42 = arith.constant 14 : i32
    %c0_i32_43 = arith.constant 0 : i32
    %99 = tpu.memref_slice %arg2[%98, %c0_i32_43] : memref<100x32xf32, #tpu.memory_space<any>> -> memref<1x32xf32, #tpu.memory_space<any>>
    %100 = tpu.memref_squeeze %99 : memref<1x32xf32, #tpu.memory_space<any>> -> memref<32xf32, #tpu.memory_space<any>>
    %c0_i32_44 = arith.constant 0 : i32
    %101 = tpu.memref_slice %arg10[%c14_i32, %c0_i32_44] : memref<16x32xf32, #tpu.memory_space<vmem>> -> memref<1x32xf32, #tpu.memory_space<vmem>>
    %102 = tpu.memref_squeeze %101 : memref<1x32xf32, #tpu.memory_space<vmem>> -> memref<32xf32, #tpu.memory_space<vmem>>
    %103 = tpu.memref_slice %arg11[%c14_i32_42] : memref<16x!tpu.dma_semaphore, #tpu.memory_space<semaphore_mem>> -> memref<1x!tpu.dma_semaphore, #tpu.memory_space<semaphore_mem>>
    %104 = tpu.memref_squeeze %103 : memref<1x!tpu.dma_semaphore, #tpu.memory_space<semaphore_mem>> -> memref<!tpu.dma_semaphore, #tpu.memory_space<semaphore_mem>>
    tpu.enqueue_dma source(%100 : memref<32xf32, #tpu.memory_space<any>>) target(%102 : memref<32xf32, #tpu.memory_space<vmem>>) target_semaphore(%104 : memref<!tpu.dma_semaphore, #tpu.memory_space<semaphore_mem>>)
    %c15 = arith.constant 15 : index
    %105 = memref.load %arg0[%c15] : memref<16xi32, #tpu.memory_space<smem>>
    %c15_i32 = arith.constant 15 : i32
    %c15_i32_45 = arith.constant 15 : i32
    %c0_i32_46 = arith.constant 0 : i32
    %106 = tpu.memref_slice %arg2[%105, %c0_i32_46] : memref<100x32xf32, #tpu.memory_space<any>> -> memref<1x32xf32, #tpu.memory_space<any>>
    %107 = tpu.memref_squeeze %106 : memref<1x32xf32, #tpu.memory_space<any>> -> memref<32xf32, #tpu.memory_space<any>>
    %c0_i32_47 = arith.constant 0 : i32
    %108 = tpu.memref_slice %arg10[%c15_i32, %c0_i32_47] : memref<16x32xf32, #tpu.memory_space<vmem>> -> memref<1x32xf32, #tpu.memory_space<vmem>>
    %109 = tpu.memref_squeeze %108 : memref<1x32xf32, #tpu.memory_space<vmem>> -> memref<32xf32, #tpu.memory_space<vmem>>
    %110 = tpu.memref_slice %arg11[%c15_i32_45] : memref<16x!tpu.dma_semaphore, #tpu.memory_space<semaphore_mem>> -> memref<1x!tpu.dma_semaphore, #tpu.memory_space<semaphore_mem>>
    %111 = tpu.memref_squeeze %110 : memref<1x!tpu.dma_semaphore, #tpu.memory_space<semaphore_mem>> -> memref<!tpu.dma_semaphore, #tpu.memory_space<semaphore_mem>>
    tpu.enqueue_dma source(%107 : memref<32xf32, #tpu.memory_space<any>>) target(%109 : memref<32xf32, #tpu.memory_space<vmem>>) target_semaphore(%111 : memref<!tpu.dma_semaphore, #tpu.memory_space<semaphore_mem>>)
    %c0_i32_48 = arith.constant 0 : i32
    %c0_i32_49 = arith.constant 0 : i32
    %c0_i32_50 = arith.constant 0 : i32
    %112 = tpu.memref_slice %arg2[%0, %c0_i32_50] : memref<100x32xf32, #tpu.memory_space<any>> -> memref<1x32xf32, #tpu.memory_space<any>>
    %113 = tpu.memref_squeeze %112 : memref<1x32xf32, #tpu.memory_space<any>> -> memref<32xf32, #tpu.memory_space<any>>
    %c0_i32_51 = arith.constant 0 : i32
    %114 = tpu.memref_slice %arg10[%c0_i32_48, %c0_i32_51] : memref<16x32xf32, #tpu.memory_space<vmem>> -> memref<1x32xf32, #tpu.memory_space<vmem>>
    %115 = tpu.memref_squeeze %114 : memref<1x32xf32, #tpu.memory_space<vmem>> -> memref<32xf32, #tpu.memory_space<vmem>>
    %116 = tpu.memref_slice %arg11[%c0_i32_49] : memref<16x!tpu.dma_semaphore, #tpu.memory_space<semaphore_mem>> -> memref<1x!tpu.dma_semaphore, #tpu.memory_space<semaphore_mem>>
    %117 = tpu.memref_squeeze %116 : memref<1x!tpu.dma_semaphore, #tpu.memory_space<semaphore_mem>> -> memref<!tpu.dma_semaphore, #tpu.memory_space<semaphore_mem>>
    tpu.wait_dma2 semaphore(%117 : memref<!tpu.dma_semaphore, #tpu.memory_space<semaphore_mem>>) src(%113 : memref<32xf32, #tpu.memory_space<any>>) dst(%115 : memref<32xf32, #tpu.memory_space<vmem>>)
    %c1_i32_52 = arith.constant 1 : i32
    %c1_i32_53 = arith.constant 1 : i32
    %c0_i32_54 = arith.constant 0 : i32
    %118 = tpu.memref_slice %arg2[%7, %c0_i32_54] : memref<100x32xf32, #tpu.memory_space<any>> -> memref<1x32xf32, #tpu.memory_space<any>>
    %119 = tpu.memref_squeeze %118 : memref<1x32xf32, #tpu.memory_space<any>> -> memref<32xf32, #tpu.memory_space<any>>
    %c0_i32_55 = arith.constant 0 : i32
    %120 = tpu.memref_slice %arg10[%c1_i32_52, %c0_i32_55] : memref<16x32xf32, #tpu.memory_space<vmem>> -> memref<1x32xf32, #tpu.memory_space<vmem>>
    %121 = tpu.memref_squeeze %120 : memref<1x32xf32, #tpu.memory_space<vmem>> -> memref<32xf32, #tpu.memory_space<vmem>>
    %122 = tpu.memref_slice %arg11[%c1_i32_53] : memref<16x!tpu.dma_semaphore, #tpu.memory_space<semaphore_mem>> -> memref<1x!tpu.dma_semaphore, #tpu.memory_space<semaphore_mem>>
    %123 = tpu.memref_squeeze %122 : memref<1x!tpu.dma_semaphore, #tpu.memory_space<semaphore_mem>> -> memref<!tpu.dma_semaphore, #tpu.memory_space<semaphore_mem>>
    tpu.wait_dma2 semaphore(%123 : memref<!tpu.dma_semaphore, #tpu.memory_space<semaphore_mem>>) src(%119 : memref<32xf32, #tpu.memory_space<any>>) dst(%121 : memref<32xf32, #tpu.memory_space<vmem>>)
    %c2_i32_56 = arith.constant 2 : i32
    %c2_i32_57 = arith.constant 2 : i32
    %c0_i32_58 = arith.constant 0 : i32
    %124 = tpu.memref_slice %arg2[%14, %c0_i32_58] : memref<100x32xf32, #tpu.memory_space<any>> -> memref<1x32xf32, #tpu.memory_space<any>>
    %125 = tpu.memref_squeeze %124 : memref<1x32xf32, #tpu.memory_space<any>> -> memref<32xf32, #tpu.memory_space<any>>
    %c0_i32_59 = arith.constant 0 : i32
    %126 = tpu.memref_slice %arg10[%c2_i32_56, %c0_i32_59] : memref<16x32xf32, #tpu.memory_space<vmem>> -> memref<1x32xf32, #tpu.memory_space<vmem>>
    %127 = tpu.memref_squeeze %126 : memref<1x32xf32, #tpu.memory_space<vmem>> -> memref<32xf32, #tpu.memory_space<vmem>>
    %128 = tpu.memref_slice %arg11[%c2_i32_57] : memref<16x!tpu.dma_semaphore, #tpu.memory_space<semaphore_mem>> -> memref<1x!tpu.dma_semaphore, #tpu.memory_space<semaphore_mem>>
    %129 = tpu.memref_squeeze %128 : memref<1x!tpu.dma_semaphore, #tpu.memory_space<semaphore_mem>> -> memref<!tpu.dma_semaphore, #tpu.memory_space<semaphore_mem>>
    tpu.wait_dma2 semaphore(%129 : memref<!tpu.dma_semaphore, #tpu.memory_space<semaphore_mem>>) src(%125 : memref<32xf32, #tpu.memory_space<any>>) dst(%127 : memref<32xf32, #tpu.memory_space<vmem>>)
    %c3_i32_60 = arith.constant 3 : i32
    %c3_i32_61 = arith.constant 3 : i32
    %c0_i32_62 = arith.constant 0 : i32
    %130 = tpu.memref_slice %arg2[%21, %c0_i32_62] : memref<100x32xf32, #tpu.memory_space<any>> -> memref<1x32xf32, #tpu.memory_space<any>>
    %131 = tpu.memref_squeeze %130 : memref<1x32xf32, #tpu.memory_space<any>> -> memref<32xf32, #tpu.memory_space<any>>
    %c0_i32_63 = arith.constant 0 : i32
    %132 = tpu.memref_slice %arg10[%c3_i32_60, %c0_i32_63] : memref<16x32xf32, #tpu.memory_space<vmem>> -> memref<1x32xf32, #tpu.memory_space<vmem>>
    %133 = tpu.memref_squeeze %132 : memref<1x32xf32, #tpu.memory_space<vmem>> -> memref<32xf32, #tpu.memory_space<vmem>>
    %134 = tpu.memref_slice %arg11[%c3_i32_61] : memref<16x!tpu.dma_semaphore, #tpu.memory_space<semaphore_mem>> -> memref<1x!tpu.dma_semaphore, #tpu.memory_space<semaphore_mem>>
    %135 = tpu.memref_squeeze %134 : memref<1x!tpu.dma_semaphore, #tpu.memory_space<semaphore_mem>> -> memref<!tpu.dma_semaphore, #tpu.memory_space<semaphore_mem>>
    tpu.wait_dma2 semaphore(%135 : memref<!tpu.dma_semaphore, #tpu.memory_space<semaphore_mem>>) src(%131 : memref<32xf32, #tpu.memory_space<any>>) dst(%133 : memref<32xf32, #tpu.memory_space<vmem>>)
    %c4_i32_64 = arith.constant 4 : i32
    %c4_i32_65 = arith.constant 4 : i32
    %c0_i32_66 = arith.constant 0 : i32
    %136 = tpu.memref_slice %arg2[%28, %c0_i32_66] : memref<100x32xf32, #tpu.memory_space<any>> -> memref<1x32xf32, #tpu.memory_space<any>>
    %137 = tpu.memref_squeeze %136 : memref<1x32xf32, #tpu.memory_space<any>> -> memref<32xf32, #tpu.memory_space<any>>
    %c0_i32_67 = arith.constant 0 : i32
    %138 = tpu.memref_slice %arg10[%c4_i32_64, %c0_i32_67] : memref<16x32xf32, #tpu.memory_space<vmem>> -> memref<1x32xf32, #tpu.memory_space<vmem>>
    %139 = tpu.memref_squeeze %138 : memref<1x32xf32, #tpu.memory_space<vmem>> -> memref<32xf32, #tpu.memory_space<vmem>>
    %140 = tpu.memref_slice %arg11[%c4_i32_65] : memref<16x!tpu.dma_semaphore, #tpu.memory_space<semaphore_mem>> -> memref<1x!tpu.dma_semaphore, #tpu.memory_space<semaphore_mem>>
    %141 = tpu.memref_squeeze %140 : memref<1x!tpu.dma_semaphore, #tpu.memory_space<semaphore_mem>> -> memref<!tpu.dma_semaphore, #tpu.memory_space<semaphore_mem>>
    tpu.wait_dma2 semaphore(%141 : memref<!tpu.dma_semaphore, #tpu.memory_space<semaphore_mem>>) src(%137 : memref<32xf32, #tpu.memory_space<any>>) dst(%139 : memref<32xf32, #tpu.memory_space<vmem>>)
    %c5_i32_68 = arith.constant 5 : i32
    %c5_i32_69 = arith.constant 5 : i32
    %c0_i32_70 = arith.constant 0 : i32
    %142 = tpu.memref_slice %arg2[%35, %c0_i32_70] : memref<100x32xf32, #tpu.memory_space<any>> -> memref<1x32xf32, #tpu.memory_space<any>>
    %143 = tpu.memref_squeeze %142 : memref<1x32xf32, #tpu.memory_space<any>> -> memref<32xf32, #tpu.memory_space<any>>
    %c0_i32_71 = arith.constant 0 : i32
    %144 = tpu.memref_slice %arg10[%c5_i32_68, %c0_i32_71] : memref<16x32xf32, #tpu.memory_space<vmem>> -> memref<1x32xf32, #tpu.memory_space<vmem>>
    %145 = tpu.memref_squeeze %144 : memref<1x32xf32, #tpu.memory_space<vmem>> -> memref<32xf32, #tpu.memory_space<vmem>>
    %146 = tpu.memref_slice %arg11[%c5_i32_69] : memref<16x!tpu.dma_semaphore, #tpu.memory_space<semaphore_mem>> -> memref<1x!tpu.dma_semaphore, #tpu.memory_space<semaphore_mem>>
    %147 = tpu.memref_squeeze %146 : memref<1x!tpu.dma_semaphore, #tpu.memory_space<semaphore_mem>> -> memref<!tpu.dma_semaphore, #tpu.memory_space<semaphore_mem>>
    tpu.wait_dma2 semaphore(%147 : memref<!tpu.dma_semaphore, #tpu.memory_space<semaphore_mem>>) src(%143 : memref<32xf32, #tpu.memory_space<any>>) dst(%145 : memref<32xf32, #tpu.memory_space<vmem>>)
    %c6_i32_72 = arith.constant 6 : i32
    %c6_i32_73 = arith.constant 6 : i32
    %c0_i32_74 = arith.constant 0 : i32
    %148 = tpu.memref_slice %arg2[%42, %c0_i32_74] : memref<100x32xf32, #tpu.memory_space<any>> -> memref<1x32xf32, #tpu.memory_space<any>>
    %149 = tpu.memref_squeeze %148 : memref<1x32xf32, #tpu.memory_space<any>> -> memref<32xf32, #tpu.memory_space<any>>
    %c0_i32_75 = arith.constant 0 : i32
    %150 = tpu.memref_slice %arg10[%c6_i32_72, %c0_i32_75] : memref<16x32xf32, #tpu.memory_space<vmem>> -> memref<1x32xf32, #tpu.memory_space<vmem>>
    %151 = tpu.memref_squeeze %150 : memref<1x32xf32, #tpu.memory_space<vmem>> -> memref<32xf32, #tpu.memory_space<vmem>>
    %152 = tpu.memref_slice %arg11[%c6_i32_73] : memref<16x!tpu.dma_semaphore, #tpu.memory_space<semaphore_mem>> -> memref<1x!tpu.dma_semaphore, #tpu.memory_space<semaphore_mem>>
    %153 = tpu.memref_squeeze %152 : memref<1x!tpu.dma_semaphore, #tpu.memory_space<semaphore_mem>> -> memref<!tpu.dma_semaphore, #tpu.memory_space<semaphore_mem>>
    tpu.wait_dma2 semaphore(%153 : memref<!tpu.dma_semaphore, #tpu.memory_space<semaphore_mem>>) src(%149 : memref<32xf32, #tpu.memory_space<any>>) dst(%151 : memref<32xf32, #tpu.memory_space<vmem>>)
    %c7_i32_76 = arith.constant 7 : i32
    %c7_i32_77 = arith.constant 7 : i32
    %c0_i32_78 = arith.constant 0 : i32
    %154 = tpu.memref_slice %arg2[%49, %c0_i32_78] : memref<100x32xf32, #tpu.memory_space<any>> -> memref<1x32xf32, #tpu.memory_space<any>>
    %155 = tpu.memref_squeeze %154 : memref<1x32xf32, #tpu.memory_space<any>> -> memref<32xf32, #tpu.memory_space<any>>
    %c0_i32_79 = arith.constant 0 : i32
    %156 = tpu.memref_slice %arg10[%c7_i32_76, %c0_i32_79] : memref<16x32xf32, #tpu.memory_space<vmem>> -> memref<1x32xf32, #tpu.memory_space<vmem>>
    %157 = tpu.memref_squeeze %156 : memref<1x32xf32, #tpu.memory_space<vmem>> -> memref<32xf32, #tpu.memory_space<vmem>>
    %158 = tpu.memref_slice %arg11[%c7_i32_77] : memref<16x!tpu.dma_semaphore, #tpu.memory_space<semaphore_mem>> -> memref<1x!tpu.dma_semaphore, #tpu.memory_space<semaphore_mem>>
    %159 = tpu.memref_squeeze %158 : memref<1x!tpu.dma_semaphore, #tpu.memory_space<semaphore_mem>> -> memref<!tpu.dma_semaphore, #tpu.memory_space<semaphore_mem>>
    tpu.wait_dma2 semaphore(%159 : memref<!tpu.dma_semaphore, #tpu.memory_space<semaphore_mem>>) src(%155 : memref<32xf32, #tpu.memory_space<any>>) dst(%157 : memref<32xf32, #tpu.memory_space<vmem>>)
    %c8_i32_80 = arith.constant 8 : i32
    %c8_i32_81 = arith.constant 8 : i32
    %c0_i32_82 = arith.constant 0 : i32
    %160 = tpu.memref_slice %arg2[%56, %c0_i32_82] : memref<100x32xf32, #tpu.memory_space<any>> -> memref<1x32xf32, #tpu.memory_space<any>>
    %161 = tpu.memref_squeeze %160 : memref<1x32xf32, #tpu.memory_space<any>> -> memref<32xf32, #tpu.memory_space<any>>
    %c0_i32_83 = arith.constant 0 : i32
    %162 = tpu.memref_slice %arg10[%c8_i32_80, %c0_i32_83] : memref<16x32xf32, #tpu.memory_space<vmem>> -> memref<1x32xf32, #tpu.memory_space<vmem>>
    %163 = tpu.memref_squeeze %162 : memref<1x32xf32, #tpu.memory_space<vmem>> -> memref<32xf32, #tpu.memory_space<vmem>>
    %164 = tpu.memref_slice %arg11[%c8_i32_81] : memref<16x!tpu.dma_semaphore, #tpu.memory_space<semaphore_mem>> -> memref<1x!tpu.dma_semaphore, #tpu.memory_space<semaphore_mem>>
    %165 = tpu.memref_squeeze %164 : memref<1x!tpu.dma_semaphore, #tpu.memory_space<semaphore_mem>> -> memref<!tpu.dma_semaphore, #tpu.memory_space<semaphore_mem>>
    tpu.wait_dma2 semaphore(%165 : memref<!tpu.dma_semaphore, #tpu.memory_space<semaphore_mem>>) src(%161 : memref<32xf32, #tpu.memory_space<any>>) dst(%163 : memref<32xf32, #tpu.memory_space<vmem>>)
    %c9_i32_84 = arith.constant 9 : i32
    %c9_i32_85 = arith.constant 9 : i32
    %c0_i32_86 = arith.constant 0 : i32
    %166 = tpu.memref_slice %arg2[%63, %c0_i32_86] : memref<100x32xf32, #tpu.memory_space<any>> -> memref<1x32xf32, #tpu.memory_space<any>>
    %167 = tpu.memref_squeeze %166 : memref<1x32xf32, #tpu.memory_space<any>> -> memref<32xf32, #tpu.memory_space<any>>
    %c0_i32_87 = arith.constant 0 : i32
    %168 = tpu.memref_slice %arg10[%c9_i32_84, %c0_i32_87] : memref<16x32xf32, #tpu.memory_space<vmem>> -> memref<1x32xf32, #tpu.memory_space<vmem>>
    %169 = tpu.memref_squeeze %168 : memref<1x32xf32, #tpu.memory_space<vmem>> -> memref<32xf32, #tpu.memory_space<vmem>>
    %170 = tpu.memref_slice %arg11[%c9_i32_85] : memref<16x!tpu.dma_semaphore, #tpu.memory_space<semaphore_mem>> -> memref<1x!tpu.dma_semaphore, #tpu.memory_space<semaphore_mem>>
    %171 = tpu.memref_squeeze %170 : memref<1x!tpu.dma_semaphore, #tpu.memory_space<semaphore_mem>> -> memref<!tpu.dma_semaphore, #tpu.memory_space<semaphore_mem>>
    tpu.wait_dma2 semaphore(%171 : memref<!tpu.dma_semaphore, #tpu.memory_space<semaphore_mem>>) src(%167 : memref<32xf32, #tpu.memory_space<any>>) dst(%169 : memref<32xf32, #tpu.memory_space<vmem>>)
    %c10_i32_88 = arith.constant 10 : i32
    %c10_i32_89 = arith.constant 10 : i32
    %c0_i32_90 = arith.constant 0 : i32
    %172 = tpu.memref_slice %arg2[%70, %c0_i32_90] : memref<100x32xf32, #tpu.memory_space<any>> -> memref<1x32xf32, #tpu.memory_space<any>>
    %173 = tpu.memref_squeeze %172 : memref<1x32xf32, #tpu.memory_space<any>> -> memref<32xf32, #tpu.memory_space<any>>
    %c0_i32_91 = arith.constant 0 : i32
    %174 = tpu.memref_slice %arg10[%c10_i32_88, %c0_i32_91] : memref<16x32xf32, #tpu.memory_space<vmem>> -> memref<1x32xf32, #tpu.memory_space<vmem>>
    %175 = tpu.memref_squeeze %174 : memref<1x32xf32, #tpu.memory_space<vmem>> -> memref<32xf32, #tpu.memory_space<vmem>>
    %176 = tpu.memref_slice %arg11[%c10_i32_89] : memref<16x!tpu.dma_semaphore, #tpu.memory_space<semaphore_mem>> -> memref<1x!tpu.dma_semaphore, #tpu.memory_space<semaphore_mem>>
    %177 = tpu.memref_squeeze %176 : memref<1x!tpu.dma_semaphore, #tpu.memory_space<semaphore_mem>> -> memref<!tpu.dma_semaphore, #tpu.memory_space<semaphore_mem>>
    tpu.wait_dma2 semaphore(%177 : memref<!tpu.dma_semaphore, #tpu.memory_space<semaphore_mem>>) src(%173 : memref<32xf32, #tpu.memory_space<any>>) dst(%175 : memref<32xf32, #tpu.memory_space<vmem>>)
    %c11_i32_92 = arith.constant 11 : i32
    %c11_i32_93 = arith.constant 11 : i32
    %c0_i32_94 = arith.constant 0 : i32
    %178 = tpu.memref_slice %arg2[%77, %c0_i32_94] : memref<100x32xf32, #tpu.memory_space<any>> -> memref<1x32xf32, #tpu.memory_space<any>>
    %179 = tpu.memref_squeeze %178 : memref<1x32xf32, #tpu.memory_space<any>> -> memref<32xf32, #tpu.memory_space<any>>
    %c0_i32_95 = arith.constant 0 : i32
    %180 = tpu.memref_slice %arg10[%c11_i32_92, %c0_i32_95] : memref<16x32xf32, #tpu.memory_space<vmem>> -> memref<1x32xf32, #tpu.memory_space<vmem>>
    %181 = tpu.memref_squeeze %180 : memref<1x32xf32, #tpu.memory_space<vmem>> -> memref<32xf32, #tpu.memory_space<vmem>>
    %182 = tpu.memref_slice %arg11[%c11_i32_93] : memref<16x!tpu.dma_semaphore, #tpu.memory_space<semaphore_mem>> -> memref<1x!tpu.dma_semaphore, #tpu.memory_space<semaphore_mem>>
    %183 = tpu.memref_squeeze %182 : memref<1x!tpu.dma_semaphore, #tpu.memory_space<semaphore_mem>> -> memref<!tpu.dma_semaphore, #tpu.memory_space<semaphore_mem>>
    tpu.wait_dma2 semaphore(%183 : memref<!tpu.dma_semaphore, #tpu.memory_space<semaphore_mem>>) src(%179 : memref<32xf32, #tpu.memory_space<any>>) dst(%181 : memref<32xf32, #tpu.memory_space<vmem>>)
    %c12_i32_96 = arith.constant 12 : i32
    %c12_i32_97 = arith.constant 12 : i32
    %c0_i32_98 = arith.constant 0 : i32
    %184 = tpu.memref_slice %arg2[%84, %c0_i32_98] : memref<100x32xf32, #tpu.memory_space<any>> -> memref<1x32xf32, #tpu.memory_space<any>>
    %185 = tpu.memref_squeeze %184 : memref<1x32xf32, #tpu.memory_space<any>> -> memref<32xf32, #tpu.memory_space<any>>
    %c0_i32_99 = arith.constant 0 : i32
    %186 = tpu.memref_slice %arg10[%c12_i32_96, %c0_i32_99] : memref<16x32xf32, #tpu.memory_space<vmem>> -> memref<1x32xf32, #tpu.memory_space<vmem>>
    %187 = tpu.memref_squeeze %186 : memref<1x32xf32, #tpu.memory_space<vmem>> -> memref<32xf32, #tpu.memory_space<vmem>>
    %188 = tpu.memref_slice %arg11[%c12_i32_97] : memref<16x!tpu.dma_semaphore, #tpu.memory_space<semaphore_mem>> -> memref<1x!tpu.dma_semaphore, #tpu.memory_space<semaphore_mem>>
    %189 = tpu.memref_squeeze %188 : memref<1x!tpu.dma_semaphore, #tpu.memory_space<semaphore_mem>> -> memref<!tpu.dma_semaphore, #tpu.memory_space<semaphore_mem>>
    tpu.wait_dma2 semaphore(%189 : memref<!tpu.dma_semaphore, #tpu.memory_space<semaphore_mem>>) src(%185 : memref<32xf32, #tpu.memory_space<any>>) dst(%187 : memref<32xf32, #tpu.memory_space<vmem>>)
    %c13_i32_100 = arith.constant 13 : i32
    %c13_i32_101 = arith.constant 13 : i32
    %c0_i32_102 = arith.constant 0 : i32
    %190 = tpu.memref_slice %arg2[%91, %c0_i32_102] : memref<100x32xf32, #tpu.memory_space<any>> -> memref<1x32xf32, #tpu.memory_space<any>>
    %191 = tpu.memref_squeeze %190 : memref<1x32xf32, #tpu.memory_space<any>> -> memref<32xf32, #tpu.memory_space<any>>
    %c0_i32_103 = arith.constant 0 : i32
    %192 = tpu.memref_slice %arg10[%c13_i32_100, %c0_i32_103] : memref<16x32xf32, #tpu.memory_space<vmem>> -> memref<1x32xf32, #tpu.memory_space<vmem>>
    %193 = tpu.memref_squeeze %192 : memref<1x32xf32, #tpu.memory_space<vmem>> -> memref<32xf32, #tpu.memory_space<vmem>>
    %194 = tpu.memref_slice %arg11[%c13_i32_101] : memref<16x!tpu.dma_semaphore, #tpu.memory_space<semaphore_mem>> -> memref<1x!tpu.dma_semaphore, #tpu.memory_space<semaphore_mem>>
    %195 = tpu.memref_squeeze %194 : memref<1x!tpu.dma_semaphore, #tpu.memory_space<semaphore_mem>> -> memref<!tpu.dma_semaphore, #tpu.memory_space<semaphore_mem>>
    tpu.wait_dma2 semaphore(%195 : memref<!tpu.dma_semaphore, #tpu.memory_space<semaphore_mem>>) src(%191 : memref<32xf32, #tpu.memory_space<any>>) dst(%193 : memref<32xf32, #tpu.memory_space<vmem>>)
    %c14_i32_104 = arith.constant 14 : i32
    %c14_i32_105 = arith.constant 14 : i32
    %c0_i32_106 = arith.constant 0 : i32
    %196 = tpu.memref_slice %arg2[%98, %c0_i32_106] : memref<100x32xf32, #tpu.memory_space<any>> -> memref<1x32xf32, #tpu.memory_space<any>>
    %197 = tpu.memref_squeeze %196 : memref<1x32xf32, #tpu.memory_space<any>> -> memref<32xf32, #tpu.memory_space<any>>
    %c0_i32_107 = arith.constant 0 : i32
    %198 = tpu.memref_slice %arg10[%c14_i32_104, %c0_i32_107] : memref<16x32xf32, #tpu.memory_space<vmem>> -> memref<1x32xf32, #tpu.memory_space<vmem>>
    %199 = tpu.memref_squeeze %198 : memref<1x32xf32, #tpu.memory_space<vmem>> -> memref<32xf32, #tpu.memory_space<vmem>>
    %200 = tpu.memref_slice %arg11[%c14_i32_105] : memref<16x!tpu.dma_semaphore, #tpu.memory_space<semaphore_mem>> -> memref<1x!tpu.dma_semaphore, #tpu.memory_space<semaphore_mem>>
    %201 = tpu.memref_squeeze %200 : memref<1x!tpu.dma_semaphore, #tpu.memory_space<semaphore_mem>> -> memref<!tpu.dma_semaphore, #tpu.memory_space<semaphore_mem>>
    tpu.wait_dma2 semaphore(%201 : memref<!tpu.dma_semaphore, #tpu.memory_space<semaphore_mem>>) src(%197 : memref<32xf32, #tpu.memory_space<any>>) dst(%199 : memref<32xf32, #tpu.memory_space<vmem>>)
    %c15_i32_108 = arith.constant 15 : i32
    %c15_i32_109 = arith.constant 15 : i32
    %c0_i32_110 = arith.constant 0 : i32
    %202 = tpu.memref_slice %arg2[%105, %c0_i32_110] : memref<100x32xf32, #tpu.memory_space<any>> -> memref<1x32xf32, #tpu.memory_space<any>>
    %203 = tpu.memref_squeeze %202 : memref<1x32xf32, #tpu.memory_space<any>> -> memref<32xf32, #tpu.memory_space<any>>
    %c0_i32_111 = arith.constant 0 : i32
    %204 = tpu.memref_slice %arg10[%c15_i32_108, %c0_i32_111] : memref<16x32xf32, #tpu.memory_space<vmem>> -> memref<1x32xf32, #tpu.memory_space<vmem>>
    %205 = tpu.memref_squeeze %204 : memref<1x32xf32, #tpu.memory_space<vmem>> -> memref<32xf32, #tpu.memory_space<vmem>>
    %206 = tpu.memref_slice %arg11[%c15_i32_109] : memref<16x!tpu.dma_semaphore, #tpu.memory_space<semaphore_mem>> -> memref<1x!tpu.dma_semaphore, #tpu.memory_space<semaphore_mem>>
    %207 = tpu.memref_squeeze %206 : memref<1x!tpu.dma_semaphore, #tpu.memory_space<semaphore_mem>> -> memref<!tpu.dma_semaphore, #tpu.memory_space<semaphore_mem>>
    tpu.wait_dma2 semaphore(%207 : memref<!tpu.dma_semaphore, #tpu.memory_space<semaphore_mem>>) src(%203 : memref<32xf32, #tpu.memory_space<any>>) dst(%205 : memref<32xf32, #tpu.memory_space<vmem>>)
    %c0_112 = arith.constant 0 : index
    %c0_113 = arith.constant 0 : index
    %208 = vector.load %arg10[%c0_112, %c0_113] : memref<16x32xf32, #tpu.memory_space<vmem>>, vector<16x32xf32>
    %c0_114 = arith.constant 0 : index
    %c0_115 = arith.constant 0 : index
    %209 = vector.load %arg1[%c0_114, %c0_115] : memref<2x1xi32, #tpu.memory_space<vmem>>, vector<2x1xi32>
    %c1_i32_116 = arith.constant 1 : i32
    %210 = vector.broadcast %c1_i32_116 : i32 to vector<2x1xi32>
    %211 = arith.cmpi slt, %209, %210 : vector<2x1xi32>
    %c8_i32_117 = arith.constant 8 : i32
    %212 = vector.broadcast %c8_i32_117 : i32 to vector<2x1xi32>
    %213 = arith.select %211, %212, %209 : vector<2x1xi1>, vector<2x1xi32>
    %c8_i32_118 = arith.constant 8 : i32
    %214 = vector.broadcast %c8_i32_118 : i32 to vector<2x1xi32>
    %215 = arith.minsi %213, %214 : vector<2x1xi32>
    %c0_119 = arith.constant 0 : index
    %c0_120 = arith.constant 0 : index
    %216 = vector.load %arg3[%c0_119, %c0_120] : memref<32x128xf32, #tpu.memory_space<vmem>>, vector<32x128xf32>
    %c0_121 = arith.constant 0 : index
    %c0_122 = arith.constant 0 : index
    %217 = vector.load %arg6[%c0_121, %c0_122] : memref<32x128xf32, #tpu.memory_space<vmem>>, vector<32x128xf32>
    %c0_123 = arith.constant 0 : index
    %c0_124 = arith.constant 0 : index
    %218 = vector.load %arg4[%c0_123, %c0_124] : memref<32x128xf32, #tpu.memory_space<vmem>>, vector<32x128xf32>
    %c0_125 = arith.constant 0 : index
    %c0_126 = arith.constant 0 : index
    %219 = vector.load %arg7[%c0_125, %c0_126] : memref<32x128xf32, #tpu.memory_space<vmem>>, vector<32x128xf32>
    %c0_127 = arith.constant 0 : index
    %c0_128 = arith.constant 0 : index
    %220 = vector.load %arg5[%c0_127, %c0_128] : memref<1x128xf32, #tpu.memory_space<vmem>>, vector<1x128xf32>
    %c0_129 = arith.constant 0 : index
    %c0_130 = arith.constant 0 : index
    %221 = vector.load %arg8[%c0_129, %c0_130] : memref<1x128xf32, #tpu.memory_space<vmem>>, vector<1x128xf32>
    %cst = arith.constant dense<0.000000e+00> : vector<16x128xf32>
    %222 = tpu.matmul %208, %216, %cst {dimension_numbers = #tpu.dot_dimension_numbers<[1], [0], [0], [1], [0, 0, 1, 1], [], []>} : vector<16x32xf32>, vector<32x128xf32>, vector<16x128xf32> -> vector<16x128xf32>
    %223 = vector.broadcast %220 : vector<1x128xf32> to vector<16x128xf32>
    %224 = arith.addf %222, %223 : vector<16x128xf32>
    %225 = tpu.iota {dimensions = array<i32: 1>} : vector<2x128xi32>
    %c64_i32 = arith.constant 64 : i32
    %226 = vector.broadcast %c64_i32 : i32 to vector<2x128xi32>
    %227 = arith.cmpi sge, %225, %226 : vector<2x128xi32>
    %c96_i32 = arith.constant 96 : i32
    %228 = vector.broadcast %c96_i32 : i32 to vector<2x128xi32>
    %229 = arith.cmpi slt, %225, %228 : vector<2x128xi32>
    %230 = arith.andi %227, %229 : vector<2x128xi1>
    %cst_131 = arith.constant 0.000000e+00 : f32
    %231 = vector.broadcast %cst_131 : f32 to vector<2x32xf32>
    %cst_132 = arith.constant 0.000000e+00 : f32
    %232 = vector.broadcast %cst_132 : f32 to vector<2x32xf32>
    %cst_133 = arith.constant 0.000000e+00 : f32
    %233 = vector.broadcast %cst_133 : f32 to vector<2x32xf32>
    %cst_134 = arith.constant 0.000000e+00 : f32
    %234 = vector.broadcast %cst_134 : f32 to vector<2x32xf32>
    %cst_135 = arith.constant 0.000000e+00 : f32
    %235 = vector.broadcast %cst_135 : f32 to vector<2x32xf32>
    %236 = vector.extract_strided_slice %224 {offsets = [0, 0], sizes = [2, 128], strides = [1, 1]} : vector<16x128xf32> to vector<2x128xf32>
    %cst_136 = arith.constant dense<0.000000e+00> : vector<2x128xf32>
    %237 = tpu.matmul %231, %218, %cst_136 {dimension_numbers = #tpu.dot_dimension_numbers<[1], [0], [0], [1], [0, 0, 1, 1], [], []>} : vector<2x32xf32>, vector<32x128xf32>, vector<2x128xf32> -> vector<2x128xf32>
    %238 = arith.addf %236, %237 : vector<2x128xf32>
    %239 = math.tanh %238 : vector<2x128xf32>
    %240 = arith.negf %238 : vector<2x128xf32>
    %241 = math.exp %240 : vector<2x128xf32>
    %cst_137 = arith.constant 1.000000e+00 : f32
    %242 = vector.broadcast %cst_137 : f32 to vector<2x128xf32>
    %243 = arith.addf %242, %241 : vector<2x128xf32>
    %244 = arith.divf %242, %243 : vector<2x128xf32>
    %245 = arith.select %230, %239, %244 : vector<2x128xi1>, vector<2x128xf32>
    %246 = vector.extract_strided_slice %245 {offsets = [0, 0], sizes = [2, 32], strides = [1, 1]} : vector<2x128xf32> to vector<2x32xf32>
    %247 = vector.extract_strided_slice %245 {offsets = [0, 32], sizes = [2, 32], strides = [1, 1]} : vector<2x128xf32> to vector<2x32xf32>
    %248 = vector.extract_strided_slice %245 {offsets = [0, 64], sizes = [2, 32], strides = [1, 1]} : vector<2x128xf32> to vector<2x32xf32>
    %249 = vector.extract_strided_slice %245 {offsets = [0, 96], sizes = [2, 32], strides = [1, 1]} : vector<2x128xf32> to vector<2x32xf32>
    %250 = arith.mulf %247, %233 : vector<2x32xf32>
    %251 = arith.mulf %246, %248 : vector<2x32xf32>
    %252 = arith.addf %250, %251 : vector<2x32xf32>
    %253 = math.tanh %252 : vector<2x32xf32>
    %254 = arith.mulf %249, %253 : vector<2x32xf32>
    %255 = vector.extract_strided_slice %224 {offsets = [2, 0], sizes = [2, 128], strides = [1, 1]} : vector<16x128xf32> to vector<2x128xf32>
    %cst_138 = arith.constant dense<0.000000e+00> : vector<2x128xf32>
    %256 = tpu.matmul %254, %218, %cst_138 {dimension_numbers = #tpu.dot_dimension_numbers<[1], [0], [0], [1], [0, 0, 1, 1], [], []>} : vector<2x32xf32>, vector<32x128xf32>, vector<2x128xf32> -> vector<2x128xf32>
    %257 = arith.addf %255, %256 : vector<2x128xf32>
    %258 = math.tanh %257 : vector<2x128xf32>
    %259 = arith.negf %257 : vector<2x128xf32>
    %260 = math.exp %259 : vector<2x128xf32>
    %cst_139 = arith.constant 1.000000e+00 : f32
    %261 = vector.broadcast %cst_139 : f32 to vector<2x128xf32>
    %262 = arith.addf %261, %260 : vector<2x128xf32>
    %263 = arith.divf %261, %262 : vector<2x128xf32>
    %264 = arith.select %230, %258, %263 : vector<2x128xi1>, vector<2x128xf32>
    %265 = vector.extract_strided_slice %264 {offsets = [0, 0], sizes = [2, 32], strides = [1, 1]} : vector<2x128xf32> to vector<2x32xf32>
    %266 = vector.extract_strided_slice %264 {offsets = [0, 32], sizes = [2, 32], strides = [1, 1]} : vector<2x128xf32> to vector<2x32xf32>
    %267 = vector.extract_strided_slice %264 {offsets = [0, 64], sizes = [2, 32], strides = [1, 1]} : vector<2x128xf32> to vector<2x32xf32>
    %268 = vector.extract_strided_slice %264 {offsets = [0, 96], sizes = [2, 32], strides = [1, 1]} : vector<2x128xf32> to vector<2x32xf32>
    %269 = arith.mulf %266, %252 : vector<2x32xf32>
    %270 = arith.mulf %265, %267 : vector<2x32xf32>
    %271 = arith.addf %269, %270 : vector<2x32xf32>
    %272 = math.tanh %271 : vector<2x32xf32>
    %273 = arith.mulf %268, %272 : vector<2x32xf32>
    %cst_140 = arith.constant dense<0.000000e+00> : vector<2x128xf32>
    %274 = tpu.matmul %254, %217, %cst_140 {dimension_numbers = #tpu.dot_dimension_numbers<[1], [0], [0], [1], [0, 0, 1, 1], [], []>} : vector<2x32xf32>, vector<32x128xf32>, vector<2x128xf32> -> vector<2x128xf32>
    %cst_141 = arith.constant dense<0.000000e+00> : vector<2x128xf32>
    %275 = tpu.matmul %232, %219, %cst_141 {dimension_numbers = #tpu.dot_dimension_numbers<[1], [0], [0], [1], [0, 0, 1, 1], [], []>} : vector<2x32xf32>, vector<32x128xf32>, vector<2x128xf32> -> vector<2x128xf32>
    %276 = arith.addf %274, %275 : vector<2x128xf32>
    %277 = vector.broadcast %221 : vector<1x128xf32> to vector<2x128xf32>
    %278 = arith.addf %276, %277 : vector<2x128xf32>
    %279 = math.tanh %278 : vector<2x128xf32>
    %280 = arith.negf %278 : vector<2x128xf32>
    %281 = math.exp %280 : vector<2x128xf32>
    %cst_142 = arith.constant 1.000000e+00 : f32
    %282 = vector.broadcast %cst_142 : f32 to vector<2x128xf32>
    %283 = arith.addf %282, %281 : vector<2x128xf32>
    %284 = arith.divf %282, %283 : vector<2x128xf32>
    %285 = arith.select %230, %279, %284 : vector<2x128xi1>, vector<2x128xf32>
    %286 = vector.extract_strided_slice %285 {offsets = [0, 0], sizes = [2, 32], strides = [1, 1]} : vector<2x128xf32> to vector<2x32xf32>
    %287 = vector.extract_strided_slice %285 {offsets = [0, 32], sizes = [2, 32], strides = [1, 1]} : vector<2x128xf32> to vector<2x32xf32>
    %288 = vector.extract_strided_slice %285 {offsets = [0, 64], sizes = [2, 32], strides = [1, 1]} : vector<2x128xf32> to vector<2x32xf32>
    %289 = vector.extract_strided_slice %285 {offsets = [0, 96], sizes = [2, 32], strides = [1, 1]} : vector<2x128xf32> to vector<2x32xf32>
    %290 = arith.mulf %287, %234 : vector<2x32xf32>
    %291 = arith.mulf %286, %288 : vector<2x32xf32>
    %292 = arith.addf %290, %291 : vector<2x32xf32>
    %293 = math.tanh %292 : vector<2x32xf32>
    %294 = arith.mulf %289, %293 : vector<2x32xf32>
    %c1_i32_143 = arith.constant 1 : i32
    %295 = vector.broadcast %c1_i32_143 : i32 to vector<2x1xi32>
    %296 = arith.cmpi eq, %215, %295 : vector<2x1xi32>
    %297 = vector.shape_cast %296 : vector<2x1xi1> to vector<2x1xi1>
    %298 = vector.broadcast %297 : vector<2x1xi1> to vector<2x32xi1>
    %299 = arith.select %298, %294, %235 : vector<2x32xi1>, vector<2x32xf32>
    %300 = vector.extract_strided_slice %224 {offsets = [4, 0], sizes = [2, 128], strides = [1, 1]} : vector<16x128xf32> to vector<2x128xf32>
    %cst_144 = arith.constant dense<0.000000e+00> : vector<2x128xf32>
    %301 = tpu.matmul %273, %218, %cst_144 {dimension_numbers = #tpu.dot_dimension_numbers<[1], [0], [0], [1], [0, 0, 1, 1], [], []>} : vector<2x32xf32>, vector<32x128xf32>, vector<2x128xf32> -> vector<2x128xf32>
    %302 = arith.addf %300, %301 : vector<2x128xf32>
    %303 = math.tanh %302 : vector<2x128xf32>
    %304 = arith.negf %302 : vector<2x128xf32>
    %305 = math.exp %304 : vector<2x128xf32>
    %cst_145 = arith.constant 1.000000e+00 : f32
    %306 = vector.broadcast %cst_145 : f32 to vector<2x128xf32>
    %307 = arith.addf %306, %305 : vector<2x128xf32>
    %308 = arith.divf %306, %307 : vector<2x128xf32>
    %309 = arith.select %230, %303, %308 : vector<2x128xi1>, vector<2x128xf32>
    %310 = vector.extract_strided_slice %309 {offsets = [0, 0], sizes = [2, 32], strides = [1, 1]} : vector<2x128xf32> to vector<2x32xf32>
    %311 = vector.extract_strided_slice %309 {offsets = [0, 32], sizes = [2, 32], strides = [1, 1]} : vector<2x128xf32> to vector<2x32xf32>
    %312 = vector.extract_strided_slice %309 {offsets = [0, 64], sizes = [2, 32], strides = [1, 1]} : vector<2x128xf32> to vector<2x32xf32>
    %313 = vector.extract_strided_slice %309 {offsets = [0, 96], sizes = [2, 32], strides = [1, 1]} : vector<2x128xf32> to vector<2x32xf32>
    %314 = arith.mulf %311, %271 : vector<2x32xf32>
    %315 = arith.mulf %310, %312 : vector<2x32xf32>
    %316 = arith.addf %314, %315 : vector<2x32xf32>
    %317 = math.tanh %316 : vector<2x32xf32>
    %318 = arith.mulf %313, %317 : vector<2x32xf32>
    %cst_146 = arith.constant dense<0.000000e+00> : vector<2x128xf32>
    %319 = tpu.matmul %273, %217, %cst_146 {dimension_numbers = #tpu.dot_dimension_numbers<[1], [0], [0], [1], [0, 0, 1, 1], [], []>} : vector<2x32xf32>, vector<32x128xf32>, vector<2x128xf32> -> vector<2x128xf32>
    %cst_147 = arith.constant dense<0.000000e+00> : vector<2x128xf32>
    %320 = tpu.matmul %294, %219, %cst_147 {dimension_numbers = #tpu.dot_dimension_numbers<[1], [0], [0], [1], [0, 0, 1, 1], [], []>} : vector<2x32xf32>, vector<32x128xf32>, vector<2x128xf32> -> vector<2x128xf32>
    %321 = arith.addf %319, %320 : vector<2x128xf32>
    %322 = vector.broadcast %221 : vector<1x128xf32> to vector<2x128xf32>
    %323 = arith.addf %321, %322 : vector<2x128xf32>
    %324 = math.tanh %323 : vector<2x128xf32>
    %325 = arith.negf %323 : vector<2x128xf32>
    %326 = math.exp %325 : vector<2x128xf32>
    %cst_148 = arith.constant 1.000000e+00 : f32
    %327 = vector.broadcast %cst_148 : f32 to vector<2x128xf32>
    %328 = arith.addf %327, %326 : vector<2x128xf32>
    %329 = arith.divf %327, %328 : vector<2x128xf32>
    %330 = arith.select %230, %324, %329 : vector<2x128xi1>, vector<2x128xf32>
    %331 = vector.extract_strided_slice %330 {offsets = [0, 0], sizes = [2, 32], strides = [1, 1]} : vector<2x128xf32> to vector<2x32xf32>
    %332 = vector.extract_strided_slice %330 {offsets = [0, 32], sizes = [2, 32], strides = [1, 1]} : vector<2x128xf32> to vector<2x32xf32>
    %333 = vector.extract_strided_slice %330 {offsets = [0, 64], sizes = [2, 32], strides = [1, 1]} : vector<2x128xf32> to vector<2x32xf32>
    %334 = vector.extract_strided_slice %330 {offsets = [0, 96], sizes = [2, 32], strides = [1, 1]} : vector<2x128xf32> to vector<2x32xf32>
    %335 = arith.mulf %332, %292 : vector<2x32xf32>
    %336 = arith.mulf %331, %333 : vector<2x32xf32>
    %337 = arith.addf %335, %336 : vector<2x32xf32>
    %338 = math.tanh %337 : vector<2x32xf32>
    %339 = arith.mulf %334, %338 : vector<2x32xf32>
    %c2_i32_149 = arith.constant 2 : i32
    %340 = vector.broadcast %c2_i32_149 : i32 to vector<2x1xi32>
    %341 = arith.cmpi eq, %215, %340 : vector<2x1xi32>
    %342 = vector.shape_cast %341 : vector<2x1xi1> to vector<2x1xi1>
    %343 = vector.broadcast %342 : vector<2x1xi1> to vector<2x32xi1>
    %344 = arith.select %343, %339, %299 : vector<2x32xi1>, vector<2x32xf32>
    %345 = vector.extract_strided_slice %224 {offsets = [6, 0], sizes = [2, 128], strides = [1, 1]} : vector<16x128xf32> to vector<2x128xf32>
    %cst_150 = arith.constant dense<0.000000e+00> : vector<2x128xf32>
    %346 = tpu.matmul %318, %218, %cst_150 {dimension_numbers = #tpu.dot_dimension_numbers<[1], [0], [0], [1], [0, 0, 1, 1], [], []>} : vector<2x32xf32>, vector<32x128xf32>, vector<2x128xf32> -> vector<2x128xf32>
    %347 = arith.addf %345, %346 : vector<2x128xf32>
    %348 = math.tanh %347 : vector<2x128xf32>
    %349 = arith.negf %347 : vector<2x128xf32>
    %350 = math.exp %349 : vector<2x128xf32>
    %cst_151 = arith.constant 1.000000e+00 : f32
    %351 = vector.broadcast %cst_151 : f32 to vector<2x128xf32>
    %352 = arith.addf %351, %350 : vector<2x128xf32>
    %353 = arith.divf %351, %352 : vector<2x128xf32>
    %354 = arith.select %230, %348, %353 : vector<2x128xi1>, vector<2x128xf32>
    %355 = vector.extract_strided_slice %354 {offsets = [0, 0], sizes = [2, 32], strides = [1, 1]} : vector<2x128xf32> to vector<2x32xf32>
    %356 = vector.extract_strided_slice %354 {offsets = [0, 32], sizes = [2, 32], strides = [1, 1]} : vector<2x128xf32> to vector<2x32xf32>
    %357 = vector.extract_strided_slice %354 {offsets = [0, 64], sizes = [2, 32], strides = [1, 1]} : vector<2x128xf32> to vector<2x32xf32>
    %358 = vector.extract_strided_slice %354 {offsets = [0, 96], sizes = [2, 32], strides = [1, 1]} : vector<2x128xf32> to vector<2x32xf32>
    %359 = arith.mulf %356, %316 : vector<2x32xf32>
    %360 = arith.mulf %355, %357 : vector<2x32xf32>
    %361 = arith.addf %359, %360 : vector<2x32xf32>
    %362 = math.tanh %361 : vector<2x32xf32>
    %363 = arith.mulf %358, %362 : vector<2x32xf32>
    %cst_152 = arith.constant dense<0.000000e+00> : vector<2x128xf32>
    %364 = tpu.matmul %318, %217, %cst_152 {dimension_numbers = #tpu.dot_dimension_numbers<[1], [0], [0], [1], [0, 0, 1, 1], [], []>} : vector<2x32xf32>, vector<32x128xf32>, vector<2x128xf32> -> vector<2x128xf32>
    %cst_153 = arith.constant dense<0.000000e+00> : vector<2x128xf32>
    %365 = tpu.matmul %339, %219, %cst_153 {dimension_numbers = #tpu.dot_dimension_numbers<[1], [0], [0], [1], [0, 0, 1, 1], [], []>} : vector<2x32xf32>, vector<32x128xf32>, vector<2x128xf32> -> vector<2x128xf32>
    %366 = arith.addf %364, %365 : vector<2x128xf32>
    %367 = vector.broadcast %221 : vector<1x128xf32> to vector<2x128xf32>
    %368 = arith.addf %366, %367 : vector<2x128xf32>
    %369 = math.tanh %368 : vector<2x128xf32>
    %370 = arith.negf %368 : vector<2x128xf32>
    %371 = math.exp %370 : vector<2x128xf32>
    %cst_154 = arith.constant 1.000000e+00 : f32
    %372 = vector.broadcast %cst_154 : f32 to vector<2x128xf32>
    %373 = arith.addf %372, %371 : vector<2x128xf32>
    %374 = arith.divf %372, %373 : vector<2x128xf32>
    %375 = arith.select %230, %369, %374 : vector<2x128xi1>, vector<2x128xf32>
    %376 = vector.extract_strided_slice %375 {offsets = [0, 0], sizes = [2, 32], strides = [1, 1]} : vector<2x128xf32> to vector<2x32xf32>
    %377 = vector.extract_strided_slice %375 {offsets = [0, 32], sizes = [2, 32], strides = [1, 1]} : vector<2x128xf32> to vector<2x32xf32>
    %378 = vector.extract_strided_slice %375 {offsets = [0, 64], sizes = [2, 32], strides = [1, 1]} : vector<2x128xf32> to vector<2x32xf32>
    %379 = vector.extract_strided_slice %375 {offsets = [0, 96], sizes = [2, 32], strides = [1, 1]} : vector<2x128xf32> to vector<2x32xf32>
    %380 = arith.mulf %377, %337 : vector<2x32xf32>
    %381 = arith.mulf %376, %378 : vector<2x32xf32>
    %382 = arith.addf %380, %381 : vector<2x32xf32>
    %383 = math.tanh %382 : vector<2x32xf32>
    %384 = arith.mulf %379, %383 : vector<2x32xf32>
    %c3_i32_155 = arith.constant 3 : i32
    %385 = vector.broadcast %c3_i32_155 : i32 to vector<2x1xi32>
    %386 = arith.cmpi eq, %215, %385 : vector<2x1xi32>
    %387 = vector.shape_cast %386 : vector<2x1xi1> to vector<2x1xi1>
    %388 = vector.broadcast %387 : vector<2x1xi1> to vector<2x32xi1>
    %389 = arith.select %388, %384, %344 : vector<2x32xi1>, vector<2x32xf32>
    %390 = vector.extract_strided_slice %224 {offsets = [8, 0], sizes = [2, 128], strides = [1, 1]} : vector<16x128xf32> to vector<2x128xf32>
    %cst_156 = arith.constant dense<0.000000e+00> : vector<2x128xf32>
    %391 = tpu.matmul %363, %218, %cst_156 {dimension_numbers = #tpu.dot_dimension_numbers<[1], [0], [0], [1], [0, 0, 1, 1], [], []>} : vector<2x32xf32>, vector<32x128xf32>, vector<2x128xf32> -> vector<2x128xf32>
    %392 = arith.addf %390, %391 : vector<2x128xf32>
    %393 = math.tanh %392 : vector<2x128xf32>
    %394 = arith.negf %392 : vector<2x128xf32>
    %395 = math.exp %394 : vector<2x128xf32>
    %cst_157 = arith.constant 1.000000e+00 : f32
    %396 = vector.broadcast %cst_157 : f32 to vector<2x128xf32>
    %397 = arith.addf %396, %395 : vector<2x128xf32>
    %398 = arith.divf %396, %397 : vector<2x128xf32>
    %399 = arith.select %230, %393, %398 : vector<2x128xi1>, vector<2x128xf32>
    %400 = vector.extract_strided_slice %399 {offsets = [0, 0], sizes = [2, 32], strides = [1, 1]} : vector<2x128xf32> to vector<2x32xf32>
    %401 = vector.extract_strided_slice %399 {offsets = [0, 32], sizes = [2, 32], strides = [1, 1]} : vector<2x128xf32> to vector<2x32xf32>
    %402 = vector.extract_strided_slice %399 {offsets = [0, 64], sizes = [2, 32], strides = [1, 1]} : vector<2x128xf32> to vector<2x32xf32>
    %403 = vector.extract_strided_slice %399 {offsets = [0, 96], sizes = [2, 32], strides = [1, 1]} : vector<2x128xf32> to vector<2x32xf32>
    %404 = arith.mulf %401, %361 : vector<2x32xf32>
    %405 = arith.mulf %400, %402 : vector<2x32xf32>
    %406 = arith.addf %404, %405 : vector<2x32xf32>
    %407 = math.tanh %406 : vector<2x32xf32>
    %408 = arith.mulf %403, %407 : vector<2x32xf32>
    %cst_158 = arith.constant dense<0.000000e+00> : vector<2x128xf32>
    %409 = tpu.matmul %363, %217, %cst_158 {dimension_numbers = #tpu.dot_dimension_numbers<[1], [0], [0], [1], [0, 0, 1, 1], [], []>} : vector<2x32xf32>, vector<32x128xf32>, vector<2x128xf32> -> vector<2x128xf32>
    %cst_159 = arith.constant dense<0.000000e+00> : vector<2x128xf32>
    %410 = tpu.matmul %384, %219, %cst_159 {dimension_numbers = #tpu.dot_dimension_numbers<[1], [0], [0], [1], [0, 0, 1, 1], [], []>} : vector<2x32xf32>, vector<32x128xf32>, vector<2x128xf32> -> vector<2x128xf32>
    %411 = arith.addf %409, %410 : vector<2x128xf32>
    %412 = vector.broadcast %221 : vector<1x128xf32> to vector<2x128xf32>
    %413 = arith.addf %411, %412 : vector<2x128xf32>
    %414 = math.tanh %413 : vector<2x128xf32>
    %415 = arith.negf %413 : vector<2x128xf32>
    %416 = math.exp %415 : vector<2x128xf32>
    %cst_160 = arith.constant 1.000000e+00 : f32
    %417 = vector.broadcast %cst_160 : f32 to vector<2x128xf32>
    %418 = arith.addf %417, %416 : vector<2x128xf32>
    %419 = arith.divf %417, %418 : vector<2x128xf32>
    %420 = arith.select %230, %414, %419 : vector<2x128xi1>, vector<2x128xf32>
    %421 = vector.extract_strided_slice %420 {offsets = [0, 0], sizes = [2, 32], strides = [1, 1]} : vector<2x128xf32> to vector<2x32xf32>
    %422 = vector.extract_strided_slice %420 {offsets = [0, 32], sizes = [2, 32], strides = [1, 1]} : vector<2x128xf32> to vector<2x32xf32>
    %423 = vector.extract_strided_slice %420 {offsets = [0, 64], sizes = [2, 32], strides = [1, 1]} : vector<2x128xf32> to vector<2x32xf32>
    %424 = vector.extract_strided_slice %420 {offsets = [0, 96], sizes = [2, 32], strides = [1, 1]} : vector<2x128xf32> to vector<2x32xf32>
    %425 = arith.mulf %422, %382 : vector<2x32xf32>
    %426 = arith.mulf %421, %423 : vector<2x32xf32>
    %427 = arith.addf %425, %426 : vector<2x32xf32>
    %428 = math.tanh %427 : vector<2x32xf32>
    %429 = arith.mulf %424, %428 : vector<2x32xf32>
    %c4_i32_161 = arith.constant 4 : i32
    %430 = vector.broadcast %c4_i32_161 : i32 to vector<2x1xi32>
    %431 = arith.cmpi eq, %215, %430 : vector<2x1xi32>
    %432 = vector.shape_cast %431 : vector<2x1xi1> to vector<2x1xi1>
    %433 = vector.broadcast %432 : vector<2x1xi1> to vector<2x32xi1>
    %434 = arith.select %433, %429, %389 : vector<2x32xi1>, vector<2x32xf32>
    %435 = vector.extract_strided_slice %224 {offsets = [10, 0], sizes = [2, 128], strides = [1, 1]} : vector<16x128xf32> to vector<2x128xf32>
    %cst_162 = arith.constant dense<0.000000e+00> : vector<2x128xf32>
    %436 = tpu.matmul %408, %218, %cst_162 {dimension_numbers = #tpu.dot_dimension_numbers<[1], [0], [0], [1], [0, 0, 1, 1], [], []>} : vector<2x32xf32>, vector<32x128xf32>, vector<2x128xf32> -> vector<2x128xf32>
    %437 = arith.addf %435, %436 : vector<2x128xf32>
    %438 = math.tanh %437 : vector<2x128xf32>
    %439 = arith.negf %437 : vector<2x128xf32>
    %440 = math.exp %439 : vector<2x128xf32>
    %cst_163 = arith.constant 1.000000e+00 : f32
    %441 = vector.broadcast %cst_163 : f32 to vector<2x128xf32>
    %442 = arith.addf %441, %440 : vector<2x128xf32>
    %443 = arith.divf %441, %442 : vector<2x128xf32>
    %444 = arith.select %230, %438, %443 : vector<2x128xi1>, vector<2x128xf32>
    %445 = vector.extract_strided_slice %444 {offsets = [0, 0], sizes = [2, 32], strides = [1, 1]} : vector<2x128xf32> to vector<2x32xf32>
    %446 = vector.extract_strided_slice %444 {offsets = [0, 32], sizes = [2, 32], strides = [1, 1]} : vector<2x128xf32> to vector<2x32xf32>
    %447 = vector.extract_strided_slice %444 {offsets = [0, 64], sizes = [2, 32], strides = [1, 1]} : vector<2x128xf32> to vector<2x32xf32>
    %448 = vector.extract_strided_slice %444 {offsets = [0, 96], sizes = [2, 32], strides = [1, 1]} : vector<2x128xf32> to vector<2x32xf32>
    %449 = arith.mulf %446, %406 : vector<2x32xf32>
    %450 = arith.mulf %445, %447 : vector<2x32xf32>
    %451 = arith.addf %449, %450 : vector<2x32xf32>
    %452 = math.tanh %451 : vector<2x32xf32>
    %453 = arith.mulf %448, %452 : vector<2x32xf32>
    %cst_164 = arith.constant dense<0.000000e+00> : vector<2x128xf32>
    %454 = tpu.matmul %408, %217, %cst_164 {dimension_numbers = #tpu.dot_dimension_numbers<[1], [0], [0], [1], [0, 0, 1, 1], [], []>} : vector<2x32xf32>, vector<32x128xf32>, vector<2x128xf32> -> vector<2x128xf32>
    %cst_165 = arith.constant dense<0.000000e+00> : vector<2x128xf32>
    %455 = tpu.matmul %429, %219, %cst_165 {dimension_numbers = #tpu.dot_dimension_numbers<[1], [0], [0], [1], [0, 0, 1, 1], [], []>} : vector<2x32xf32>, vector<32x128xf32>, vector<2x128xf32> -> vector<2x128xf32>
    %456 = arith.addf %454, %455 : vector<2x128xf32>
    %457 = vector.broadcast %221 : vector<1x128xf32> to vector<2x128xf32>
    %458 = arith.addf %456, %457 : vector<2x128xf32>
    %459 = math.tanh %458 : vector<2x128xf32>
    %460 = arith.negf %458 : vector<2x128xf32>
    %461 = math.exp %460 : vector<2x128xf32>
    %cst_166 = arith.constant 1.000000e+00 : f32
    %462 = vector.broadcast %cst_166 : f32 to vector<2x128xf32>
    %463 = arith.addf %462, %461 : vector<2x128xf32>
    %464 = arith.divf %462, %463 : vector<2x128xf32>
    %465 = arith.select %230, %459, %464 : vector<2x128xi1>, vector<2x128xf32>
    %466 = vector.extract_strided_slice %465 {offsets = [0, 0], sizes = [2, 32], strides = [1, 1]} : vector<2x128xf32> to vector<2x32xf32>
    %467 = vector.extract_strided_slice %465 {offsets = [0, 32], sizes = [2, 32], strides = [1, 1]} : vector<2x128xf32> to vector<2x32xf32>
    %468 = vector.extract_strided_slice %465 {offsets = [0, 64], sizes = [2, 32], strides = [1, 1]} : vector<2x128xf32> to vector<2x32xf32>
    %469 = vector.extract_strided_slice %465 {offsets = [0, 96], sizes = [2, 32], strides = [1, 1]} : vector<2x128xf32> to vector<2x32xf32>
    %470 = arith.mulf %467, %427 : vector<2x32xf32>
    %471 = arith.mulf %466, %468 : vector<2x32xf32>
    %472 = arith.addf %470, %471 : vector<2x32xf32>
    %473 = math.tanh %472 : vector<2x32xf32>
    %474 = arith.mulf %469, %473 : vector<2x32xf32>
    %c5_i32_167 = arith.constant 5 : i32
    %475 = vector.broadcast %c5_i32_167 : i32 to vector<2x1xi32>
    %476 = arith.cmpi eq, %215, %475 : vector<2x1xi32>
    %477 = vector.shape_cast %476 : vector<2x1xi1> to vector<2x1xi1>
    %478 = vector.broadcast %477 : vector<2x1xi1> to vector<2x32xi1>
    %479 = arith.select %478, %474, %434 : vector<2x32xi1>, vector<2x32xf32>
    %480 = vector.extract_strided_slice %224 {offsets = [12, 0], sizes = [2, 128], strides = [1, 1]} : vector<16x128xf32> to vector<2x128xf32>
    %cst_168 = arith.constant dense<0.000000e+00> : vector<2x128xf32>
    %481 = tpu.matmul %453, %218, %cst_168 {dimension_numbers = #tpu.dot_dimension_numbers<[1], [0], [0], [1], [0, 0, 1, 1], [], []>} : vector<2x32xf32>, vector<32x128xf32>, vector<2x128xf32> -> vector<2x128xf32>
    %482 = arith.addf %480, %481 : vector<2x128xf32>
    %483 = math.tanh %482 : vector<2x128xf32>
    %484 = arith.negf %482 : vector<2x128xf32>
    %485 = math.exp %484 : vector<2x128xf32>
    %cst_169 = arith.constant 1.000000e+00 : f32
    %486 = vector.broadcast %cst_169 : f32 to vector<2x128xf32>
    %487 = arith.addf %486, %485 : vector<2x128xf32>
    %488 = arith.divf %486, %487 : vector<2x128xf32>
    %489 = arith.select %230, %483, %488 : vector<2x128xi1>, vector<2x128xf32>
    %490 = vector.extract_strided_slice %489 {offsets = [0, 0], sizes = [2, 32], strides = [1, 1]} : vector<2x128xf32> to vector<2x32xf32>
    %491 = vector.extract_strided_slice %489 {offsets = [0, 32], sizes = [2, 32], strides = [1, 1]} : vector<2x128xf32> to vector<2x32xf32>
    %492 = vector.extract_strided_slice %489 {offsets = [0, 64], sizes = [2, 32], strides = [1, 1]} : vector<2x128xf32> to vector<2x32xf32>
    %493 = vector.extract_strided_slice %489 {offsets = [0, 96], sizes = [2, 32], strides = [1, 1]} : vector<2x128xf32> to vector<2x32xf32>
    %494 = arith.mulf %491, %451 : vector<2x32xf32>
    %495 = arith.mulf %490, %492 : vector<2x32xf32>
    %496 = arith.addf %494, %495 : vector<2x32xf32>
    %497 = math.tanh %496 : vector<2x32xf32>
    %498 = arith.mulf %493, %497 : vector<2x32xf32>
    %cst_170 = arith.constant dense<0.000000e+00> : vector<2x128xf32>
    %499 = tpu.matmul %453, %217, %cst_170 {dimension_numbers = #tpu.dot_dimension_numbers<[1], [0], [0], [1], [0, 0, 1, 1], [], []>} : vector<2x32xf32>, vector<32x128xf32>, vector<2x128xf32> -> vector<2x128xf32>
    %cst_171 = arith.constant dense<0.000000e+00> : vector<2x128xf32>
    %500 = tpu.matmul %474, %219, %cst_171 {dimension_numbers = #tpu.dot_dimension_numbers<[1], [0], [0], [1], [0, 0, 1, 1], [], []>} : vector<2x32xf32>, vector<32x128xf32>, vector<2x128xf32> -> vector<2x128xf32>
    %501 = arith.addf %499, %500 : vector<2x128xf32>
    %502 = vector.broadcast %221 : vector<1x128xf32> to vector<2x128xf32>
    %503 = arith.addf %501, %502 : vector<2x128xf32>
    %504 = math.tanh %503 : vector<2x128xf32>
    %505 = arith.negf %503 : vector<2x128xf32>
    %506 = math.exp %505 : vector<2x128xf32>
    %cst_172 = arith.constant 1.000000e+00 : f32
    %507 = vector.broadcast %cst_172 : f32 to vector<2x128xf32>
    %508 = arith.addf %507, %506 : vector<2x128xf32>
    %509 = arith.divf %507, %508 : vector<2x128xf32>
    %510 = arith.select %230, %504, %509 : vector<2x128xi1>, vector<2x128xf32>
    %511 = vector.extract_strided_slice %510 {offsets = [0, 0], sizes = [2, 32], strides = [1, 1]} : vector<2x128xf32> to vector<2x32xf32>
    %512 = vector.extract_strided_slice %510 {offsets = [0, 32], sizes = [2, 32], strides = [1, 1]} : vector<2x128xf32> to vector<2x32xf32>
    %513 = vector.extract_strided_slice %510 {offsets = [0, 64], sizes = [2, 32], strides = [1, 1]} : vector<2x128xf32> to vector<2x32xf32>
    %514 = vector.extract_strided_slice %510 {offsets = [0, 96], sizes = [2, 32], strides = [1, 1]} : vector<2x128xf32> to vector<2x32xf32>
    %515 = arith.mulf %512, %472 : vector<2x32xf32>
    %516 = arith.mulf %511, %513 : vector<2x32xf32>
    %517 = arith.addf %515, %516 : vector<2x32xf32>
    %518 = math.tanh %517 : vector<2x32xf32>
    %519 = arith.mulf %514, %518 : vector<2x32xf32>
    %c6_i32_173 = arith.constant 6 : i32
    %520 = vector.broadcast %c6_i32_173 : i32 to vector<2x1xi32>
    %521 = arith.cmpi eq, %215, %520 : vector<2x1xi32>
    %522 = vector.shape_cast %521 : vector<2x1xi1> to vector<2x1xi1>
    %523 = vector.broadcast %522 : vector<2x1xi1> to vector<2x32xi1>
    %524 = arith.select %523, %519, %479 : vector<2x32xi1>, vector<2x32xf32>
    %525 = vector.extract_strided_slice %224 {offsets = [14, 0], sizes = [2, 128], strides = [1, 1]} : vector<16x128xf32> to vector<2x128xf32>
    %cst_174 = arith.constant dense<0.000000e+00> : vector<2x128xf32>
    %526 = tpu.matmul %498, %218, %cst_174 {dimension_numbers = #tpu.dot_dimension_numbers<[1], [0], [0], [1], [0, 0, 1, 1], [], []>} : vector<2x32xf32>, vector<32x128xf32>, vector<2x128xf32> -> vector<2x128xf32>
    %527 = arith.addf %525, %526 : vector<2x128xf32>
    %528 = math.tanh %527 : vector<2x128xf32>
    %529 = arith.negf %527 : vector<2x128xf32>
    %530 = math.exp %529 : vector<2x128xf32>
    %cst_175 = arith.constant 1.000000e+00 : f32
    %531 = vector.broadcast %cst_175 : f32 to vector<2x128xf32>
    %532 = arith.addf %531, %530 : vector<2x128xf32>
    %533 = arith.divf %531, %532 : vector<2x128xf32>
    %534 = arith.select %230, %528, %533 : vector<2x128xi1>, vector<2x128xf32>
    %535 = vector.extract_strided_slice %534 {offsets = [0, 0], sizes = [2, 32], strides = [1, 1]} : vector<2x128xf32> to vector<2x32xf32>
    %536 = vector.extract_strided_slice %534 {offsets = [0, 32], sizes = [2, 32], strides = [1, 1]} : vector<2x128xf32> to vector<2x32xf32>
    %537 = vector.extract_strided_slice %534 {offsets = [0, 64], sizes = [2, 32], strides = [1, 1]} : vector<2x128xf32> to vector<2x32xf32>
    %538 = vector.extract_strided_slice %534 {offsets = [0, 96], sizes = [2, 32], strides = [1, 1]} : vector<2x128xf32> to vector<2x32xf32>
    %539 = arith.mulf %536, %496 : vector<2x32xf32>
    %540 = arith.mulf %535, %537 : vector<2x32xf32>
    %541 = arith.addf %539, %540 : vector<2x32xf32>
    %542 = math.tanh %541 : vector<2x32xf32>
    %543 = arith.mulf %538, %542 : vector<2x32xf32>
    %cst_176 = arith.constant dense<0.000000e+00> : vector<2x128xf32>
    %544 = tpu.matmul %498, %217, %cst_176 {dimension_numbers = #tpu.dot_dimension_numbers<[1], [0], [0], [1], [0, 0, 1, 1], [], []>} : vector<2x32xf32>, vector<32x128xf32>, vector<2x128xf32> -> vector<2x128xf32>
    %cst_177 = arith.constant dense<0.000000e+00> : vector<2x128xf32>
    %545 = tpu.matmul %519, %219, %cst_177 {dimension_numbers = #tpu.dot_dimension_numbers<[1], [0], [0], [1], [0, 0, 1, 1], [], []>} : vector<2x32xf32>, vector<32x128xf32>, vector<2x128xf32> -> vector<2x128xf32>
    %546 = arith.addf %544, %545 : vector<2x128xf32>
    %547 = vector.broadcast %221 : vector<1x128xf32> to vector<2x128xf32>
    %548 = arith.addf %546, %547 : vector<2x128xf32>
    %549 = math.tanh %548 : vector<2x128xf32>
    %550 = arith.negf %548 : vector<2x128xf32>
    %551 = math.exp %550 : vector<2x128xf32>
    %cst_178 = arith.constant 1.000000e+00 : f32
    %552 = vector.broadcast %cst_178 : f32 to vector<2x128xf32>
    %553 = arith.addf %552, %551 : vector<2x128xf32>
    %554 = arith.divf %552, %553 : vector<2x128xf32>
    %555 = arith.select %230, %549, %554 : vector<2x128xi1>, vector<2x128xf32>
    %556 = vector.extract_strided_slice %555 {offsets = [0, 0], sizes = [2, 32], strides = [1, 1]} : vector<2x128xf32> to vector<2x32xf32>
    %557 = vector.extract_strided_slice %555 {offsets = [0, 32], sizes = [2, 32], strides = [1, 1]} : vector<2x128xf32> to vector<2x32xf32>
    %558 = vector.extract_strided_slice %555 {offsets = [0, 64], sizes = [2, 32], strides = [1, 1]} : vector<2x128xf32> to vector<2x32xf32>
    %559 = vector.extract_strided_slice %555 {offsets = [0, 96], sizes = [2, 32], strides = [1, 1]} : vector<2x128xf32> to vector<2x32xf32>
    %560 = arith.mulf %557, %517 : vector<2x32xf32>
    %561 = arith.mulf %556, %558 : vector<2x32xf32>
    %562 = arith.addf %560, %561 : vector<2x32xf32>
    %563 = math.tanh %562 : vector<2x32xf32>
    %564 = arith.mulf %559, %563 : vector<2x32xf32>
    %c7_i32_179 = arith.constant 7 : i32
    %565 = vector.broadcast %c7_i32_179 : i32 to vector<2x1xi32>
    %566 = arith.cmpi eq, %215, %565 : vector<2x1xi32>
    %567 = vector.shape_cast %566 : vector<2x1xi1> to vector<2x1xi1>
    %568 = vector.broadcast %567 : vector<2x1xi1> to vector<2x32xi1>
    %569 = arith.select %568, %564, %524 : vector<2x32xi1>, vector<2x32xf32>
    %cst_180 = arith.constant dense<0.000000e+00> : vector<2x128xf32>
    %570 = tpu.matmul %543, %217, %cst_180 {dimension_numbers = #tpu.dot_dimension_numbers<[1], [0], [0], [1], [0, 0, 1, 1], [], []>} : vector<2x32xf32>, vector<32x128xf32>, vector<2x128xf32> -> vector<2x128xf32>
    %cst_181 = arith.constant dense<0.000000e+00> : vector<2x128xf32>
    %571 = tpu.matmul %564, %219, %cst_181 {dimension_numbers = #tpu.dot_dimension_numbers<[1], [0], [0], [1], [0, 0, 1, 1], [], []>} : vector<2x32xf32>, vector<32x128xf32>, vector<2x128xf32> -> vector<2x128xf32>
    %572 = arith.addf %570, %571 : vector<2x128xf32>
    %573 = vector.broadcast %221 : vector<1x128xf32> to vector<2x128xf32>
    %574 = arith.addf %572, %573 : vector<2x128xf32>
    %575 = math.tanh %574 : vector<2x128xf32>
    %576 = arith.negf %574 : vector<2x128xf32>
    %577 = math.exp %576 : vector<2x128xf32>
    %cst_182 = arith.constant 1.000000e+00 : f32
    %578 = vector.broadcast %cst_182 : f32 to vector<2x128xf32>
    %579 = arith.addf %578, %577 : vector<2x128xf32>
    %580 = arith.divf %578, %579 : vector<2x128xf32>
    %581 = arith.select %230, %575, %580 : vector<2x128xi1>, vector<2x128xf32>
    %582 = vector.extract_strided_slice %581 {offsets = [0, 0], sizes = [2, 32], strides = [1, 1]} : vector<2x128xf32> to vector<2x32xf32>
    %583 = vector.extract_strided_slice %581 {offsets = [0, 32], sizes = [2, 32], strides = [1, 1]} : vector<2x128xf32> to vector<2x32xf32>
    %584 = vector.extract_strided_slice %581 {offsets = [0, 64], sizes = [2, 32], strides = [1, 1]} : vector<2x128xf32> to vector<2x32xf32>
    %585 = vector.extract_strided_slice %581 {offsets = [0, 96], sizes = [2, 32], strides = [1, 1]} : vector<2x128xf32> to vector<2x32xf32>
    %586 = arith.mulf %583, %562 : vector<2x32xf32>
    %587 = arith.mulf %582, %584 : vector<2x32xf32>
    %588 = arith.addf %586, %587 : vector<2x32xf32>
    %589 = math.tanh %588 : vector<2x32xf32>
    %590 = arith.mulf %585, %589 : vector<2x32xf32>
    %c8_i32_183 = arith.constant 8 : i32
    %591 = vector.broadcast %c8_i32_183 : i32 to vector<2x1xi32>
    %592 = arith.cmpi eq, %215, %591 : vector<2x1xi32>
    %593 = vector.shape_cast %592 : vector<2x1xi1> to vector<2x1xi1>
    %594 = vector.broadcast %593 : vector<2x1xi1> to vector<2x32xi1>
    %595 = arith.select %594, %590, %569 : vector<2x32xi1>, vector<2x32xf32>
    %c0_184 = arith.constant 0 : index
    %c0_185 = arith.constant 0 : index
    %596 = vector.load %arg9[%c0_184, %c0_185] : memref<2x32xf32, #tpu.memory_space<vmem>>, vector<2x32xf32>
    tpu.vector_store %arg9[%c0_184, %c0_185], %595 {strides = array<i32>} : memref<2x32xf32, #tpu.memory_space<vmem>>, vector<2x32xf32>,
    return
  }
}

</mosaic_0001>

<bundles_post_ra>
// kernel: tpu_custom_call.1
= control target key start
LH: loop header
LB: loop body
LE: loop exit
PB: predicated region body
PF: predicated region fallthrough
CT: control target
= control target key end

     0   :  { %14 = vsyncpa [#allocation6], 0  ;;  %s4967_s0 = inlined_call_operand.vmem [shape: s32[16], index: 0, kind: input, shape index: {}]   ;;  %s4968_s1 = inlined_call_operand.vmem [shape: s32[2,1], index: 1, kind: input, shape index: {}]   ;;  %s4969_s2 = inlined_call_operand.vmem [shape: f32[100,32], index: 2, kind: input, shape index: {}]   ;;  %s4970_s3 = inlined_call_operand.vmem [shape: f32[32,128], index: 3, kind: input, shape index: {}]   ;;  %s4971_s4 = inlined_call_operand.vmem [shape: f32[32,128], index: 4, kind: input, shape index: {}]   ;;  %s4972_s5 = inlined_call_operand.vmem [shape: f32[1,128], index: 5, kind: input, shape index: {}]   ;;  %s4973_s6 = inlined_call_operand.vmem [shape: f32[32,128], index: 6, kind: input, shape index: {}]   ;;  %s4974_s7 = inlined_call_operand.vmem [shape: f32[32,128], index: 7, kind: input, shape index: {}]   ;;  %s4975_s8 = inlined_call_operand.vmem [shape: f32[1,128], index: 8, kind: input, shape index: {}]   ;;  %s4976_s9 = inlined_call_operand.hbm [shape: f32[2,32], index: 9, kind: output, shape index: {}]  }
   0x1   :  { %15 = vsyncpa [#allocation5], 0  ;;  %s22_s11 = sshll.u32 %s4967_s0, 4  ;;  %s23_s11 = int_to_ptr.vmem [resolvable:$true] %s22_s11 }
   0x2   :  { %s4329_s12 = scalar_lea.vmem %s23_s11, 16  ;;  %p4334_p1 = scmp.lt.s32.totalorder %s23_s11, %s23_s11 }
   0x3   :  { %p4330_p0 = scmp.ne.s32.totalorder %s23_s11, %s4329_s12  ;;  %p4335_p2 = scmp.lt.s32.totalorder %s4329_s12, %s4329_s12 }
   0x5   :  { %p4336_p3 = por %p4335_p2, %p4334_p1 }
   0x7   :  { %p4337_p4 = pnand %p4336_p3, %p4330_p0 }
   0x9   :  { %4340 = shalt.err (!%p4337_p4)
}
   0xa   :  { %s4399_s13 = smov [#allocation4]  }
   0xb   :  { %25 = dma.vmem_to_smem %s23_s11, 16, %s4399_s13, [#allocation6]  }
   0xc   :  { %4363 = dma.done.wait [#allocation6], 16  }
   0xd   :  { %4364 = vsyncadd [#allocation6], 4294967280 }
   0xe   :  { %43 = sfence }
   0xf   :  { %s44_s14 = sld [smem:[#allocation4]] }
  0x15   :  { %s45_s17 = scalar_lea.vmem %s4969_s2, %s44_s14 }
  0x16   :  { %v63_v0 = vld [vmem:[%s45_s17] sm:$0x1] }
  0x17   :  { %64 = vst [vmem:[#allocation2] sm:$0x1] %v63_v0 }
  0x18   :  { %89 = vsyncadd [#allocation3], 16  ;;  %s3564_s0 = sld [smem:[#allocation4 + $0x1]] }
  0x1e   :  { %s91_s20 = scalar_lea.vmem %s4969_s2, %s3564_s0 }
  0x1f   :  { %v111_v1 = vld [vmem:[%s91_s20] sm:$0x1] }
  0x20   :  { %112 = vst [vmem:[#allocation2 + $0x1] sm:$0x1] %v111_v1 }
  0x21   :  { %137 = vsyncadd [#allocation3 + $0x1], 16  ;;  %s3565_s21 = sld [smem:[#allocation4 + $0x2]] }
  0x27   :  { %s139_s24 = scalar_lea.vmem %s4969_s2, %s3565_s21 }
  0x28   :  { %v159_v2 = vld [vmem:[%s139_s24] sm:$0x1] }
  0x29   :  { %160 = vst [vmem:[#allocation2 + $0x2] sm:$0x1] %v159_v2 }
  0x2a   :  { %185 = vsyncadd [#allocation3 + $0x2], 16  ;;  %s3566_s25 = sld [smem:[#allocation4 + $0x3]] }
  0x30   :  { %s187_s28 = scalar_lea.vmem %s4969_s2, %s3566_s25 }
  0x31   :  { %v207_v3 = vld [vmem:[%s187_s28] sm:$0x1] }
  0x32   :  { %208 = vst [vmem:[#allocation2 + $0x3] sm:$0x1] %v207_v3 }
  0x33   :  { %233 = vsyncadd [#allocation3 + $0x3], 16  ;;  %s3567_s29 = sld [smem:[#allocation4 + $0x4]] }
  0x39   :  { %s235_s11 = scalar_lea.vmem %s4969_s2, %s3567_s29 }
  0x3a   :  { %v255_v4 = vld [vmem:[%s235_s11] sm:$0x1] }
  0x3b   :  { %256 = vst [vmem:[#allocation2 + $0x4] sm:$0x1] %v255_v4 }
  0x3c   :  { %281 = vsyncadd [#allocation3 + $0x4], 16  ;;  %s3568_s12 = sld [smem:[#allocation4 + $0x5]] }
  0x42   :  { %s283_s15 = scalar_lea.vmem %s4969_s2, %s3568_s12 }
  0x43   :  { %v303_v5 = vld [vmem:[%s283_s15] sm:$0x1] }
  0x44   :  { %304 = vst [vmem:[#allocation2 + $0x5] sm:$0x1] %v303_v5 }
  0x45   :  { %329 = vsyncadd [#allocation3 + $0x5], 16  ;;  %s3569_s16 = sld [smem:[#allocation4 + $0x6]] }
  0x4b   :  { %s331_s18 = scalar_lea.vmem %s4969_s2, %s3569_s16 }
  0x4c   :  { %v351_v6 = vld [vmem:[%s331_s18] sm:$0x1] }
  0x4d   :  { %352 = vst [vmem:[#allocation2 + $0x6] sm:$0x1] %v351_v6 }
  0x4e   :  { %377 = vsyncadd [#allocation3 + $0x6], 16  ;;  %s3570_s19 = sld [smem:[#allocation4 + $0x7]] }
  0x54   :  { %s379_s22 = scalar_lea.vmem %s4969_s2, %s3570_s19 }
  0x55   :  { %v399_v7 = vld [vmem:[%s379_s22] sm:$0x1] }
  0x56   :  { %400 = vst [vmem:[#allocation2 + $0x7] sm:$0x1] %v399_v7 }
  0x57   :  { %425 = vsyncadd [#allocation3 + $0x7], 16  ;;  %s3571_s23 = sld [smem:[#allocation4 + $0x8]] }
  0x5d   :  { %s427_s26 = scalar_lea.vmem %s4969_s2, %s3571_s23 }
  0x5e   :  { %v447_v8 = vld [vmem:[%s427_s26] sm:$0x1] }
  0x5f   :  { %448 = vst [vmem:[#allocation2 + $0x8] sm:$0x1] %v447_v8 }
  0x60   :  { %473 = vsyncadd [#allocation3 + $0x8], 16  ;;  %s3572_s27 = sld [smem:[#allocation4 + $0x9]] }
  0x66   :  { %s475_s30 = scalar_lea.vmem %s4969_s2, %s3572_s27 }
  0x67   :  { %v495_v9 = vld [vmem:[%s475_s30] sm:$0x1] }
  0x68   :  { %496 = vst [vmem:[#allocation2 + $0x9] sm:$0x1] %v495_v9 }
  0x69   :  { %521 = vsyncadd [#allocation3 + $0x9], 16  ;;  %s3573_s10 = sld [smem:[#allocation4 + $0xa]] }
  0x6f   :  { %s523_s13 = scalar_lea.vmem %s4969_s2, %s3573_s10 }
  0x70   :  { %v543_v10 = vld [vmem:[%s523_s13] sm:$0x1] }
  0x71   :  { %544 = vst [vmem:[#allocation2 + $0xa] sm:$0x1] %v543_v10 }
  0x72   :  { %569 = vsyncadd [#allocation3 + $0xa], 16  ;;  %s3574_s14 = sld [smem:[#allocation4 + $0xb]] }
  0x78   :  { %s571_s17 = scalar_lea.vmem %s4969_s2, %s3574_s14 }
  0x79   :  { %v591_v11 = vld [vmem:[%s571_s17] sm:$0x1] }
  0x7a   :  { %592 = vst [vmem:[#allocation2 + $0xb] sm:$0x1] %v591_v11 }
  0x7b   :  { %617 = vsyncadd [#allocation3 + $0xb], 16  ;;  %s3575_s0 = sld [smem:[#allocation4 + $0xc]] }
  0x81   :  { %s619_s20 = scalar_lea.vmem %s4969_s2, %s3575_s0 }
  0x82   :  { %v639_v12 = vld [vmem:[%s619_s20] sm:$0x1] }
  0x83   :  { %640 = vst [vmem:[#allocation2 + $0xc] sm:$0x1] %v639_v12 }
  0x84   :  { %665 = vsyncadd [#allocation3 + $0xc], 16  ;;  %s3576_s21 = sld [smem:[#allocation4 + $0xd]] }
  0x8a   :  { %s667_s24 = scalar_lea.vmem %s4969_s2, %s3576_s21 }
  0x8b   :  { %v687_v13 = vld [vmem:[%s667_s24] sm:$0x1] }
  0x8c   :  { %688 = vst [vmem:[#allocation2 + $0xd] sm:$0x1] %v687_v13 }
  0x8d   :  { %713 = vsyncadd [#allocation3 + $0xd], 16  ;;  %s3577_s25 = sld [smem:[#allocation4 + $0xe]] }
  0x93   :  { %s715_s28 = scalar_lea.vmem %s4969_s2, %s3577_s25 }
  0x94   :  { %v735_v14 = vld [vmem:[%s715_s28] sm:$0x1] }
  0x95   :  { %736 = vst [vmem:[#allocation2 + $0xe] sm:$0x1] %v735_v14 }
  0x96   :  { %761 = vsyncadd [#allocation3 + $0xe], 16  ;;  %s3578_s29 = sld [smem:[#allocation4 + $0xf]] }
  0x9c   :  { %s763_s11 = scalar_lea.vmem %s4969_s2, %s3578_s29 }
  0x9d   :  { %v783_v15 = vld [vmem:[%s763_s11] sm:$0x1] }
  0x9e   :  { %784 = vst [vmem:[#allocation2 + $0xf] sm:$0x1] %v783_v15 }
  0x9f   :  { %809 = vsyncadd [#allocation3 + $0xf], 16 }
  0xa0   :  { %4365 = dma.done.wait [#allocation3], 16 }
  0xa1   :  { %4366 = vsyncadd [#allocation3], 4294967280 }
  0xa2   :  { %4367 = dma.done.wait [#allocation3 + $0x1], 16 }
  0xa3   :  { %4368 = vsyncadd [#allocation3 + $0x1], 4294967280 }
  0xa4   :  { %4369 = dma.done.wait [#allocation3 + $0x2], 16 }
  0xa5   :  { %4370 = vsyncadd [#allocation3 + $0x2], 4294967280 }
  0xa6   :  { %4371 = dma.done.wait [#allocation3 + $0x3], 16 }
  0xa7   :  { %4372 = vsyncadd [#allocation3 + $0x3], 4294967280 }
  0xa8   :  { %4373 = dma.done.wait [#allocation3 + $0x4], 16 }
  0xa9   :  { %4374 = vsyncadd [#allocation3 + $0x4], 4294967280 }
  0xaa   :  { %4375 = dma.done.wait [#allocation3 + $0x5], 16 }
  0xab   :  { %4376 = vsyncadd [#allocation3 + $0x5], 4294967280 }
  0xac   :  { %4377 = dma.done.wait [#allocation3 + $0x6], 16 }
  0xad   :  { %4378 = vsyncadd [#allocation3 + $0x6], 4294967280 }
  0xae   :  { %4379 = dma.done.wait [#allocation3 + $0x7], 16 }
  0xaf   :  { %4380 = vsyncadd [#allocation3 + $0x7], 4294967280 }
  0xb0   :  { %4381 = dma.done.wait [#allocation3 + $0x8], 16 }
  0xb1   :  { %4382 = vsyncadd [#allocation3 + $0x8], 4294967280 }
  0xb2   :  { %4383 = dma.done.wait [#allocation3 + $0x9], 16 }
  0xb3   :  { %4384 = vsyncadd [#allocation3 + $0x9], 4294967280 }
  0xb4   :  { %4385 = dma.done.wait [#allocation3 + $0xa], 16 }
  0xb5   :  { %4386 = vsyncadd [#allocation3 + $0xa], 4294967280 }
  0xb6   :  { %4387 = dma.done.wait [#allocation3 + $0xb], 16 }
  0xb7   :  { %4388 = vsyncadd [#allocation3 + $0xb], 4294967280 }
  0xb8   :  { %4389 = dma.done.wait [#allocation3 + $0xc], 16 }
  0xb9   :  { %4390 = vsyncadd [#allocation3 + $0xc], 4294967280 }
  0xba   :  { %4391 = dma.done.wait [#allocation3 + $0xd], 16 }
  0xbb   :  { %4392 = vsyncadd [#allocation3 + $0xd], 4294967280 }
  0xbc   :  { %4393 = dma.done.wait [#allocation3 + $0xe], 16 }
  0xbd   :  { %4394 = vsyncadd [#allocation3 + $0xe], 4294967280 }
  0xbe   :  { %4395 = dma.done.wait [#allocation3 + $0xf], 16 }
  0xbf   :  { %4396 = vsyncadd [#allocation3 + $0xf], 4294967280  ;;  %v4400_v16 = vmov 0.0|0.0   ;;  %vm4401_vm0 = vmmov 0   ;;  %v4402_v17 = vmov 0.0   ;;  %v849_v18 = vld [vmem:[%s4970_s3] sm:$0xff]  ;;  %v955_v42 = vlaneseq }
  0xc0   :  { %4046 = vmatprep.subr.bf16.mxu1 %v4400_v16  ;;  %3782 = vmatprep.mubr.msk.f32.mxu1 %vm4401_vm0, %v4402_v17  ;;  %v850_v19 = vld [vmem:[%s4970_s3 + $0x8] sm:$0xff]  ;;  %v857_v20 = vld [vmem:[%s4971_s4] sm:$0xff]  ;;  %vm873_vm1 = vcmask 261120   ;;  %v851_v23 = vld [vmem:[%s4970_s3 + $0x10] sm:$0xff]  ;;  %s4404_s26 = smov 32  }
  0xc1   :  { %v4038_v21 = vpack.c.bf16 %v850_v19, %v849_v18  ;;  %v858_v22 = vld [vmem:[%s4971_s4 + $0x8] sm:$0xff]  ;;  %v852_v24 = vld [vmem:[%s4970_s3 + $0x18] sm:$0xff]  ;;  %v842_v27 = vld [vmem:[#allocation2] sm:$0xff]  ;;  %v956_v44 = vand.u32 127, %v955_v42 }
  0xc2   :  { %v4529_v25 = vpack.c.bf16 %v858_v22, %v857_v20  ;;  %v4042_v26 = vpack.c.bf16 %v852_v24, %v851_v23  ;;  %v859_v28 = vld [vmem:[%s4971_s4 + $0x10] sm:$0xff]  ;;  %v860_v29 = vld [vmem:[%s4971_s4 + $0x18] sm:$0xff]  ;;  %3771 = vmatprep.mubr.msk.f32.mxu0 %vm873_vm1, %v842_v27  ;;  %v843_v31 = vld [vmem:[#allocation2 + $0x8] sm:$0xff] }
  0xc3   :  { %4039 = vmatprep.subr.bf16.mxu0 %v4038_v21  ;;  %v4539_v30 = vpack.c.bf16 %v860_v29, %v859_v28  ;;  %v3579_v32 = vld [vmem:[%s4972_s5] ss:$0 sm:$0xff]  ;;  %vm957_vm2 = vcmp.ge.s32.totalorder %v956_v44, 64  ;;  %vm958_vm3 = vcmp.lt.s32.totalorder %v956_v44, 96  ;;  %s4403_s5 = smov 64   ;;  %v862_v56 = vld [vmem:[%s4974_s7 + $0x8] sm:$0xff] }
  0xc4   :  { %4041 = vmatpush3.bf16.msra.mxu0 %v4038_v21  ;;  %4048 = vmatpush3.bf16.msra.mxu1 %v4529_v25  ;;  %vm4563_vm4 = vmand %vm957_vm2, %vm958_vm3  ;;  %v861_v55 = vld [vmem:[%s4974_s7] sm:$0xff]  ;;  %v863_v58 = vld [vmem:[%s4974_s7 + $0x10] sm:$0xff] }
  0xc5   :  { %4043 = vmatprep.subr.bf16.mxu0 %v4042_v26  ;;  %4049 = vmatprep.subr.bf16.mxu1 %v4400_v16  ;;  %v4581_v57 = vpack.c.bf16 %v862_v56, %v861_v55  ;;  %v864_v59 = vld [vmem:[%s4974_s7 + $0x18] sm:$0xff]  ;;  %v853_v63 = vld [vmem:[%s4973_s6] sm:$0xff]  ;;  %v854_v0 = vld [vmem:[%s4973_s6 + $0x8] sm:$0xff] }
  0xc6   :  { %v4591_v60 = vpack.c.bf16 %v864_v59, %v863_v58  ;;  %v4609_v1 = vpack.c.bf16 %v854_v0, %v853_v63  ;;  %v855_v2 = vld [vmem:[%s4973_s6 + $0x10] sm:$0xff]  ;;  %v856_v3 = vld [vmem:[%s4973_s6 + $0x18] sm:$0xff]  ;;  %v4637_v13 = vld [vmem:[%s4975_s8] ss:$0 sm:$0xff] }
  0xc7   :  { %v4619_v5 = vpack.c.bf16 %v856_v3, %v855_v2 }
  0xc8   :  { %4045 = vmatpush3.bf16.msra.mxu0 %v4042_v26  ;;  %4051 = vmatpush3.bf16.msra.mxu1 %v4539_v30 }
  0xc9   :  { %4052 = vmatprep.subr.bf16.mxu0 %v4400_v16  ;;  %4058 = vmatprep.subr.bf16.mxu1 %v4400_v16 }
  0xcb   :  { %3772 = vmatmul.mubr.msk.f32.vlgmr.msra.gmra.mrb[0].mxu0 %vm873_vm1, %v843_v31  ;;  %3783 = vmatmul.mubr.f32.vlgmr.msra.gmra.mrb[0].mxu1 %v4402_v17 }
  0xcc   :  { %4054 = vmatpush3.bf16.msra.mxu0 %v4529_v25  ;;  %3793 = vmatprep.mubr.msk.f32.mxu0 %vm4401_vm0, %v4402_v17 }
  0xcd   :  { %4055 = vmatprep.subr.bf16.mxu0 %v4400_v16  ;;  %3804 = vmatprep.mubr.msk.f32.mxu1 %vm4401_vm0, %v4402_v17 }
  0xce   :  { %4060 = vmatpush3.bf16.msra.mxu1 %v4581_v57 }
  0xcf   :  { %4061 = vmatprep.subr.bf16.mxu1 %v4400_v16 }
  0xd0   :  { %4057 = vmatpush3.bf16.msra.mxu0 %v4539_v30 }
  0xd1   :  { %4064 = vmatprep.subr.bf16.mxu0 %v4400_v16 }
  0xd2   :  { %4063 = vmatpush3.bf16.msra.mxu1 %v4591_v60 }
  0xd3   :  { %4070 = vmatprep.subr.bf16.mxu1 %v4400_v16 }
  0xd5   :  { %3805 = vmatmul.mubr.f32.vlgmr.msra.gmra.mrb[2].mxu1 %v4402_v17 }
  0xd6   :  { %4072 = vmatpush3.bf16.msra.mxu1 %v4529_v25  ;;  %3826 = vmatprep.mubr.msk.f32.mxu1 %vm4401_vm0, %v4402_v17 }
  0xd7   :  { %4073 = vmatprep.subr.bf16.mxu1 %v4400_v16 }
  0xda   :  { %4075 = vmatpush3.bf16.msra.mxu1 %v4539_v30 }
  0xdb   :  { %4082 = vmatprep.subr.bf16.mxu1 %v4400_v16 }
 0x19e   :  { %v3773_v33 = vpop.f32.mrb[0].mxu0  ;;  %v1029_v34 = vpop.f32.mrb[0].mxu1 }
 0x19f   :  { %v4558_v35 = vadd.f32 %v3773_v33, %v3579_v32  ;;  %v946_v36 = vpop.f32.mrb[1].mxu0  ;;  %v3784_v37 = vpop.f32.mrb[1].mxu1 }
 0x1a0   :  { %v4560_v38 = vadd.f32 %v3579_v32, %v946_v36 }
 0x1a2   :  { %v1033_v39 = vadd.f32 %v1029_v34, %v4560_v38 }
 0x1a4   :  { %v3582_v40 = vmul.f32 -1.442695, %v1033_v39 }
 0x1a6   :  { %4200 = vpow2.f32 %v3582_v40 }
 0x1a7   :  { %4202 = vtanh.f32 %v1033_v39 }
 0x1a8   :  { %v1232_v6 = vpop.f32.mrb[2].mxu1 }
 0x1a9   :  { %v3806_v7 = vpop.f32.mrb[3].mxu1 }
 0x1b0   :  { %v4201_v41 = vpop.eup %4200 }
 0x1b1   :  { %v1038_v43 = vadd.f32 1.0, %v4201_v41  ;;  %v4203_v46 = vpop.eup %4202 }
 0x1b3   :  { %4204 = vrcp.f32 %v1038_v43 }
 0x1bd   :  { %v4205_v47 = vpop.eup %4204 }
 0x1be   :  { %v1041_v48 = vsel %vm4563_vm4, %v4203_v46, %v4205_v47 }
 0x1bf   :  { %1044 = vrot.lane.b32.xlu0 %v1041_v48, %s4403_s5  ;;  %v1042_v51 = vmul.f32 0.0, %v1041_v48 }
 0x231   :  { %v1045_v49 = vpop.permute.xlu0 %1044 }
 0x232   :  { %v1047_v50 = vmul.f32 %v1045_v49, %v1041_v48 }
 0x234   :  { %1049 = vrot.lane.b32.xlu0 %v1047_v50, %s4404_s26 }
 0x2a6   :  { %v1050_v52 = vpop.permute.xlu0 %1049 }
 0x2a7   :  { %v4571_v53 = vadd.f32 %v1050_v52, %v1042_v51 }
 0x2a9   :  { %4206 = vtanh.f32 %v4571_v53  ;;  %v1147_v39 = vrot.slane %v4571_v53, 6 }
 0x2b3   :  { %v4207_v54 = vpop.eup %4206 }
 0x2b4   :  { %1055 = vrot.lane.b32.xlu1 %v4207_v54, %s4403_s5 }
 0x326   :  { %v1056_v61 = vpop.permute.xlu1 %1055 }
 0x327   :  { %v1058_v62 = vmul.f32 %v1056_v61, %v1041_v48 }
 0x329   :  { %1060 = vrot.lane.b32.xlu1 %v1058_v62, %s4404_s26 }
 0x39b   :  { %v1061_v4 = vpop.permute.xlu1 %1060 }
 0x39c   :  { %3794 = vmatmul.mubr.msk.f32.vlgmr.msra.gmra.mrb[2].mxu0 %vm873_vm1, %v1061_v4 }
 0x39d   :  { %4066 = vmatpush3.bf16.msra.mxu0 %v4609_v1  ;;  %3815 = vmatprep.mubr.msk.f32.mxu0 %vm4401_vm0, %v4402_v17 }
 0x39e   :  { %4067 = vmatprep.subr.bf16.mxu0 %v4400_v16 }
 0x3a1   :  { %4069 = vmatpush3.bf16.msra.mxu0 %v4619_v5 }
 0x3a2   :  { %4076 = vmatprep.subr.bf16.mxu0 %v4400_v16 }
 0x3a4   :  { %3816 = vmatmul.mubr.msk.f32.vlgmr.msra.gmra.mrb[4].mxu0 %vm873_vm1, %v1061_v4 }
 0x3a5   :  { %4078 = vmatpush3.bf16.msra.mxu0 %v4581_v57  ;;  %3837 = vmatprep.mubr.msk.f32.mxu0 %vm4401_vm0, %v4402_v17 }
 0x3a6   :  { %4079 = vmatprep.subr.bf16.mxu0 %v4400_v16 }
 0x3a9   :  { %4081 = vmatpush3.bf16.msra.mxu0 %v4591_v60 }
 0x3aa   :  { %4088 = vmatprep.subr.bf16.mxu0 %v4400_v16 }
 0x46f   :  { %v1130_v8 = vpop.f32.mrb[2].mxu0 }
 0x470   :  { %v1135_v9 = vrot.slane %v1130_v8, 6  ;;  %v3795_v10 = vpop.f32.mrb[3].mxu0 }
 0x472   :  { %v1137_v11 = vadd.f32 %v1135_v9, %v4560_v38 }
 0x474   :  { %v3584_v12 = vmul.f32 -1.442695, %v1137_v11 }
 0x476   :  { %4208 = vpow2.f32 %v3584_v12 }
 0x477   :  { %v1302_v14 = vpop.f32.mrb[4].mxu0 }
 0x478   :  { %v1303_v15 = vadd.f32 %v1302_v14, %v1232_v6  ;;  %v3817_v18 = vpop.f32.mrb[5].mxu0 }
 0x47a   :  { %v1312_v19 = vadd.f32 %v4637_v13, %v1303_v15 }
 0x47c   :  { %v3587_v20 = vmul.f32 -1.442695, %v1312_v19 }
 0x47e   :  { %4210 = vpow2.f32 %v3587_v20 }
 0x47f   :  { %4212 = vtanh.f32 %v1137_v11 }
 0x480   :  { %v4209_v21 = vpop.eup %4208 }
 0x481   :  { %v1142_v22 = vadd.f32 1.0, %v4209_v21 }
 0x483   :  { %4214 = vrcp.f32 %v1142_v22 }
 0x484   :  { %4216 = vtanh.f32 %v1312_v19 }
 0x488   :  { %v4211_v23 = vpop.eup %4210 }
 0x489   :  { %v1317_v24 = vadd.f32 1.0, %v4211_v23  ;;  %v4213_v26 = vpop.eup %4212 }
 0x48b   :  { %4218 = vrcp.f32 %v1317_v24 }
 0x48d   :  { %v4215_v27 = vpop.eup %4214 }
 0x48e   :  { %v1145_v28 = vsel %vm4563_vm4, %v4213_v26, %v4215_v27  ;;  %v4217_v29 = vpop.eup %4216 }
 0x48f   :  { %1151 = vrot.lane.b32.xlu0 %v1145_v28, %s4403_s5  ;;  %v1149_v40 = vmul.f32 %v1147_v39, %v1145_v28 }
 0x495   :  { %v4219_v31 = vpop.eup %4218 }
 0x496   :  { %v1320_v32 = vsel %vm4563_vm4, %v4217_v29, %v4219_v31 }
 0x497   :  { %1323 = vrot.lane.b32.xlu1 %v1320_v32, %s4403_s5  ;;  %v1321_v43 = vmul.f32 0.0, %v1320_v32 }
 0x501   :  { %v1152_v33 = vpop.permute.xlu0 %1151 }
 0x502   :  { %v1154_v34 = vmul.f32 %v1152_v33, %v1145_v28 }
 0x504   :  { %1156 = vrot.lane.b32.xlu0 %v1154_v34, %s4404_s26 }
 0x509   :  { %v1324_v36 = vpop.permute.xlu1 %1323 }
 0x50a   :  { %v1326_v37 = vmul.f32 %v1324_v36, %v1320_v32 }
 0x50c   :  { %1328 = vrot.lane.b32.xlu1 %v1326_v37, %s4404_s26 }
 0x576   :  { %v1157_v41 = vpop.permute.xlu0 %1156 }
 0x577   :  { %v4649_v42 = vadd.f32 %v1157_v41, %v1149_v40 }
 0x579   :  { %4220 = vtanh.f32 %v4649_v42  ;;  %v1434_v26 = vrot.slane %v4649_v42, 6 }
 0x57e   :  { %v1329_v44 = vpop.permute.xlu1 %1328 }
 0x57f   :  { %v4652_v46 = vadd.f32 %v1329_v44, %v1321_v43 }
 0x581   :  { %4222 = vtanh.f32 %v4652_v46 }
 0x583   :  { %v4221_v47 = vpop.eup %4220 }
 0x584   :  { %1162 = vrot.lane.b32.xlu0 %v4221_v47, %s4403_s5 }
 0x58b   :  { %v4223_v48 = vpop.eup %4222 }
 0x58c   :  { %1334 = vrot.lane.b32.xlu1 %v4223_v48, %s4403_s5 }
 0x5f6   :  { %v1163_v49 = vpop.permute.xlu0 %1162 }
 0x5f7   :  { %v1165_v50 = vmul.f32 %v1163_v49, %v1145_v28 }
 0x5f9   :  { %v1346_v51 = vrot.slane %v1165_v50, 2 }
 0x5fb   :  { %1347 = vrot.lane.b32.xlu0 %v1346_v51, %s4404_s26 }
 0x5fe   :  { %v1335_v52 = vpop.permute.xlu1 %1334 }
 0x5ff   :  { %v4658_v53 = vmul.f32 %v1335_v52, %v1320_v32 }
 0x601   :  { %1454 = vrot.lane.b32.xlu1 %v4658_v53, %s4404_s26 }
 0x66d   :  { %v1348_v54 = vpop.permute.xlu0 %1347 }
 0x66e   :  { %3827 = vmatmul.mubr.msk.f32.vlgmr.msra.gmra.mrb[4].mxu1 %vm873_vm1, %v1348_v54 }
 0x66f   :  { %4084 = vmatpush3.bf16.msra.mxu1 %v4609_v1  ;;  %3848 = vmatprep.mubr.msk.f32.mxu1 %vm4401_vm0, %v4402_v17 }
 0x670   :  { %4085 = vmatprep.subr.bf16.mxu1 %v4400_v16 }
 0x673   :  { %4087 = vmatpush3.bf16.msra.mxu1 %v4619_v5  ;;  %v1455_v55 = vpop.permute.xlu1 %1454 }
 0x674   :  { %3838 = vmatmul.mubr.msk.f32.vlgmr.msra.gmra.mrb[6].mxu0 %vm873_vm1, %v1455_v55  ;;  %4094 = vmatprep.subr.bf16.mxu1 %v4400_v16 }
 0x675   :  { %4090 = vmatpush3.bf16.msra.mxu0 %v4529_v25  ;;  %3859 = vmatprep.mubr.msk.f32.mxu0 %vm4401_vm0, %v4402_v17 }
 0x676   :  { %3849 = vmatmul.mubr.msk.f32.vlgmr.msra.gmra.mrb[6].mxu1 %vm873_vm1, %v1348_v54  ;;  %4091 = vmatprep.subr.bf16.mxu0 %v4400_v16 }
 0x677   :  { %4096 = vmatpush3.bf16.msra.mxu1 %v4581_v57  ;;  %3870 = vmatprep.mubr.msk.f32.mxu1 %vm4401_vm0, %v4402_v17 }
 0x678   :  { %4097 = vmatprep.subr.bf16.mxu1 %v4400_v16 }
 0x679   :  { %4093 = vmatpush3.bf16.msra.mxu0 %v4539_v30 }
 0x67a   :  { %4100 = vmatprep.subr.bf16.mxu0 %v4400_v16 }
 0x67b   :  { %4099 = vmatpush3.bf16.msra.mxu1 %v4591_v60 }
 0x67c   :  { %4106 = vmatprep.subr.bf16.mxu1 %v4400_v16 }
 0x741   :  { %v1417_v56 = vpop.f32.mrb[4].mxu1 }
 0x742   :  { %v1422_v58 = vrot.slane %v1417_v56, 4  ;;  %v3828_v59 = vpop.f32.mrb[5].mxu1 }
 0x744   :  { %v1424_v61 = vadd.f32 %v1422_v58, %v4560_v38 }
 0x746   :  { %v3589_v62 = vmul.f32 -1.442695, %v1424_v61 }
 0x747   :  { %v1524_v63 = vpop.f32.mrb[6].mxu0 }
 0x748   :  { %4224 = vpow2.f32 %v3589_v62  ;;  %v3839_v0 = vpop.f32.mrb[7].mxu0 }
 0x749   :  { %v1594_v2 = vpop.f32.mrb[6].mxu1 }
 0x74a   :  { %v1595_v3 = vadd.f32 %v1594_v2, %v1524_v63  ;;  %v3850_v4 = vpop.f32.mrb[7].mxu1 }
 0x74c   :  { %v1598_v6 = vadd.f32 %v4637_v13, %v1595_v3 }
 0x74e   :  { %v3592_v7 = vmul.f32 -1.442695, %v1598_v6 }
 0x750   :  { %4226 = vpow2.f32 %v3592_v7 }
 0x751   :  { %4228 = vtanh.f32 %v1424_v61 }
 0x752   :  { %v4225_v8 = vpop.eup %4224 }
 0x753   :  { %v1429_v9 = vadd.f32 1.0, %v4225_v8 }
 0x755   :  { %4230 = vrcp.f32 %v1429_v9 }
 0x756   :  { %4232 = vtanh.f32 %v1598_v6 }
 0x75a   :  { %v4227_v10 = vpop.eup %4226 }
 0x75b   :  { %v1603_v11 = vadd.f32 1.0, %v4227_v10  ;;  %v4229_v12 = vpop.eup %4228 }
 0x75d   :  { %4234 = vrcp.f32 %v1603_v11 }
 0x75f   :  { %v4231_v14 = vpop.eup %4230 }
 0x760   :  { %v1432_v15 = vsel %vm4563_vm4, %v4229_v12, %v4231_v14  ;;  %v4233_v18 = vpop.eup %4232 }
 0x761   :  { %1438 = vrot.lane.b32.xlu0 %v1432_v15, %s4403_s5  ;;  %v1436_v27 = vmul.f32 %v1434_v26, %v1432_v15 }
 0x767   :  { %v4235_v19 = vpop.eup %4234 }
 0x768   :  { %v1606_v20 = vsel %vm4563_vm4, %v4233_v18, %v4235_v19 }
 0x769   :  { %1609 = vrot.lane.b32.xlu1 %v1606_v20, %s4403_s5  ;;  %v1607_v31 = vmul.f32 %v1606_v20, %v4652_v46 }
 0x7d3   :  { %v1439_v21 = vpop.permute.xlu0 %1438 }
 0x7d4   :  { %v1441_v22 = vmul.f32 %v1439_v21, %v1432_v15 }
 0x7d6   :  { %1443 = vrot.lane.b32.xlu0 %v1441_v22, %s4404_s26 }
 0x7db   :  { %v1610_v23 = vpop.permute.xlu1 %1609 }
 0x7dc   :  { %v1612_v24 = vmul.f32 %v1610_v23, %v1606_v20 }
 0x7de   :  { %1614 = vrot.lane.b32.xlu1 %v1612_v24, %s4404_s26 }
 0x848   :  { %v1444_v28 = vpop.permute.xlu0 %1443 }
 0x849   :  { %v4694_v29 = vadd.f32 %v1444_v28, %v1436_v27 }
 0x84b   :  { %4236 = vtanh.f32 %v4694_v29  ;;  %v1720_v12 = vrot.slane %v4694_v29, 6 }
 0x850   :  { %v1615_v32 = vpop.permute.xlu1 %1614 }
 0x851   :  { %v4698_v33 = vadd.f32 %v1615_v32, %v1607_v31 }
 0x853   :  { %4238 = vtanh.f32 %v4698_v33 }
 0x855   :  { %v4237_v34 = vpop.eup %4236 }
 0x856   :  { %1449 = vrot.lane.b32.xlu0 %v4237_v34, %s4403_s5 }
 0x85d   :  { %v4239_v36 = vpop.eup %4238 }
 0x85e   :  { %1620 = vrot.lane.b32.xlu1 %v4239_v36, %s4403_s5 }
 0x8c8   :  { %v1450_v37 = vpop.permute.xlu0 %1449 }
 0x8c9   :  { %v1452_v39 = vmul.f32 %v1450_v37, %v1432_v15 }
 0x8cb   :  { %v1632_v40 = vrot.slane %v1452_v39, 4 }
 0x8cd   :  { %1633 = vrot.lane.b32.xlu0 %v1632_v40, %s4404_s26 }
 0x8d0   :  { %v1621_v41 = vpop.permute.xlu1 %1620 }
 0x8d1   :  { %v4704_v42 = vmul.f32 %v1621_v41, %v1606_v20 }
 0x8d3   :  { %1740 = vrot.lane.b32.xlu1 %v4704_v42, %s4404_s26 }
 0x93f   :  { %v1634_v43 = vpop.permute.xlu0 %1633 }
 0x940   :  { %3860 = vmatmul.mubr.msk.f32.vlgmr.msra.gmra.mrb[8].mxu0 %vm873_vm1, %v1634_v43 }
 0x941   :  { %4102 = vmatpush3.bf16.msra.mxu0 %v4609_v1  ;;  %3881 = vmatprep.mubr.msk.f32.mxu0 %vm4401_vm0, %v4402_v17 }
 0x942   :  { %4103 = vmatprep.subr.bf16.mxu0 %v4400_v16 }
 0x945   :  { %4105 = vmatpush3.bf16.msra.mxu0 %v4619_v5  ;;  %v1741_v44 = vpop.permute.xlu1 %1740 }
 0x946   :  { %3871 = vmatmul.mubr.msk.f32.vlgmr.msra.gmra.mrb[8].mxu1 %vm873_vm1, %v1741_v44  ;;  %4112 = vmatprep.subr.bf16.mxu0 %v4400_v16 }
 0x947   :  { %4108 = vmatpush3.bf16.msra.mxu1 %v4529_v25  ;;  %3892 = vmatprep.mubr.msk.f32.mxu1 %vm4401_vm0, %v4402_v17 }
 0x948   :  { %3882 = vmatmul.mubr.msk.f32.vlgmr.msra.gmra.mrb[10].mxu0 %vm873_vm1, %v1634_v43  ;;  %4109 = vmatprep.subr.bf16.mxu1 %v4400_v16 }
 0x949   :  { %4114 = vmatpush3.bf16.msra.mxu0 %v4581_v57  ;;  %3903 = vmatprep.mubr.msk.f32.mxu0 %vm4401_vm0, %v4402_v17 }
 0x94a   :  { %4115 = vmatprep.subr.bf16.mxu0 %v4400_v16 }
 0x94b   :  { %4111 = vmatpush3.bf16.msra.mxu1 %v4539_v30 }
 0x94c   :  { %4118 = vmatprep.subr.bf16.mxu1 %v4400_v16 }
 0x94d   :  { %4117 = vmatpush3.bf16.msra.mxu0 %v4591_v60 }
 0x94e   :  { %4124 = vmatprep.subr.bf16.mxu0 %v4400_v16 }
 0xa13   :  { %v1703_v46 = vpop.f32.mrb[8].mxu0 }
 0xa14   :  { %v1708_v47 = vrot.slane %v1703_v46, 2  ;;  %v3861_v48 = vpop.f32.mrb[9].mxu0 }
 0xa16   :  { %v1710_v49 = vadd.f32 %v1708_v47, %v4560_v38 }
 0xa18   :  { %v3594_v50 = vmul.f32 -1.442695, %v1710_v49 }
 0xa19   :  { %v1810_v51 = vpop.f32.mrb[8].mxu1 }
 0xa1a   :  { %4240 = vpow2.f32 %v3594_v50  ;;  %v3872_v52 = vpop.f32.mrb[9].mxu1 }
 0xa1b   :  { %v1880_v54 = vpop.f32.mrb[10].mxu0 }
 0xa1c   :  { %v1881_v55 = vadd.f32 %v1880_v54, %v1810_v51  ;;  %v3883_v56 = vpop.f32.mrb[11].mxu0 }
 0xa1e   :  { %v1884_v58 = vadd.f32 %v4637_v13, %v1881_v55 }
 0xa20   :  { %v3597_v59 = vmul.f32 -1.442695, %v1884_v58 }
 0xa22   :  { %4242 = vpow2.f32 %v3597_v59 }
 0xa23   :  { %4244 = vtanh.f32 %v1710_v49 }
 0xa24   :  { %v4241_v61 = vpop.eup %4240 }
 0xa25   :  { %v1715_v62 = vadd.f32 1.0, %v4241_v61 }
 0xa27   :  { %4246 = vrcp.f32 %v1715_v62 }
 0xa28   :  { %4248 = vtanh.f32 %v1884_v58 }
 0xa2c   :  { %v4243_v63 = vpop.eup %4242 }
 0xa2d   :  { %v1889_v0 = vadd.f32 1.0, %v4243_v63  ;;  %v4245_v38 = vpop.eup %4244 }
 0xa2f   :  { %4250 = vrcp.f32 %v1889_v0 }
 0xa31   :  { %v4247_v2 = vpop.eup %4246 }
 0xa32   :  { %v1718_v3 = vsel %vm4563_vm4, %v4245_v38, %v4247_v2  ;;  %v4249_v4 = vpop.eup %4248 }
 0xa33   :  { %1724 = vrot.lane.b32.xlu0 %v1718_v3, %s4403_s5  ;;  %v1722_v14 = vmul.f32 %v1720_v12, %v1718_v3 }
 0xa39   :  { %v4251_v6 = vpop.eup %4250 }
 0xa3a   :  { %v1892_v7 = vsel %vm4563_vm4, %v4249_v4, %v4251_v6 }
 0xa3b   :  { %1895 = vrot.lane.b32.xlu1 %v1892_v7, %s4403_s5  ;;  %v1893_v19 = vmul.f32 %v1892_v7, %v4698_v33 }
 0xaa5   :  { %v1725_v8 = vpop.permute.xlu0 %1724 }
 0xaa6   :  { %v1727_v9 = vmul.f32 %v1725_v8, %v1718_v3 }
 0xaa8   :  { %1729 = vrot.lane.b32.xlu0 %v1727_v9, %s4404_s26 }
 0xaad   :  { %v1896_v10 = vpop.permute.xlu1 %1895 }
 0xaae   :  { %v1898_v11 = vmul.f32 %v1896_v10, %v1892_v7 }
 0xab0   :  { %1900 = vrot.lane.b32.xlu1 %v1898_v11, %s4404_s26 }
 0xb1a   :  { %v1730_v15 = vpop.permute.xlu0 %1729 }
 0xb1b   :  { %v4740_v18 = vadd.f32 %v1730_v15, %v1722_v14 }
 0xb1d   :  { %4252 = vtanh.f32 %v4740_v18  ;;  %v2003_v38 = vrot.slane %v4740_v18, 6 }
 0xb22   :  { %v1901_v20 = vpop.permute.xlu1 %1900 }
 0xb23   :  { %v4744_v21 = vadd.f32 %v1901_v20, %v1893_v19 }
 0xb25   :  { %4254 = vtanh.f32 %v4744_v21 }
 0xb27   :  { %v4253_v22 = vpop.eup %4252 }
 0xb28   :  { %1735 = vrot.lane.b32.xlu0 %v4253_v22, %s4403_s5 }
 0xb2f   :  { %v4255_v23 = vpop.eup %4254 }
 0xb30   :  { %1906 = vrot.lane.b32.xlu1 %v4255_v23, %s4403_s5 }
 0xb9a   :  { %v1736_v24 = vpop.permute.xlu0 %1735 }
 0xb9b   :  { %v1738_v26 = vmul.f32 %v1736_v24, %v1718_v3 }
 0xb9d   :  { %v1918_v27 = vrot.slane %v1738_v26, 6 }
 0xb9f   :  { %1919 = vrot.lane.b32.xlu0 %v1918_v27, %s4404_s26 }
 0xba2   :  { %v1907_v28 = vpop.permute.xlu1 %1906 }
 0xba3   :  { %v4750_v29 = vmul.f32 %v1907_v28, %v1892_v7 }
 0xba5   :  { %2023 = vrot.lane.b32.xlu1 %v4750_v29, %s4404_s26 }
 0xc11   :  { %v1920_v31 = vpop.permute.xlu0 %1919 }
 0xc12   :  { %3893 = vmatmul.mubr.msk.f32.vlgmr.msra.gmra.mrb[10].mxu1 %vm873_vm1, %v1920_v31 }
 0xc13   :  { %4120 = vmatpush3.bf16.msra.mxu1 %v4609_v1  ;;  %3914 = vmatprep.mubr.msk.f32.mxu1 %vm4401_vm0, %v4402_v17 }
 0xc14   :  { %4121 = vmatprep.subr.bf16.mxu1 %v4400_v16 }
 0xc17   :  { %4123 = vmatpush3.bf16.msra.mxu1 %v4619_v5  ;;  %v2024_v32 = vpop.permute.xlu1 %2023 }
 0xc18   :  { %3904 = vmatmul.mubr.msk.f32.vlgmr.msra.gmra.mrb[12].mxu0 %vm873_vm1, %v2024_v32  ;;  %4130 = vmatprep.subr.bf16.mxu1 %v4400_v16 }
 0xc19   :  { %4126 = vmatpush3.bf16.msra.mxu0 %v4529_v25  ;;  %3925 = vmatprep.mubr.msk.f32.mxu0 %vm4401_vm0, %v4402_v17 }
 0xc1a   :  { %3915 = vmatmul.mubr.msk.f32.vlgmr.msra.gmra.mrb[12].mxu1 %vm873_vm1, %v1920_v31  ;;  %4127 = vmatprep.subr.bf16.mxu0 %v4400_v16 }
 0xc1b   :  { %4132 = vmatpush3.bf16.msra.mxu1 %v4581_v57  ;;  %3936 = vmatprep.mubr.msk.f32.mxu1 %vm4401_vm0, %v4402_v17 }
 0xc1c   :  { %4133 = vmatprep.subr.bf16.mxu1 %v4400_v16 }
 0xc1d   :  { %4129 = vmatpush3.bf16.msra.mxu0 %v4539_v30 }
 0xc1e   :  { %4136 = vmatprep.subr.bf16.mxu0 %v4400_v16 }
 0xc1f   :  { %4135 = vmatpush3.bf16.msra.mxu1 %v4591_v60 }
 0xc20   :  { %4142 = vmatprep.subr.bf16.mxu1 %v4400_v16 }
 0xce5   :  { %v1989_v33 = vpop.f32.mrb[10].mxu1 }
 0xce6   :  { %v1993_v34 = vadd.f32 %v1989_v33, %v4558_v35  ;;  %v3894_v36 = vpop.f32.mrb[11].mxu1 }
 0xce8   :  { %v3599_v37 = vmul.f32 -1.442695, %v1993_v34 }
 0xcea   :  { %4256 = vpow2.f32 %v3599_v37 }
 0xceb   :  { %v2093_v39 = vpop.f32.mrb[12].mxu0 }
 0xcec   :  { %v3905_v40 = vpop.f32.mrb[13].mxu0 }
 0xced   :  { %v2163_v41 = vpop.f32.mrb[12].mxu1 }
 0xcee   :  { %v2164_v43 = vadd.f32 %v2163_v41, %v2093_v39  ;;  %v3916_v44 = vpop.f32.mrb[13].mxu1 }
 0xcf0   :  { %v2167_v46 = vadd.f32 %v4637_v13, %v2164_v43 }
 0xcf2   :  { %v3602_v47 = vmul.f32 -1.442695, %v2167_v46 }
 0xcf4   :  { %v4257_v48 = vpop.eup %4256  ;;  %4258 = vpow2.f32 %v3602_v47 }
 0xcf5   :  { %v1998_v49 = vadd.f32 1.0, %v4257_v48  ;;  %4260 = vtanh.f32 %v1993_v34 }
 0xcf7   :  { %4262 = vrcp.f32 %v1998_v49 }
 0xcf8   :  { %4264 = vtanh.f32 %v2167_v46 }
 0xcfe   :  { %v4259_v50 = vpop.eup %4258 }
 0xcff   :  { %v2172_v51 = vadd.f32 1.0, %v4259_v50  ;;  %v4261_v52 = vpop.eup %4260 }
 0xd01   :  { %v4263_v54 = vpop.eup %4262  ;;  %4266 = vrcp.f32 %v2172_v51 }
 0xd02   :  { %v2001_v55 = vsel %vm4563_vm4, %v4261_v52, %v4263_v54  ;;  %v4265_v56 = vpop.eup %4264 }
 0xd03   :  { %2007 = vrot.lane.b32.xlu0 %v2001_v55, %s4403_s5  ;;  %v2005_v2 = vmul.f32 %v2003_v38, %v2001_v55 }
 0xd0b   :  { %v4267_v58 = vpop.eup %4266 }
 0xd0c   :  { %v2175_v59 = vsel %vm4563_vm4, %v4265_v56, %v4267_v58 }
 0xd0d   :  { %2178 = vrot.lane.b32.xlu1 %v2175_v59, %s4403_s5  ;;  %v2176_v6 = vmul.f32 %v2175_v59, %v4744_v21 }
 0xd75   :  { %v2008_v61 = vpop.permute.xlu0 %2007 }
 0xd76   :  { %v2010_v62 = vmul.f32 %v2008_v61, %v2001_v55 }
 0xd78   :  { %2012 = vrot.lane.b32.xlu0 %v2010_v62, %s4404_s26 }
 0xd7f   :  { %v2179_v63 = vpop.permute.xlu1 %2178 }
 0xd80   :  { %v2181_v0 = vmul.f32 %v2179_v63, %v2175_v59 }
 0xd82   :  { %2183 = vrot.lane.b32.xlu1 %v2181_v0, %s4404_s26 }
 0xdea   :  { %v2013_v3 = vpop.permute.xlu0 %2012 }
 0xdeb   :  { %v4786_v4 = vadd.f32 %v2013_v3, %v2005_v2 }
 0xded   :  { %4268 = vtanh.f32 %v4786_v4  ;;  %v2288_v54 = vrot.slane %v4786_v4, 6 }
 0xdf4   :  { %v2184_v7 = vpop.permute.xlu1 %2183 }
 0xdf5   :  { %v4790_v8 = vadd.f32 %v2184_v7, %v2176_v6 }
 0xdf7   :  { %v4269_v9 = vpop.eup %4268  ;;  %4270 = vtanh.f32 %v4790_v8 }
 0xdf8   :  { %2018 = vrot.lane.b32.xlu0 %v4269_v9, %s4403_s5 }
 0xe01   :  { %v4271_v10 = vpop.eup %4270 }
 0xe02   :  { %2189 = vrot.lane.b32.xlu1 %v4271_v10, %s4403_s5 }
 0xe6a   :  { %v2019_v11 = vpop.permute.xlu0 %2018 }
 0xe6b   :  { %v2021_v12 = vmul.f32 %v2019_v11, %v2001_v55 }
 0xe6d   :  { %2201 = vrot.lane.b32.xlu0 %v2021_v12, %s4404_s26 }
 0xe74   :  { %v2190_v14 = vpop.permute.xlu1 %2189 }
 0xe75   :  { %v4796_v15 = vmul.f32 %v2190_v14, %v2175_v59 }
 0xe77   :  { %2308 = vrot.lane.b32.xlu1 %v4796_v15, %s4404_s26 }
 0xedf   :  { %v2202_v18 = vpop.permute.xlu0 %2201 }
 0xee0   :  { %3926 = vmatmul.mubr.msk.f32.vlgmr.msra.gmra.mrb[14].mxu0 %vm873_vm1, %v2202_v18 }
 0xee1   :  { %4138 = vmatpush3.bf16.msra.mxu0 %v4609_v1  ;;  %3947 = vmatprep.mubr.msk.f32.mxu0 %vm4401_vm0, %v4402_v17 }
 0xee2   :  { %4139 = vmatprep.subr.bf16.mxu0 %v4400_v16 }
 0xee5   :  { %4141 = vmatpush3.bf16.msra.mxu0 %v4619_v5 }
 0xee6   :  { %4148 = vmatprep.subr.bf16.mxu0 %v4400_v16 }
 0xee8   :  { %3948 = vmatmul.mubr.msk.f32.vlgmr.msra.gmra.mrb[16].mxu0 %vm873_vm1, %v2202_v18 }
 0xee9   :  { %v2309_v19 = vpop.permute.xlu1 %2308  ;;  %4150 = vmatpush3.bf16.msra.mxu0 %v4581_v57  ;;  %3969 = vmatprep.mubr.msk.f32.mxu0 %vm4401_vm0, %v4402_v17 }
 0xeea   :  { %3937 = vmatmul.mubr.msk.f32.vlgmr.msra.gmra.mrb[14].mxu1 %vm873_vm1, %v2309_v19  ;;  %4151 = vmatprep.subr.bf16.mxu0 %v4400_v16 }
 0xeeb   :  { %4144 = vmatpush3.bf16.msra.mxu1 %v4529_v25  ;;  %3958 = vmatprep.mubr.msk.f32.mxu1 %vm4401_vm0, %v4402_v17 }
 0xeec   :  { %4145 = vmatprep.subr.bf16.mxu1 %v4400_v16 }
 0xeed   :  { %4153 = vmatpush3.bf16.msra.mxu0 %v4591_v60 }
 0xeee   :  { %4160 = vmatprep.subr.bf16.mxu0 %v4400_v16 }
 0xeef   :  { %4147 = vmatpush3.bf16.msra.mxu1 %v4539_v30 }
 0xef0   :  { %4154 = vmatprep.subr.bf16.mxu1 %v4400_v16 }
 0xfb3   :  { %v2271_v20 = vpop.f32.mrb[14].mxu0 }
 0xfb4   :  { %v2276_v21 = vrot.slane %v2271_v20, 6  ;;  %v3927_v22 = vpop.f32.mrb[15].mxu0 }
 0xfb6   :  { %v2278_v23 = vadd.f32 %v2276_v21, %v4558_v35 }
 0xfb8   :  { %v3604_v24 = vmul.f32 -1.442695, %v2278_v23 }
 0xfba   :  { %4272 = vpow2.f32 %v3604_v24 }
 0xfbb   :  { %v2448_v26 = vpop.f32.mrb[16].mxu0 }
 0xfbc   :  { %v3949_v27 = vpop.f32.mrb[17].mxu0 }
 0xfbd   :  { %v2378_v28 = vpop.f32.mrb[14].mxu1 }
 0xfbe   :  { %v2449_v31 = vadd.f32 %v2448_v26, %v2378_v28  ;;  %v3938_v32 = vpop.f32.mrb[15].mxu1 }
 0xfc0   :  { %v2452_v33 = vadd.f32 %v4637_v13, %v2449_v31 }
 0xfc2   :  { %v3607_v34 = vmul.f32 -1.442695, %v2452_v33 }
 0xfc4   :  { %v4273_v36 = vpop.eup %4272  ;;  %4274 = vpow2.f32 %v3607_v34 }
 0xfc5   :  { %v2283_v37 = vadd.f32 1.0, %v4273_v36  ;;  %4276 = vtanh.f32 %v2278_v23 }
 0xfc7   :  { %4278 = vrcp.f32 %v2283_v37 }
 0xfc8   :  { %4280 = vtanh.f32 %v2452_v33 }
 0xfce   :  { %v4275_v39 = vpop.eup %4274 }
 0xfcf   :  { %v2457_v40 = vadd.f32 1.0, %v4275_v39  ;;  %v4277_v41 = vpop.eup %4276 }
 0xfd1   :  { %v4279_v43 = vpop.eup %4278  ;;  %4282 = vrcp.f32 %v2457_v40 }
 0xfd2   :  { %v2286_v44 = vsel %vm4563_vm4, %v4277_v41, %v4279_v43  ;;  %v4281_v46 = vpop.eup %4280 }
 0xfd3   :  { %2292 = vrot.lane.b32.xlu0 %v2286_v44, %s4403_s5  ;;  %v2290_v55 = vmul.f32 %v2288_v54, %v2286_v44 }
 0xfdb   :  { %v4283_v47 = vpop.eup %4282 }
 0xfdc   :  { %v2460_v48 = vsel %vm4563_vm4, %v4281_v46, %v4283_v47 }
 0xfdd   :  { %2463 = vrot.lane.b32.xlu1 %v2460_v48, %s4403_s5  ;;  %v2461_v59 = vmul.f32 %v2460_v48, %v4790_v8 }
0x1045   :  { %v2293_v49 = vpop.permute.xlu0 %2292 }
0x1046   :  { %v2295_v50 = vmul.f32 %v2293_v49, %v2286_v44 }
0x1048   :  { %2297 = vrot.lane.b32.xlu0 %v2295_v50, %s4404_s26 }
0x104f   :  { %v2464_v51 = vpop.permute.xlu1 %2463 }
0x1050   :  { %v2466_v52 = vmul.f32 %v2464_v51, %v2460_v48 }
0x1052   :  { %2468 = vrot.lane.b32.xlu1 %v2466_v52, %s4404_s26 }
0x10ba   :  { %v2298_v56 = vpop.permute.xlu0 %2297 }
0x10bb   :  { %v4832_v58 = vadd.f32 %v2298_v56, %v2290_v55 }
0x10bd   :  { %4284 = vtanh.f32 %v4832_v58  ;;  %v2574_v43 = vrot.slane %v4832_v58, 6 }
0x10c4   :  { %v2469_v61 = vpop.permute.xlu1 %2468 }
0x10c5   :  { %v4836_v62 = vadd.f32 %v2469_v61, %v2461_v59 }
0x10c7   :  { %v4285_v63 = vpop.eup %4284  ;;  %4286 = vtanh.f32 %v4836_v62 }
0x10c8   :  { %2303 = vrot.lane.b32.xlu0 %v4285_v63, %s4403_s5 }
0x10d1   :  { %v4287_v0 = vpop.eup %4286 }
0x10d2   :  { %2474 = vrot.lane.b32.xlu1 %v4287_v0, %s4403_s5 }
0x113a   :  { %v2304_v38 = vpop.permute.xlu0 %2303 }
0x113b   :  { %v2306_v2 = vmul.f32 %v2304_v38, %v2286_v44 }
0x113d   :  { %v2486_v3 = vrot.slane %v2306_v2, 2 }
0x113f   :  { %2487 = vrot.lane.b32.xlu0 %v2486_v3, %s4404_s26 }
0x1144   :  { %v2475_v4 = vpop.permute.xlu1 %2474 }
0x1145   :  { %v4842_v6 = vmul.f32 %v2475_v4, %v2460_v48 }
0x1147   :  { %2594 = vrot.lane.b32.xlu1 %v4842_v6, %s4404_s26 }
0x11b1   :  { %v2488_v7 = vpop.permute.xlu0 %2487 }
0x11b2   :  { %3959 = vmatmul.mubr.msk.f32.vlgmr.msra.gmra.mrb[16].mxu1 %vm873_vm1, %v2488_v7 }
0x11b3   :  { %4156 = vmatpush3.bf16.msra.mxu1 %v4609_v1  ;;  %3980 = vmatprep.mubr.msk.f32.mxu1 %vm4401_vm0, %v4402_v17 }
0x11b4   :  { %4157 = vmatprep.subr.bf16.mxu1 %v4400_v16 }
0x11b7   :  { %4159 = vmatpush3.bf16.msra.mxu1 %v4619_v5 }
0x11b8   :  { %4166 = vmatprep.subr.bf16.mxu1 %v4400_v16 }
0x11b9   :  { %v2595_v8 = vpop.permute.xlu1 %2594 }
0x11ba   :  { %3970 = vmatmul.mubr.msk.f32.vlgmr.msra.gmra.mrb[18].mxu0 %vm873_vm1, %v2595_v8  ;;  %3981 = vmatmul.mubr.msk.f32.vlgmr.msra.gmra.mrb[18].mxu1 %vm873_vm1, %v2488_v7 }
0x11bb   :  { %4162 = vmatpush3.bf16.msra.mxu0 %v4529_v25  ;;  %4168 = vmatpush3.bf16.msra.mxu1 %v4581_v57 }
0x11bc   :  { %4163 = vmatprep.subr.bf16.mxu0 %v4400_v16  ;;  %3991 = vmatprep.mubr.msk.f32.mxu0 %vm4401_vm0, %v4402_v17 }
0x11bd   :  { %4169 = vmatprep.subr.bf16.mxu1 %v4400_v16  ;;  %4002 = vmatprep.mubr.msk.f32.mxu1 %vm4401_vm0, %v4402_v17 }
0x11bf   :  { %4165 = vmatpush3.bf16.msra.mxu0 %v4539_v30  ;;  %4171 = vmatpush3.bf16.msra.mxu1 %v4591_v60 }
0x11c0   :  { %4172 = vmatprep.subr.bf16.mxu0 %v4400_v16  ;;  %4178 = vmatprep.subr.bf16.mxu1 %v4400_v16 }
0x1285   :  { %v2557_v25 = vpop.f32.mrb[16].mxu1 }
0x1286   :  { %v2562_v9 = vrot.slane %v2557_v25, 4  ;;  %v3960_v10 = vpop.f32.mrb[17].mxu1 }
0x1288   :  { %v2564_v11 = vadd.f32 %v2562_v9, %v4558_v35 }
0x128a   :  { %v3609_v12 = vmul.f32 -1.442695, %v2564_v11 }
0x128c   :  { %4288 = vpow2.f32 %v3609_v12 }
0x128d   :  { %v2664_v14 = vpop.f32.mrb[18].mxu0  ;;  %v2734_v18 = vpop.f32.mrb[18].mxu1 }
0x128e   :  { %v2735_v19 = vadd.f32 %v2734_v18, %v2664_v14  ;;  %v3971_v20 = vpop.f32.mrb[19].mxu0  ;;  %v3982_v21 = vpop.f32.mrb[19].mxu1 }
0x1290   :  { %v2738_v30 = vadd.f32 %v4637_v13, %v2735_v19 }
0x1292   :  { %v3612_v22 = vmul.f32 -1.442695, %v2738_v30 }
0x1294   :  { %4290 = vpow2.f32 %v3612_v22 }
0x1295   :  { %4292 = vtanh.f32 %v2564_v11 }
0x1296   :  { %v4289_v23 = vpop.eup %4288 }
0x1297   :  { %v2569_v24 = vadd.f32 1.0, %v4289_v23 }
0x1299   :  { %4294 = vrcp.f32 %v2569_v24 }
0x129a   :  { %4296 = vtanh.f32 %v2738_v30 }
0x129e   :  { %v4291_v26 = vpop.eup %4290 }
0x129f   :  { %v2743_v27 = vadd.f32 1.0, %v4291_v26  ;;  %v4293_v28 = vpop.eup %4292 }
0x12a1   :  { %4298 = vrcp.f32 %v2743_v27 }
0x12a3   :  { %v4295_v31 = vpop.eup %4294 }
0x12a4   :  { %v2572_v32 = vsel %vm4563_vm4, %v4293_v28, %v4295_v31  ;;  %v4297_v33 = vpop.eup %4296 }
0x12a5   :  { %2578 = vrot.lane.b32.xlu0 %v2572_v32, %s4403_s5  ;;  %v2576_v44 = vmul.f32 %v2574_v43, %v2572_v32  ;;  %v4405_v43 = vmov 0  }
0x12a6   :  { %4198 = vset.pattern.permute.xlu0 %v4405_v43  ;;  %4199 = vset.pattern.permute.xlu1 %v4405_v43 }
0x12ab   :  { %v4299_v34 = vpop.eup %4298 }
0x12ac   :  { %v2746_v36 = vsel %vm4563_vm4, %v4297_v33, %v4299_v34 }
0x12ad   :  { %2749 = vrot.lane.b32.xlu1 %v2746_v36, %s4403_s5  ;;  %v2747_v48 = vmul.f32 %v2746_v36, %v4836_v62 }
0x1317   :  { %v2579_v37 = vpop.permute.xlu0 %2578 }
0x1318   :  { %v2581_v39 = vmul.f32 %v2579_v37, %v2572_v32 }
0x131a   :  { %2583 = vrot.lane.b32.xlu0 %v2581_v39, %s4404_s26 }
0x131f   :  { %v2750_v40 = vpop.permute.xlu1 %2749 }
0x1320   :  { %v2752_v41 = vmul.f32 %v2750_v40, %v2746_v36 }
0x1322   :  { %2754 = vrot.lane.b32.xlu1 %v2752_v41, %s4404_s26 }
0x138c   :  { %v2584_v46 = vpop.permute.xlu0 %2583 }
0x138d   :  { %v4878_v47 = vadd.f32 %v2584_v46, %v2576_v44 }
0x138f   :  { %4300 = vtanh.f32 %v4878_v47  ;;  %v2860_v30 = vrot.slane %v4878_v47, 6 }
0x1394   :  { %v2755_v49 = vpop.permute.xlu1 %2754 }
0x1395   :  { %v4882_v50 = vadd.f32 %v2755_v49, %v2747_v48 }
0x1397   :  { %4302 = vtanh.f32 %v4882_v50 }
0x1399   :  { %v4301_v51 = vpop.eup %4300 }
0x139a   :  { %2589 = vrot.lane.b32.xlu0 %v4301_v51, %s4403_s5 }
0x13a1   :  { %v4303_v52 = vpop.eup %4302 }
0x13a2   :  { %2760 = vrot.lane.b32.xlu1 %v4303_v52, %s4403_s5 }
0x140c   :  { %v2590_v54 = vpop.permute.xlu0 %2589 }
0x140d   :  { %v2592_v55 = vmul.f32 %v2590_v54, %v2572_v32  ;;  %v844_v54 = vld [vmem:[%s4968_s1] sm:$0x3]  ;;  %s4406_s1 = smov [#allocation7]  }
0x140e   :  { %vm845_vm5 = vcmp.lt.s32.totalorder %v844_v54, 1 }
0x140f   :  { %v2772_v56 = vrot.slane %v2592_v55, 4 }
0x1411   :  { %2773 = vrot.lane.b32.xlu0 %v2772_v56, %s4404_s26 }
0x1414   :  { %v2761_v58 = vpop.permute.xlu1 %2760 }
0x1415   :  { %v4888_v59 = vmul.f32 %v2761_v58, %v2746_v36  ;;  %v846_v58 = vsel %vm845_vm5, 8, %v844_v54 }
0x1416   :  { %vm847_vm6 = vcmp.lt.s32.totalorder %v846_v58, 8 }
0x1417   :  { %2880 = vrot.lane.b32.xlu1 %v4888_v59, %s4404_s26 }
0x1483   :  { %v2774_v61 = vpop.permute.xlu0 %2773 }
0x1484   :  { %3992 = vmatmul.mubr.msk.f32.vlgmr.msra.gmra.mrb[20].mxu0 %vm873_vm1, %v2774_v61 }
0x1485   :  { %4174 = vmatpush3.bf16.msra.mxu0 %v4609_v1  ;;  %4013 = vmatprep.mubr.msk.f32.mxu0 %vm4401_vm0, %v4402_v17 }
0x1486   :  { %4175 = vmatprep.subr.bf16.mxu0 %v4400_v16 }
0x1489   :  { %4177 = vmatpush3.bf16.msra.mxu0 %v4619_v5  ;;  %v2881_v62 = vpop.permute.xlu1 %2880 }
0x148a   :  { %4003 = vmatmul.mubr.msk.f32.vlgmr.msra.gmra.mrb[20].mxu1 %vm873_vm1, %v2881_v62  ;;  %4184 = vmatprep.subr.bf16.mxu0 %v4400_v16 }
0x148b   :  { %4180 = vmatpush3.bf16.msra.mxu1 %v4581_v57  ;;  %4024 = vmatprep.mubr.msk.f32.mxu1 %vm4401_vm0, %v4402_v17 }
0x148c   :  { %4014 = vmatmul.mubr.msk.f32.vlgmr.msra.gmra.mrb[22].mxu0 %vm873_vm1, %v2774_v61  ;;  %4181 = vmatprep.subr.bf16.mxu1 %v4400_v16  ;;  %v848_v61 = vsel %vm847_vm6, %v846_v58, 8 }
0x148d   :  { %4186 = vmatpush3.bf16.msra.mxu0 %v4609_v1  ;;  %4035 = vmatprep.mubr.msk.f32.mxu0 %vm4401_vm0, %v4402_v17  ;;  %vm1338_vm7 = vcmp.eq.s32.totalorder %v848_v61, 1  ;;  %vm2193_vm8 = vcmp.eq.s32.totalorder %v848_v61, 4  ;;  %vm2764_vm9 = vcmp.eq.s32.totalorder %v848_v61, 6  ;;  %vm3234_vm10 = vcmp.eq.s32.totalorder %v848_v61, 8 }
0x148e   :  { %4187 = vmatprep.subr.bf16.mxu0 %v4400_v16  ;;  %vm1624_vm11 = vcmp.eq.s32.totalorder %v848_v61, 2  ;;  %vm1910_vm12 = vcmp.eq.s32.totalorder %v848_v61, 3  ;;  %vm2478_vm13 = vcmp.eq.s32.totalorder %v848_v61, 5  ;;  %vm3050_vm14 = vcmp.eq.s32.totalorder %v848_v61, 7 }
0x148f   :  { %4183 = vmatpush3.bf16.msra.mxu1 %v4591_v60  ;;  %v1625_v45 = vsel %vm1624_vm11, 1, %v4405_v43 }
0x1491   :  { %4189 = vmatpush3.bf16.msra.mxu0 %v4619_v5 }
0x1557   :  { %v2843_v63 = vpop.f32.mrb[20].mxu0 }
0x1558   :  { %v2848_v57 = vrot.slane %v2843_v63, 2  ;;  %v3993_v0 = vpop.f32.mrb[21].mxu0 }
0x1559   :  { %v1339_v0 = vsel %vm1338_vm7, 1, %v4405_v43  ;;  %vm3245_vm7 = vcmask 254976  }
0x155a   :  { %v2850_v38 = vadd.f32 %v2848_v57, %v4558_v35 }
0x155c   :  { %v3614_v2 = vmul.f32 -1.442695, %v2850_v38 }
0x155d   :  { %v2950_v3 = vpop.f32.mrb[20].mxu1 }
0x155e   :  { %4304 = vpow2.f32 %v3614_v2  ;;  %v4004_v4 = vpop.f32.mrb[21].mxu1  ;;  %v2765_v2 = vsel %vm2764_vm9, 1, %v4405_v43 }
0x155f   :  { %v3020_v7 = vpop.f32.mrb[22].mxu0 }
0x1560   :  { %v3021_v1 = vadd.f32 %v3020_v7, %v2950_v3  ;;  %v4015_v8 = vpop.f32.mrb[23].mxu0  ;;  %v3235_v3 = vsel %vm3234_vm10, 1, %v4405_v43 }
0x1561   :  { %v2479_v8 = vsel %vm2478_vm13, 1, %v4405_v43 }
0x1562   :  { %v3024_v17 = vadd.f32 %v4637_v13, %v3021_v1  ;;  %v1911_v1 = vsel %vm1910_vm12, 1, %v4405_v43 }
0x1564   :  { %v3617_v25 = vmul.f32 -1.442695, %v3024_v17 }
0x1566   :  { %4306 = vpow2.f32 %v3617_v25 }
0x1567   :  { %4308 = vtanh.f32 %v2850_v38  ;;  %v2194_v38 = vsel %vm2193_vm8, 1, %v4405_v43 }
0x1568   :  { %v4305_v16 = vpop.eup %4304 }
0x1569   :  { %v2855_v60 = vadd.f32 1.0, %v4305_v16 }
0x156b   :  { %4310 = vrcp.f32 %v2855_v60 }
0x156c   :  { %4312 = vtanh.f32 %v3024_v17  ;;  %v3051_v17 = vsel %vm3050_vm14, 1, %v4405_v43 }
0x1570   :  { %v4307_v5 = vpop.eup %4306 }
0x1571   :  { %v3029_v9 = vadd.f32 1.0, %v4307_v5  ;;  %v4309_v35 = vpop.eup %4308 }
0x1573   :  { %4314 = vrcp.f32 %v3029_v9 }
0x1575   :  { %v4311_v10 = vpop.eup %4310 }
0x1576   :  { %v2858_v11 = vsel %vm4563_vm4, %v4309_v35, %v4311_v10  ;;  %v4313_v12 = vpop.eup %4312 }
0x1577   :  { %2864 = vrot.lane.b32.xlu0 %v2858_v11, %s4403_s5  ;;  %v2862_v22 = vmul.f32 %v2860_v30, %v2858_v11 }
0x157d   :  { %v4315_v14 = vpop.eup %4314 }
0x157e   :  { %v3032_v13 = vsel %vm4563_vm4, %v4313_v12, %v4315_v14 }
0x157f   :  { %3035 = vrot.lane.b32.xlu1 %v3032_v13, %s4403_s5  ;;  %v3033_v26 = vmul.f32 %v3032_v13, %v4882_v50  ;;  %v4328_v50 = vld [vmem:[%s4975_s8] ss:$0 sm:$0xff]  ;;  %s3253_s8 = sshll.u32 %s4406_s1, 4  ;;  %s3254_s8 = int_to_ptr.vmem [resolvable:$true] %s3253_s8 }
0x1580   :  { %s4341_s24 = scalar_lea.vmem %s3254_s8, 32  ;;  %p4346_p6 = scmp.lt.s32.totalorder %s3254_s8, %s3254_s8 }
0x1581   :  { %p4342_p5 = scmp.ne.s32.totalorder %s3254_s8, %s4341_s24  ;;  %p4347_p7 = scmp.lt.s32.totalorder %s4341_s24, %s4341_s24 }
0x1583   :  { %p4348_p8 = por %p4347_p7, %p4346_p6 }
0x1585   :  { %p4349_p9 = pnand %p4348_p8, %p4342_p5 }
0x15e9   :  { %v2865_v18 = vpop.permute.xlu0 %2864 }
0x15ea   :  { %v2867_v19 = vmul.f32 %v2865_v18, %v2858_v11 }
0x15ec   :  { %2869 = vrot.lane.b32.xlu0 %v2867_v19, %s4404_s26 }
0x15f1   :  { %v3036_v20 = vpop.permute.xlu1 %3035 }
0x15f2   :  { %v3038_v21 = vmul.f32 %v3036_v20, %v3032_v13 }
0x15f4   :  { %3040 = vrot.lane.b32.xlu1 %v3038_v21, %s4404_s26 }
0x165e   :  { %v2870_v23 = vpop.permute.xlu0 %2869 }
0x165f   :  { %v2872_v24 = vadd.f32 %v2870_v23, %v2862_v22 }
0x1661   :  { %4316 = vtanh.f32 %v2872_v24 }
0x1666   :  { %v3041_v27 = vpop.permute.xlu1 %3040 }
0x1667   :  { %v4923_v28 = vadd.f32 %v3041_v27, %v3033_v26 }
0x1669   :  { %4318 = vtanh.f32 %v4923_v28 }
0x166b   :  { %v4317_v31 = vpop.eup %4316 }
0x166c   :  { %2875 = vrot.lane.b32.xlu0 %v4317_v31, %s4403_s5 }
0x1673   :  { %v4319_v32 = vpop.eup %4318 }
0x1674   :  { %3046 = vrot.lane.b32.xlu1 %v4319_v32, %s4403_s5 }
0x16de   :  { %v2876_v33 = vpop.permute.xlu0 %2875 }
0x16df   :  { %v2878_v34 = vmul.f32 %v2876_v33, %v2858_v11 }
0x16e1   :  { %v3133_v36 = vrot.slane %v2878_v34, 6 }
0x16e3   :  { %3134 = vrot.lane.b32.xlu1 %v3133_v36, %s4404_s26 }
0x16e6   :  { %v3047_v37 = vpop.permute.xlu1 %3046 }
0x16e7   :  { %v4929_v39 = vmul.f32 %v3047_v37, %v3032_v13 }
0x16e9   :  { %3058 = vrot.lane.b32.xlu0 %v4929_v39, %s4404_s26 }
0x1755   :  { %v3135_v40 = vpop.permute.xlu1 %3134 }
0x1756   :  { %4036 = vmatmul.mubr.msk.f32.vlgmr.msra.gmra.mrb[24].mxu0 %vm873_vm1, %v3135_v40 }
0x175b   :  { %v3059_v41 = vpop.permute.xlu0 %3058 }
0x175c   :  { %4025 = vmatmul.mubr.msk.f32.vlgmr.msra.gmra.mrb[22].mxu1 %vm873_vm1, %v3059_v41 }
0x1829   :  { %v3204_v44 = vpop.f32.mrb[24].mxu0 }
0x182a   :  { %v4037_v46 = vpop.f32.mrb[25].mxu0 }
0x182f   :  { %v3128_v47 = vpop.f32.mrb[22].mxu1 }
0x1830   :  { %v3205_v48 = vadd.f32 %v3204_v44, %v3128_v47  ;;  %v4026_v49 = vpop.f32.mrb[23].mxu1 }
0x1832   :  { %v3208_v51 = vadd.f32 %v4328_v50, %v3205_v48 }
0x1834   :  { %v3620_v52 = vmul.f32 -1.442695, %v3208_v51 }
0x1836   :  { %4320 = vpow2.f32 %v3620_v52 }
0x1837   :  { %4322 = vtanh.f32 %v3208_v51 }
0x1840   :  { %v4321_v55 = vpop.eup %4320 }
0x1841   :  { %v3213_v56 = vadd.f32 1.0, %v4321_v55  ;;  %v4323_v62 = vpop.eup %4322 }
0x1843   :  { %4324 = vrcp.f32 %v3213_v56 }
0x184d   :  { %v4325_v63 = vpop.eup %4324 }
0x184e   :  { %v3216_v57 = vsel %vm4563_vm4, %v4323_v62, %v4325_v63 }
0x184f   :  { %3219 = vrot.lane.b32.xlu0 %v3216_v57, %s4403_s5  ;;  %v3217_v25 = vmul.f32 %v3216_v57, %v4923_v28 }
0x1853   :  { %1341 = vperm.xlu0 %4198, %v1339_v0  }
0x1857   :  { %2196 = vperm.xlu0 %4198, %v2194_v38  }
0x185b   :  { %2767 = vperm.xlu0 %4198, %v2765_v2  }
0x185f   :  { %3237 = vperm.xlu0 %4198, %v3235_v3  }
0x18c1   :  { %v3220_v4 = vpop.permute.xlu0 %3219 }
0x18c2   :  { %v3222_v7 = vmul.f32 %v3220_v4, %v3216_v57 }
0x18c4   :  { %3224 = vrot.lane.b32.xlu1 %v3222_v7, %s4404_s26 }
0x18c8   :  { %1627 = vperm.xlu1 %4199, %v1625_v45  }
0x18cc   :  { %1913 = vperm.xlu1 %4199, %v1911_v1  }
0x18d0   :  { %2481 = vperm.xlu1 %4199, %v2479_v8  }
0x18d2   :  { %v1342_v10 = vpop.permute.xlu0 %1341 }
0x18d3   :  { %vm1343_vm15 = vcmp.eq.s32.totalorder %v1342_v10, 1 }
0x18d4   :  { %3053 = vperm.xlu1 %4199, %v3051_v17   ;;  %v1344_v14 = vsel %vm1343_vm15, %v4658_v53, 0.0 }
0x18d6   :  { %v2197_v11 = vpop.permute.xlu0 %2196 }
0x18d7   :  { %vm2198_vm2 = vcmp.eq.s32.totalorder %v2197_v11, 1 }
0x18da   :  { %v2768_v19 = vpop.permute.xlu0 %2767 }
0x18db   :  { %vm2769_vm4 = vcmp.eq.s32.totalorder %v2768_v19, 1 }
0x18de   :  { %v3238_v22 = vpop.permute.xlu0 %3237 }
0x18df   :  { %vm3239_vm6 = vcmp.eq.s32.totalorder %v3238_v22, 1 }
0x1936   :  { %v3225_v16 = vpop.permute.xlu1 %3224 }
0x1937   :  { %v3227_v60 = vadd.f32 %v3225_v16, %v3217_v25 }
0x1939   :  { %4326 = vtanh.f32 %v3227_v60 }
0x1943   :  { %v4327_v5 = vpop.eup %4326 }
0x1944   :  { %3230 = vrot.lane.b32.xlu1 %v4327_v5, %s4403_s5 }
0x1947   :  { %v1628_v9 = vpop.permute.xlu1 %1627 }
0x1948   :  { %vm1629_vm0 = vcmp.eq.s32.totalorder %v1628_v9, 1 }
0x1949   :  { %v1630_v13 = vsel %vm1629_vm0, %v4704_v42, %v1344_v14 }
0x194b   :  { %v1914_v35 = vpop.permute.xlu1 %1913 }
0x194c   :  { %vm1915_vm1 = vcmp.eq.s32.totalorder %v1914_v35, 1 }
0x194d   :  { %v1916_v18 = vsel %vm1915_vm1, %v4750_v29, %v1630_v13 }
0x194e   :  { %v2199_v21 = vsel %vm2198_vm2, %v4796_v15, %v1916_v18 }
0x194f   :  { %v2482_v12 = vpop.permute.xlu1 %2481 }
0x1950   :  { %vm2483_vm3 = vcmp.eq.s32.totalorder %v2482_v12, 1 }
0x1951   :  { %v2484_v30 = vsel %vm2483_vm3, %v4842_v6, %v2199_v21 }
0x1952   :  { %v2770_v24 = vsel %vm2769_vm4, %v4888_v59, %v2484_v30 }
0x1953   :  { %v3054_v20 = vpop.permute.xlu1 %3053 }
0x1954   :  { %vm3055_vm5 = vcmp.eq.s32.totalorder %v3054_v20, 1 }
0x1955   :  { %v3056_v53 = vsel %vm3055_vm5, %v4929_v39, %v2770_v24 }
0x19b6   :  { %v3231_v23 = vpop.permute.xlu1 %3230 }
0x19b7   :  { %v3233_v26 = vmul.f32 %v3231_v23, %v3216_v57 }
0x19b9   :  { %v3240_v42 = vsel %vm3239_vm6, %v3233_v26, %v3056_v53 }
0x19ba   :  { %3242 = vrot.lane.b32.xlu0 %v3240_v42, %s4404_s26 }
0x1a2c   :  { %v3243_v29 = vpop.permute.xlu0 %3242 }
0x1a2d   :  { %3246 = vst.msk [vmem:[#allocation7] sm:$0x3] %vm3245_vm7, %v3243_v29 }
0x1a2e   :  { %4352 = shalt.err (!%p4349_p9)
}
0x1a2f   :  { %s4353_s4 = scalar_lea.hbm %s4976_s9, 32 }
0x1a30   :  { %p4354_p10 = scmp.ne.s32.totalorder %s4976_s9, %s4353_s4  ;;  %p4357_p11 = scmp.lt.u32.totalorder %s4353_s4, %s4976_s9 }
0x1a32   :  { %p4359_p12 = pnand %p4357_p11, %p4354_p10 }
0x1a34   :  { %4362 = shalt.err (!%p4359_p12)
}
0x1a35   :  { %3256 = dma.vmem_to_hbm [thread:$0]  %s3254_s8, 32, %s4976_s9, [#allocation5]  }
0x1a36   :  { %4397 = dma.done.wait [#allocation5], 32  }
0x1a37   :  { %4398 = vsyncadd [#allocation5], 4294967264 }
0x1a38   :  { %3260 = vsyncpa [#allocation5], 1 }
0x1a39   :  { %3261 = vsyncpa [#allocation6], 1 }
0x1a3a   :  { %3262 = vsyncmov [#allocation3] }
0x1a3d   :  { %s3263_s10 = vpop.sfrf %3262 }
0x1a3e   :  { %p3621_p13 = scmp.ne.s32.totalorder %s3263_s10, 0 }
0x1a40   :  { %3267 = shalt.err (%p3621_p13)  }
0x1a41   :  { %3269 = vsyncmov [#allocation3 + $0x1] }
0x1a44   :  { %s3270_s11 = vpop.sfrf %3269 }
0x1a45   :  { %p3622_p0 = scmp.ne.s32.totalorder %s3270_s11, 0 }
0x1a47   :  { %3274 = shalt.err (%p3622_p0)  }
0x1a48   :  { %3276 = vsyncmov [#allocation3 + $0x2] }
0x1a4b   :  { %s3277_s2 = vpop.sfrf %3276 }
0x1a4c   :  { %p3623_p1 = scmp.ne.s32.totalorder %s3277_s2, 0 }
0x1a4e   :  { %3281 = shalt.err (%p3623_p1)  }
0x1a4f   :  { %3283 = vsyncmov [#allocation3 + $0x3] }
0x1a52   :  { %s3284_s12 = vpop.sfrf %3283 }
0x1a53   :  { %p3624_p2 = scmp.ne.s32.totalorder %s3284_s12, 0 }
0x1a55   :  { %3288 = shalt.err (%p3624_p2)  }
0x1a56   :  { %3290 = vsyncmov [#allocation3 + $0x4] }
0x1a59   :  { %s3291_s9 = vpop.sfrf %3290 }
0x1a5a   :  { %p3625_p3 = scmp.ne.s32.totalorder %s3291_s9, 0 }
0x1a5c   :  { %3295 = shalt.err (%p3625_p3)  }
0x1a5d   :  { %3297 = vsyncmov [#allocation3 + $0x5] }
0x1a60   :  { %s3298_s7 = vpop.sfrf %3297 }
0x1a61   :  { %p3626_p4 = scmp.ne.s32.totalorder %s3298_s7, 0 }
0x1a63   :  { %3302 = shalt.err (%p3626_p4)  }
0x1a64   :  { %3304 = vsyncmov [#allocation3 + $0x6] }
0x1a67   :  { %s3305_s13 = vpop.sfrf %3304 }
0x1a68   :  { %p3627_p5 = scmp.ne.s32.totalorder %s3305_s13, 0 }
0x1a6a   :  { %3309 = shalt.err (%p3627_p5)  }
0x1a6b   :  { %3311 = vsyncmov [#allocation3 + $0x7] }
0x1a6e   :  { %s3312_s14 = vpop.sfrf %3311 }
0x1a6f   :  { %p3628_p6 = scmp.ne.s32.totalorder %s3312_s14, 0 }
0x1a71   :  { %3316 = shalt.err (%p3628_p6)  }
0x1a72   :  { %3318 = vsyncmov [#allocation3 + $0x8] }
0x1a75   :  { %s3319_s15 = vpop.sfrf %3318 }
0x1a76   :  { %p3629_p7 = scmp.ne.s32.totalorder %s3319_s15, 0 }
0x1a78   :  { %3323 = shalt.err (%p3629_p7)  }
0x1a79   :  { %3325 = vsyncmov [#allocation3 + $0x9] }
0x1a7c   :  { %s3326_s16 = vpop.sfrf %3325 }
0x1a7d   :  { %p3630_p8 = scmp.ne.s32.totalorder %s3326_s16, 0 }
0x1a7f   :  { %3330 = shalt.err (%p3630_p8)  }
0x1a80   :  { %3332 = vsyncmov [#allocation3 + $0xa] }
0x1a83   :  { %s3333_s17 = vpop.sfrf %3332 }
0x1a84   :  { %p3631_p9 = scmp.ne.s32.totalorder %s3333_s17, 0 }
0x1a86   :  { %3337 = shalt.err (%p3631_p9)  }
0x1a87   :  { %3339 = vsyncmov [#allocation3 + $0xb] }
0x1a8a   :  { %s3340_s0 = vpop.sfrf %3339 }
0x1a8b   :  { %p3632_p10 = scmp.ne.s32.totalorder %s3340_s0, 0 }
0x1a8d   :  { %3344 = shalt.err (%p3632_p10)  }
0x1a8e   :  { %3346 = vsyncmov [#allocation3 + $0xc] }
0x1a91   :  { %s3347_s18 = vpop.sfrf %3346 }
0x1a92   :  { %p3633_p11 = scmp.ne.s32.totalorder %s3347_s18, 0 }
0x1a94   :  { %3351 = shalt.err (%p3633_p11)  }
0x1a95   :  { %3353 = vsyncmov [#allocation3 + $0xd] }
0x1a98   :  { %s3354_s6 = vpop.sfrf %3353 }
0x1a99   :  { %p3634_p12 = scmp.ne.s32.totalorder %s3354_s6, 0 }
0x1a9b   :  { %3358 = shalt.err (%p3634_p12)  }
0x1a9c   :  { %3360 = vsyncmov [#allocation3 + $0xe] }
0x1a9f   :  { %s3361_s19 = vpop.sfrf %3360 }
0x1aa0   :  { %p3635_p13 = scmp.ne.s32.totalorder %s3361_s19, 0 }
0x1aa2   :  { %3365 = shalt.err (%p3635_p13)  }
0x1aa3   :  { %3367 = vsyncmov [#allocation3 + $0xf] }
0x1aa6   :  { %s3368_s20 = vpop.sfrf %3367 }
0x1aa7   :  { %p3636_p0 = scmp.ne.s32.totalorder %s3368_s20, 0 }
0x1aa9   :  { %3372 = shalt.err (%p3636_p0)  }

</bundles_post_ra>
